<compile_context>
chip_gen: v5e
topology: v5e:2x2
jax: 0.10.0
libtpu: 0.0.40
codegen_flags: <defaults>
</compile_context>

<pallas_src>
import functools

import numpy as np
import jax
import jax.numpy as jnp
from jax.experimental import pallas as pl
from jax.experimental.pallas import tpu as pltpu


# ---------------- tiling helpers ----------------

def _round_up(x, m):
    return ((x + m - 1) // m) * m


def _row_tile(m, target=512):
    """Row tile for (M, C) kernels: large tiles (HBM-bound), but keep >= 2 grid
    steps when possible so v7x's two TensorCores both get work."""
    if m <= 8:
        return m
    t = min(target, _round_up(pl.cdiv(m, 2), 8))
    return min(t, m)


_P1 = pltpu.CompilerParams(dimension_semantics=("parallel",))
_P2 = pltpu.CompilerParams(dimension_semantics=("parallel", "parallel"))


# ---------------- Pallas kernels ----------------

def _lerp_axis_kernel(a_ref, b_ref, t_ref, o_ref):
    # a/b: (TP, S_out, TQ) corner values; t: (S_out, 1) interpolation weights.
    t = t_ref[...][None]                      # (1, S_out, 1), f32
    a = a_ref[...].astype(jnp.float32)
    b = b_ref[...].astype(jnp.float32)
    o_ref[...] = (a * (1.0 - t) + b * t).astype(o_ref.dtype)


def _mm_bias_kernel(a_ref, w_ref, bias_ref, o_ref):
    acc = jnp.dot(a_ref[...], w_ref[...], preferred_element_type=jnp.float32)
    o_ref[...] = acc + bias_ref[...]


def _add_mm_kernel(base_ref, other_ref, a_ref, w_ref, o_ref):
    acc = jnp.dot(a_ref[...], w_ref[...], preferred_element_type=jnp.float32)
    o_ref[...] = base_ref[...] + other_ref[...] + acc


def _add_2mm_kernel(base_ref, a_ref, w1_ref, b_ref, w2_ref, o_ref):
    acc = jnp.dot(a_ref[...], w1_ref[...], preferred_element_type=jnp.float32)
    acc = acc + jnp.dot(b_ref[...], w2_ref[...], preferred_element_type=jnp.float32)
    o_ref[...] = base_ref[...] + acc


def _add_2mm_bias_kernel(base_ref, a_ref, w1_ref, b_ref, w2_ref, bias_ref, o_ref):
    acc = jnp.dot(a_ref[...], w1_ref[...], preferred_element_type=jnp.float32)
    acc = acc + jnp.dot(b_ref[...], w2_ref[...], preferred_element_type=jnp.float32)
    o_ref[...] = base_ref[...] + acc + bias_ref[...]


# ---------------- Pallas wrappers ----------------

def lerp_axis_pallas(a, b, t, out_dtype):
    """o[p, s, q] = a[p, s, q] * (1 - t[s]) + b[p, s, q] * t[s]."""
    p_dim, s_dim, q_dim = a.shape
    tq = q_dim if q_dim <= 2048 else 2048
    bytes_per_row = s_dim * tq * a.dtype.itemsize
    tp = int(min(p_dim, max(1, (1 << 20) // max(1, bytes_per_row))))
    spec = pl.BlockSpec((tp, s_dim, tq), lambda i, j: (i, 0, j))
    return pl.pallas_call(
        _lerp_axis_kernel,
        out_shape=jax.ShapeDtypeStruct((p_dim, s_dim, q_dim), out_dtype),
        grid=(pl.cdiv(p_dim, tp), pl.cdiv(q_dim, tq)),
        in_specs=[spec, spec, pl.BlockSpec((s_dim, 1), lambda i, j: (0, 0))],
        out_specs=spec,
        compiler_params=_P2,
    )(a, b, t)


def mm_bias_pallas(a, w, bias):
    m, k = a.shape
    n = w.shape[1]
    tm = _row_tile(m)
    return pl.pallas_call(
        _mm_bias_kernel,
        out_shape=jax.ShapeDtypeStruct((m, n), jnp.float32),
        grid=(pl.cdiv(m, tm),),
        in_specs=[
            pl.BlockSpec((tm, k), lambda i: (i, 0)),
            pl.BlockSpec((k, n), lambda i: (0, 0)),
            pl.BlockSpec((1, n), lambda i: (0, 0)),
        ],
        out_specs=pl.BlockSpec((tm, n), lambda i: (i, 0)),
        compiler_params=_P1,
    )(a, w, bias)


def add_mm_pallas(base, other, a, w):
    """out = base + other + a @ w   (base/other f32, a/w bf16, f32 accumulate)."""
    m, n = base.shape
    k = a.shape[1]
    tm = _row_tile(m)
    return pl.pallas_call(
        _add_mm_kernel,
        out_shape=jax.ShapeDtypeStruct((m, n), jnp.float32),
        grid=(pl.cdiv(m, tm),),
        in_specs=[
            pl.BlockSpec((tm, n), lambda i: (i, 0)),
            pl.BlockSpec((tm, n), lambda i: (i, 0)),
            pl.BlockSpec((tm, k), lambda i: (i, 0)),
            pl.BlockSpec((k, n), lambda i: (0, 0)),
        ],
        out_specs=pl.BlockSpec((tm, n), lambda i: (i, 0)),
        compiler_params=_P1,
    )(base, other, a, w)


def add_2mm_pallas(base, a, w1, b, w2, bias=None):
    """out = base + a @ w1 + b @ w2 [+ bias]   (fused in one kernel)."""
    m, n = base.shape
    k1, k2 = a.shape[1], b.shape[1]
    tm = _row_tile(m)
    in_specs = [
        pl.BlockSpec((tm, n), lambda i: (i, 0)),
        pl.BlockSpec((tm, k1), lambda i: (i, 0)),
        pl.BlockSpec((k1, n), lambda i: (0, 0)),
        pl.BlockSpec((tm, k2), lambda i: (i, 0)),
        pl.BlockSpec((k2, n), lambda i: (0, 0)),
    ]
    args = [base, a, w1, b, w2]
    kernel = _add_2mm_kernel
    if bias is not None:
        in_specs.append(pl.BlockSpec((1, n), lambda i: (0, 0)))
        args.append(bias)
        kernel = _add_2mm_bias_kernel
    return pl.pallas_call(
        kernel,
        out_shape=jax.ShapeDtypeStruct((m, n), jnp.float32),
        grid=(pl.cdiv(m, tm),),
        in_specs=in_specs,
        out_specs=pl.BlockSpec((tm, n), lambda i: (i, 0)),
        compiler_params=_P1,
    )(*args)


# ---------------- glue: trilinear upsample (PyTorch align_corners=False) ----------------

def _source_lerp_coeffs(in_size, out_size):
    scale = in_size / out_size
    dst = np.arange(out_size, dtype=np.float64)
    src = np.maximum((dst + 0.5) * scale - 0.5, 0.0)
    i0 = np.minimum(np.floor(src).astype(np.int32), in_size - 1)
    i1 = np.minimum(i0 + 1, in_size - 1)
    t = (src - i0).astype(np.float32)
    return i0, i1, t


def _upsample_axis_pallas(x, axis, out_size):
    # TODO(synk): fuse the corner gather into the lerp kernel (halo BlockSpecs /
    # in-kernel take) so the two corner tensors are never materialized in HBM.
    i0, i1, t = _source_lerp_coeffs(x.shape[axis], out_size)
    a = jnp.take(x, i0, axis=axis)
    b = jnp.take(x, i1, axis=axis)
    p = int(np.prod(x.shape[:axis]))
    q = int(np.prod(x.shape[axis + 1:]))
    out = lerp_axis_pallas(
        a.reshape(p, out_size, q),
        b.reshape(p, out_size, q),
        jnp.asarray(t).reshape(out_size, 1),
        x.dtype,
    )
    return out.reshape(x.shape[:axis] + (out_size,) + x.shape[axis + 1:])


def upsample_trilinear_pallas(x, out_spatial):
    do, ho, wo = out_spatial
    x = _upsample_axis_pallas(x, 3, wo)
    x = _upsample_axis_pallas(x, 2, ho)
    x = _upsample_axis_pallas(x, 1, do)
    return x


def _patches_2x2x2(x):
    """im2col for a 2x2x2 stride-2 conv; x: (N, D, H, W, C) -> (M_out, 8*C).
    TODO(synk): fold this relayout into the matmul kernel via strided in-kernel loads."""
    n, d, h, w, c = x.shape
    x = x.reshape(n, d // 2, 2, h // 2, 2, w // 2, 2, c)
    x = jnp.transpose(x, (0, 1, 3, 5, 2, 4, 6, 7))  # (n, od, oh, ow, kd, kh, kw, c)
    return x.reshape(n * (d // 2) * (h // 2) * (w // 2), 8 * c)


# ---------------- SkipConnection forward ----------------

def skip_connection_forward(params, x1, x2, x3):
    to_cl = lambda v: jnp.transpose(v, (0, 2, 3, 4, 1))   # NCDHW -> NDHWC
    to_cf = lambda v: jnp.transpose(v, (0, 4, 1, 2, 3))   # NDHWC -> NCDHW
    x1c, x2c, x3c = to_cl(x1), to_cl(x2), to_cl(x3)

    n = x1c.shape[0]
    d1, h1, w1 = x1c.shape[1:4]
    d2, h2, w2 = x2c.shape[1:4]
    c0, c1, c2 = x1c.shape[-1], x2c.shape[-1], x3c.shape[-1]
    m1 = x1c.size // c0
    m2 = x2c.size // c1
    m3 = x3c.size // c2

    # bf16 copies feed the (memory-bound) upsample path and every matmul operand;
    # residual bases, biases and all accumulation stay f32.
    x1b = x1c.astype(jnp.bfloat16)
    x2b = x2c.astype(jnp.bfloat16)
    x3b = x3c.astype(jnp.bfloat16)

    up2_x2 = upsample_trilinear_pallas(x2b, (d1, h1, w1))   # (n,d1,h1,w1,c1) bf16
    up4_x3 = upsample_trilinear_pallas(x3b, (d1, h1, w1))   # (n,d1,h1,w1,c2) bf16
    up2_x3 = upsample_trilinear_pallas(x3b, (d2, h2, w2))   # (n,d2,h2,w2,c2) bf16

    # x1_fused = x1 + fc1(upx2(x2)) + fc2(upx4(x3))          (fc1/fc2: bias-free)
    x1f = add_2mm_pallas(
        x1c.reshape(m1, c0),
        up2_x2.reshape(m1, c1), params["fc1"],
        up4_x3.reshape(m1, c2), params["fc2"],
    ).reshape(x1c.shape)

    # downx2(x1): computed exactly once, reused by x2_fused and x3_fused.
    p_x1 = _patches_2x2x2(x1b)                                          # (m2, 8*c0) bf16
    d2x1 = mm_bias_pallas(p_x1, params["down2_w"], params["down2_b"])   # (m2, c1) f32

    # x2_fused = downx2(x1) + x2 + fc3(upx2(x3))
    x2f = add_mm_pallas(
        x2c.reshape(m2, c1), d2x1,
        up2_x3.reshape(m2, c2), params["fc3"],
    ).reshape(x2c.shape)

    # x3_fused = downx4(downx2(x1)) + downx4(x2) + x3
    p_d2x1 = _patches_2x2x2(
        d2x1.reshape(n, d2, h2, w2, c1).astype(jnp.bfloat16))           # (m3, 8*c1)
    p_x2 = _patches_2x2x2(x2b)                                          # (m3, 8*c1)
    x3f = add_2mm_pallas(
        x3c.reshape(m3, c2),
        p_d2x1, params["down4_w"],
        p_x2, params["down4_w"],
        bias=2.0 * params["down4_b"],
    ).reshape(x3c.shape)

    return to_cf(x1f), to_cf(x2f), to_cf(x3f)


# ---------------- pure-jnp f32 reference of the module math ----------------

def _upsample_trilinear_ref(x, out_spatial):
    def up_axis(v, axis, out_size):
        i0, i1, t = _source_lerp_coeffs(v.shape[axis], out_size)
        a = jnp.take(v, i0, axis=axis)
        b = jnp.take(v, i1, axis=axis)
        shape = [1] * v.ndim
        shape[axis] = out_size
        t = jnp.asarray(t).reshape(shape)
        return a * (1.0 - t) + b * t
    do, ho, wo = out_spatial
    x = up_axis(x, 3, wo)
    x = up_axis(x, 2, ho)
    x = up_axis(x, 1, do)
    return x


def skip_connection_ref(params, x1, x2, x3):
    to_cl = lambda v: jnp.transpose(v, (0, 2, 3, 4, 1))
    to_cf = lambda v: jnp.transpose(v, (0, 4, 1, 2, 3))
    x1c, x2c, x3c = to_cl(x1), to_cl(x2), to_cl(x3)
    n = x1c.shape[0]
    d1, h1, w1 = x1c.shape[1:4]
    d2, h2, w2 = x2c.shape[1:4]
    c0, c1, c2 = x1c.shape[-1], x2c.shape[-1], x3c.shape[-1]
    m1, m2, m3 = x1c.size // c0, x2c.size // c1, x3c.size // c2

    up2_x2 = _upsample_trilinear_ref(x2c, (d1, h1, w1))
    up4_x3 = _upsample_trilinear_ref(x3c, (d1, h1, w1))
    up2_x3 = _upsample_trilinear_ref(x3c, (d2, h2, w2))

    x1f = (x1c.reshape(m1, c0)
           + up2_x2.reshape(m1, c1) @ params["fc1"]
           + up4_x3.reshape(m1, c2) @ params["fc2"]).reshape(x1c.shape)

    d2x1 = _patches_2x2x2(x1c) @ params["down2_w"] + params["down2_b"]
    x2f = (x2c.reshape(m2, c1) + d2x1
           + up2_x3.reshape(m2, c2) @ params["fc3"]).reshape(x2c.shape)

    d2x1v = d2x1.reshape(n, d2, h2, w2, c1)
    x3f = (x3c.reshape(m3, c2)
           + _patches_2x2x2(d2x1v) @ params["down4_w"] + params["down4_b"]
           + _patches_2x2x2(x2c) @ params["down4_w"] + params["down4_b"]
           ).reshape(x3c.shape)

    return to_cf(x1f), to_cf(x2f), to_cf(x3f)


if __name__ == "__main__":
    # Small shapes consistent with the module's pyramid: dim = [16, 32, 64],
    # x1 spatial 8^3, x2 spatial 4^3, x3 spatial 2^3.
    C0, C1, C2 = 16, 32, 64
    N = 2
    D1 = H1 = W1 = 8

    key = jax.random.PRNGKey(0)
    ks = jax.random.split(key, 10)

    # Parameters in PyTorch layouts, converted to channels-last matmul layouts.
    fc1_w = 0.05 * jax.random.normal(ks[0], (C0, C1, 1, 1, 1), jnp.float32)
    fc2_w = 0.05 * jax.random.normal(ks[1], (C0, C2, 1, 1, 1), jnp.float32)
    fc3_w = 0.05 * jax.random.normal(ks[2], (C1, C2, 1, 1, 1), jnp.float32)
    down2_w = 0.05 * jax.random.normal(ks[3], (C1, C0, 2, 2, 2), jnp.float32)
    down2_b = 0.05 * jax.random.normal(ks[4], (C1,), jnp.float32)
    down4_w = 0.05 * jax.random.normal(ks[5], (C2, C1, 2, 2, 2), jnp.float32)
    down4_b = 0.05 * jax.random.normal(ks[6], (C2,), jnp.float32)

    params_f32 = {
        "fc1": jnp.transpose(fc1_w[:, :, 0, 0, 0]),                             # (C1, C0)
        "fc2": jnp.transpose(fc2_w[:, :, 0, 0, 0]),                             # (C2, C0)
        "fc3": jnp.transpose(fc3_w[:, :, 0, 0, 0]),                             # (C2, C1)
        "down2_w": jnp.transpose(down2_w, (2, 3, 4, 1, 0)).reshape(8 * C0, C1),
        "down2_b": down2_b.reshape(1, C1),
        "down4_w": jnp.transpose(down4_w, (2, 3, 4, 1, 0)).reshape(8 * C1, C2),
        "down4_b": down4_b.reshape(1, C2),
    }
    # Kernel params: bf16 weights on the MXU path, f32 biases.
    params = {k: (v if k.endswith("_b") else v.astype(jnp.bfloat16))
              for k, v in params_f32.items()}

    x1 = jax.random.normal(ks[7], (N, C0, D1, H1, W1), jnp.float32)
    x2 = jax.random.normal(ks[8], (N, C1, D1 // 2, H1 // 2, W1 // 2), jnp.float32)
    x3 = jax.random.normal(ks[9], (N, C2, D1 // 4, H1 // 4, W1 // 4), jnp.float32)

    fwd = jax.jit(functools.partial(skip_connection_forward, params))
    out = jax.block_until_ready(fwd(x1, x2, x3))

    ref = skip_connection_ref(params_f32, x1, x2, x3)
    for o, r in zip(out, ref):
        assert o.shape == r.shape and o.dtype == jnp.float32
        err = float(jnp.max(jnp.abs(o - r)))
        assert err < 2e-2, err

    print("KERNEL_OK")
</pallas_src>

<mosaic_0001>
module attributes {stable_mosaic.version = 11 : i64} {
  func.func @_lerp_axis_kernel(%arg0: i32, %arg1: i32, %arg2: memref<32x8x32xbf16, #tpu.memory_space<vmem>>, %arg3: memref<32x8x32xbf16, #tpu.memory_space<vmem>>, %arg4: memref<8x1xf32, #tpu.memory_space<vmem>>, %arg5: memref<32x8x32xbf16, #tpu.memory_space<vmem>>) attributes {dimension_semantics = [#tpu.dimension_semantics<parallel>, #tpu.dimension_semantics<parallel>], iteration_bounds = array<i64: 1, 1>, scalar_prefetch = 0 : i64, scratch_operands = 0 : i64, tpu.core_type = #tpu.core_type<tc>, window_params = [{transform_indices = @transform_0, window_bounds = array<i64: 32, 8, 32>}, {transform_indices = @transform_1, window_bounds = array<i64: 32, 8, 32>}, {pipeline_mode = #tpu.pipeline_mode<synchronous>, transform_indices = @transform_2, window_bounds = array<i64: 8, 1>}, {transform_indices = @transform_3, window_bounds = array<i64: 32, 8, 32>}]} {
    %c0 = arith.constant 0 : index
    %c0_0 = arith.constant 0 : index
    %0 = vector.load %arg4[%c0, %c0_0] : memref<8x1xf32, #tpu.memory_space<vmem>>, vector<8x1xf32>
    %1 = vector.shape_cast %0 : vector<8x1xf32> to vector<1x8x1xf32>
    %c0_1 = arith.constant 0 : index
    %c0_2 = arith.constant 0 : index
    %c0_3 = arith.constant 0 : index
    %2 = vector.load %arg2[%c0_1, %c0_2, %c0_3] : memref<32x8x32xbf16, #tpu.memory_space<vmem>>, vector<32x8x32xbf16>
    %3 = arith.extf %2 : vector<32x8x32xbf16> to vector<32x8x32xf32>
    %c0_4 = arith.constant 0 : index
    %c0_5 = arith.constant 0 : index
    %c0_6 = arith.constant 0 : index
    %4 = vector.load %arg3[%c0_4, %c0_5, %c0_6] : memref<32x8x32xbf16, #tpu.memory_space<vmem>>, vector<32x8x32xbf16>
    %5 = arith.extf %4 : vector<32x8x32xbf16> to vector<32x8x32xf32>
    %cst = arith.constant 1.000000e+00 : f32
    %6 = vector.broadcast %cst : f32 to vector<1x8x1xf32>
    %7 = arith.subf %6, %1 : vector<1x8x1xf32>
    %8 = vector.broadcast %7 : vector<1x8x1xf32> to vector<32x8x32xf32>
    %9 = arith.mulf %3, %8 : vector<32x8x32xf32>
    %10 = vector.broadcast %1 : vector<1x8x1xf32> to vector<32x8x32xf32>
    %11 = arith.mulf %5, %10 : vector<32x8x32xf32>
    %12 = arith.addf %9, %11 : vector<32x8x32xf32>
    %13 = arith.truncf %12 : vector<32x8x32xf32> to vector<32x8x32xbf16>
    %c0_7 = arith.constant 0 : index
    %c0_8 = arith.constant 0 : index
    %c0_9 = arith.constant 0 : index
    %14 = vector.load %arg5[%c0_7, %c0_8, %c0_9] : memref<32x8x32xbf16, #tpu.memory_space<vmem>>, vector<32x8x32xbf16>
    tpu.vector_store %arg5[%c0_7, %c0_8, %c0_9], %13 {strides = array<i32>} : memref<32x8x32xbf16, #tpu.memory_space<vmem>>, vector<32x8x32xbf16>,
    return
  }
  func.func @transform_0(%arg0: i32, %arg1: i32) -> (i32, i32, i32) {
    %c0_i32 = arith.constant 0 : i32
    %c0_i32_0 = arith.constant 0 : i32
    return %arg0, %c0_i32, %arg1 : i32, i32, i32
  }
  func.func @transform_1(%arg0: i32, %arg1: i32) -> (i32, i32, i32) {
    %c0_i32 = arith.constant 0 : i32
    %c0_i32_0 = arith.constant 0 : i32
    return %arg0, %c0_i32, %arg1 : i32, i32, i32
  }
  func.func @transform_2(%arg0: i32, %arg1: i32) -> (i32, i32) {
    %c0_i32 = arith.constant 0 : i32
    %c0_i32_0 = arith.constant 0 : i32
    %c0_i32_1 = arith.constant 0 : i32
    return %c0_i32, %c0_i32_0 : i32, i32
  }
  func.func @transform_3(%arg0: i32, %arg1: i32) -> (i32, i32, i32) {
    %c0_i32 = arith.constant 0 : i32
    %c0_i32_0 = arith.constant 0 : i32
    return %arg0, %c0_i32, %arg1 : i32, i32, i32
  }
}

module attributes {stable_mosaic.version = 11 : i64} {
  func.func @_lerp_axis_kernel(%arg0: i32, %arg1: i32, %arg2: memref<8x8x256xbf16, #tpu.memory_space<vmem>>, %arg3: memref<8x8x256xbf16, #tpu.memory_space<vmem>>, %arg4: memref<8x1xf32, #tpu.memory_space<vmem>>, %arg5: memref<8x8x256xbf16, #tpu.memory_space<vmem>>) attributes {dimension_semantics = [#tpu.dimension_semantics<parallel>, #tpu.dimension_semantics<parallel>], iteration_bounds = array<i64: 1, 1>, scalar_prefetch = 0 : i64, scratch_operands = 0 : i64, tpu.core_type = #tpu.core_type<tc>, window_params = [{transform_indices = @transform_0, window_bounds = array<i64: 8, 8, 256>}, {transform_indices = @transform_1, window_bounds = array<i64: 8, 8, 256>}, {pipeline_mode = #tpu.pipeline_mode<synchronous>, transform_indices = @transform_2, window_bounds = array<i64: 8, 1>}, {transform_indices = @transform_3, window_bounds = array<i64: 8, 8, 256>}]} {
    %c0 = arith.constant 0 : index
    %c0_0 = arith.constant 0 : index
    %0 = vector.load %arg4[%c0, %c0_0] : memref<8x1xf32, #tpu.memory_space<vmem>>, vector<8x1xf32>
    %1 = vector.shape_cast %0 : vector<8x1xf32> to vector<1x8x1xf32>
    %c0_1 = arith.constant 0 : index
    %c0_2 = arith.constant 0 : index
    %c0_3 = arith.constant 0 : index
    %2 = vector.load %arg2[%c0_1, %c0_2, %c0_3] : memref<8x8x256xbf16, #tpu.memory_space<vmem>>, vector<8x8x256xbf16>
    %3 = arith.extf %2 : vector<8x8x256xbf16> to vector<8x8x256xf32>
    %c0_4 = arith.constant 0 : index
    %c0_5 = arith.constant 0 : index
    %c0_6 = arith.constant 0 : index
    %4 = vector.load %arg3[%c0_4, %c0_5, %c0_6] : memref<8x8x256xbf16, #tpu.memory_space<vmem>>, vector<8x8x256xbf16>
    %5 = arith.extf %4 : vector<8x8x256xbf16> to vector<8x8x256xf32>
    %cst = arith.constant 1.000000e+00 : f32
    %6 = vector.broadcast %cst : f32 to vector<1x8x1xf32>
    %7 = arith.subf %6, %1 : vector<1x8x1xf32>
    %8 = vector.broadcast %7 : vector<1x8x1xf32> to vector<8x8x256xf32>
    %9 = arith.mulf %3, %8 : vector<8x8x256xf32>
    %10 = vector.broadcast %1 : vector<1x8x1xf32> to vector<8x8x256xf32>
    %11 = arith.mulf %5, %10 : vector<8x8x256xf32>
    %12 = arith.addf %9, %11 : vector<8x8x256xf32>
    %13 = arith.truncf %12 : vector<8x8x256xf32> to vector<8x8x256xbf16>
    %c0_7 = arith.constant 0 : index
    %c0_8 = arith.constant 0 : index
    %c0_9 = arith.constant 0 : index
    %14 = vector.load %arg5[%c0_7, %c0_8, %c0_9] : memref<8x8x256xbf16, #tpu.memory_space<vmem>>, vector<8x8x256xbf16>
    tpu.vector_store %arg5[%c0_7, %c0_8, %c0_9], %13 {strides = array<i32>} : memref<8x8x256xbf16, #tpu.memory_space<vmem>>, vector<8x8x256xbf16>,
    return
  }
  func.func @transform_0(%arg0: i32, %arg1: i32) -> (i32, i32, i32) {
    %c0_i32 = arith.constant 0 : i32
    %c0_i32_0 = arith.constant 0 : i32
    return %arg0, %c0_i32, %arg1 : i32, i32, i32
  }
  func.func @transform_1(%arg0: i32, %arg1: i32) -> (i32, i32, i32) {
    %c0_i32 = arith.constant 0 : i32
    %c0_i32_0 = arith.constant 0 : i32
    return %arg0, %c0_i32, %arg1 : i32, i32, i32
  }
  func.func @transform_2(%arg0: i32, %arg1: i32) -> (i32, i32) {
    %c0_i32 = arith.constant 0 : i32
    %c0_i32_0 = arith.constant 0 : i32
    %c0_i32_1 = arith.constant 0 : i32
    return %c0_i32, %c0_i32_0 : i32, i32
  }
  func.func @transform_3(%arg0: i32, %arg1: i32) -> (i32, i32, i32) {
    %c0_i32 = arith.constant 0 : i32
    %c0_i32_0 = arith.constant 0 : i32
    return %arg0, %c0_i32, %arg1 : i32, i32, i32
  }
}

module attributes {stable_mosaic.version = 11 : i64} {
  func.func @_lerp_axis_kernel(%arg0: i32, %arg1: i32, %arg2: memref<2x8x2048xbf16, #tpu.memory_space<vmem>>, %arg3: memref<2x8x2048xbf16, #tpu.memory_space<vmem>>, %arg4: memref<8x1xf32, #tpu.memory_space<vmem>>, %arg5: memref<2x8x2048xbf16, #tpu.memory_space<vmem>>) attributes {dimension_semantics = [#tpu.dimension_semantics<parallel>, #tpu.dimension_semantics<parallel>], iteration_bounds = array<i64: 1, 1>, scalar_prefetch = 0 : i64, scratch_operands = 0 : i64, tpu.core_type = #tpu.core_type<tc>, window_params = [{transform_indices = @transform_0, window_bounds = array<i64: 2, 8, 2048>}, {transform_indices = @transform_1, window_bounds = array<i64: 2, 8, 2048>}, {pipeline_mode = #tpu.pipeline_mode<synchronous>, transform_indices = @transform_2, window_bounds = array<i64: 8, 1>}, {transform_indices = @transform_3, window_bounds = array<i64: 2, 8, 2048>}]} {
    %c0 = arith.constant 0 : index
    %c0_0 = arith.constant 0 : index
    %0 = vector.load %arg4[%c0, %c0_0] : memref<8x1xf32, #tpu.memory_space<vmem>>, vector<8x1xf32>
    %1 = vector.shape_cast %0 : vector<8x1xf32> to vector<1x8x1xf32>
    %c0_1 = arith.constant 0 : index
    %c0_2 = arith.constant 0 : index
    %c0_3 = arith.constant 0 : index
    %2 = vector.load %arg2[%c0_1, %c0_2, %c0_3] : memref<2x8x2048xbf16, #tpu.memory_space<vmem>>, vector<2x8x2048xbf16>
    %3 = arith.extf %2 : vector<2x8x2048xbf16> to vector<2x8x2048xf32>
    %c0_4 = arith.constant 0 : index
    %c0_5 = arith.constant 0 : index
    %c0_6 = arith.constant 0 : index
    %4 = vector.load %arg3[%c0_4, %c0_5, %c0_6] : memref<2x8x2048xbf16, #tpu.memory_space<vmem>>, vector<2x8x2048xbf16>
    %5 = arith.extf %4 : vector<2x8x2048xbf16> to vector<2x8x2048xf32>
    %cst = arith.constant 1.000000e+00 : f32
    %6 = vector.broadcast %cst : f32 to vector<1x8x1xf32>
    %7 = arith.subf %6, %1 : vector<1x8x1xf32>
    %8 = vector.broadcast %7 : vector<1x8x1xf32> to vector<2x8x2048xf32>
    %9 = arith.mulf %3, %8 : vector<2x8x2048xf32>
    %10 = vector.broadcast %1 : vector<1x8x1xf32> to vector<2x8x2048xf32>
    %11 = arith.mulf %5, %10 : vector<2x8x2048xf32>
    %12 = arith.addf %9, %11 : vector<2x8x2048xf32>
    %13 = arith.truncf %12 : vector<2x8x2048xf32> to vector<2x8x2048xbf16>
    %c0_7 = arith.constant 0 : index
    %c0_8 = arith.constant 0 : index
    %c0_9 = arith.constant 0 : index
    %14 = vector.load %arg5[%c0_7, %c0_8, %c0_9] : memref<2x8x2048xbf16, #tpu.memory_space<vmem>>, vector<2x8x2048xbf16>
    tpu.vector_store %arg5[%c0_7, %c0_8, %c0_9], %13 {strides = array<i32>} : memref<2x8x2048xbf16, #tpu.memory_space<vmem>>, vector<2x8x2048xbf16>,
    return
  }
  func.func @transform_0(%arg0: i32, %arg1: i32) -> (i32, i32, i32) {
    %c0_i32 = arith.constant 0 : i32
    %c0_i32_0 = arith.constant 0 : i32
    return %arg0, %c0_i32, %arg1 : i32, i32, i32
  }
  func.func @transform_1(%arg0: i32, %arg1: i32) -> (i32, i32, i32) {
    %c0_i32 = arith.constant 0 : i32
    %c0_i32_0 = arith.constant 0 : i32
    return %arg0, %c0_i32, %arg1 : i32, i32, i32
  }
  func.func @transform_2(%arg0: i32, %arg1: i32) -> (i32, i32) {
    %c0_i32 = arith.constant 0 : i32
    %c0_i32_0 = arith.constant 0 : i32
    %c0_i32_1 = arith.constant 0 : i32
    return %c0_i32, %c0_i32_0 : i32, i32
  }
  func.func @transform_3(%arg0: i32, %arg1: i32) -> (i32, i32, i32) {
    %c0_i32 = arith.constant 0 : i32
    %c0_i32_0 = arith.constant 0 : i32
    return %arg0, %c0_i32, %arg1 : i32, i32, i32
  }
}

module attributes {stable_mosaic.version = 11 : i64} {
  func.func @_lerp_axis_kernel(%arg0: i32, %arg1: i32, %arg2: memref<8x8x64xbf16, #tpu.memory_space<vmem>>, %arg3: memref<8x8x64xbf16, #tpu.memory_space<vmem>>, %arg4: memref<8x1xf32, #tpu.memory_space<vmem>>, %arg5: memref<8x8x64xbf16, #tpu.memory_space<vmem>>) attributes {dimension_semantics = [#tpu.dimension_semantics<parallel>, #tpu.dimension_semantics<parallel>], iteration_bounds = array<i64: 1, 1>, scalar_prefetch = 0 : i64, scratch_operands = 0 : i64, tpu.core_type = #tpu.core_type<tc>, window_params = [{transform_indices = @transform_0, window_bounds = array<i64: 8, 8, 64>}, {transform_indices = @transform_1, window_bounds = array<i64: 8, 8, 64>}, {pipeline_mode = #tpu.pipeline_mode<synchronous>, transform_indices = @transform_2, window_bounds = array<i64: 8, 1>}, {transform_indices = @transform_3, window_bounds = array<i64: 8, 8, 64>}]} {
    %c0 = arith.constant 0 : index
    %c0_0 = arith.constant 0 : index
    %0 = vector.load %arg4[%c0, %c0_0] : memref<8x1xf32, #tpu.memory_space<vmem>>, vector<8x1xf32>
    %1 = vector.shape_cast %0 : vector<8x1xf32> to vector<1x8x1xf32>
    %c0_1 = arith.constant 0 : index
    %c0_2 = arith.constant 0 : index
    %c0_3 = arith.constant 0 : index
    %2 = vector.load %arg2[%c0_1, %c0_2, %c0_3] : memref<8x8x64xbf16, #tpu.memory_space<vmem>>, vector<8x8x64xbf16>
    %3 = arith.extf %2 : vector<8x8x64xbf16> to vector<8x8x64xf32>
    %c0_4 = arith.constant 0 : index
    %c0_5 = arith.constant 0 : index
    %c0_6 = arith.constant 0 : index
    %4 = vector.load %arg3[%c0_4, %c0_5, %c0_6] : memref<8x8x64xbf16, #tpu.memory_space<vmem>>, vector<8x8x64xbf16>
    %5 = arith.extf %4 : vector<8x8x64xbf16> to vector<8x8x64xf32>
    %cst = arith.constant 1.000000e+00 : f32
    %6 = vector.broadcast %cst : f32 to vector<1x8x1xf32>
    %7 = arith.subf %6, %1 : vector<1x8x1xf32>
    %8 = vector.broadcast %7 : vector<1x8x1xf32> to vector<8x8x64xf32>
    %9 = arith.mulf %3, %8 : vector<8x8x64xf32>
    %10 = vector.broadcast %1 : vector<1x8x1xf32> to vector<8x8x64xf32>
    %11 = arith.mulf %5, %10 : vector<8x8x64xf32>
    %12 = arith.addf %9, %11 : vector<8x8x64xf32>
    %13 = arith.truncf %12 : vector<8x8x64xf32> to vector<8x8x64xbf16>
    %c0_7 = arith.constant 0 : index
    %c0_8 = arith.constant 0 : index
    %c0_9 = arith.constant 0 : index
    %14 = vector.load %arg5[%c0_7, %c0_8, %c0_9] : memref<8x8x64xbf16, #tpu.memory_space<vmem>>, vector<8x8x64xbf16>
    tpu.vector_store %arg5[%c0_7, %c0_8, %c0_9], %13 {strides = array<i32>} : memref<8x8x64xbf16, #tpu.memory_space<vmem>>, vector<8x8x64xbf16>,
    return
  }
  func.func @transform_0(%arg0: i32, %arg1: i32) -> (i32, i32, i32) {
    %c0_i32 = arith.constant 0 : i32
    %c0_i32_0 = arith.constant 0 : i32
    return %arg0, %c0_i32, %arg1 : i32, i32, i32
  }
  func.func @transform_1(%arg0: i32, %arg1: i32) -> (i32, i32, i32) {
    %c0_i32 = arith.constant 0 : i32
    %c0_i32_0 = arith.constant 0 : i32
    return %arg0, %c0_i32, %arg1 : i32, i32, i32
  }
  func.func @transform_2(%arg0: i32, %arg1: i32) -> (i32, i32) {
    %c0_i32 = arith.constant 0 : i32
    %c0_i32_0 = arith.constant 0 : i32
    %c0_i32_1 = arith.constant 0 : i32
    return %c0_i32, %c0_i32_0 : i32, i32
  }
  func.func @transform_3(%arg0: i32, %arg1: i32) -> (i32, i32, i32) {
    %c0_i32 = arith.constant 0 : i32
    %c0_i32_0 = arith.constant 0 : i32
    return %arg0, %c0_i32, %arg1 : i32, i32, i32
  }
}

module attributes {stable_mosaic.version = 11 : i64} {
  func.func @_lerp_axis_kernel(%arg0: i32, %arg1: i32, %arg2: memref<4x8x512xbf16, #tpu.memory_space<vmem>>, %arg3: memref<4x8x512xbf16, #tpu.memory_space<vmem>>, %arg4: memref<8x1xf32, #tpu.memory_space<vmem>>, %arg5: memref<4x8x512xbf16, #tpu.memory_space<vmem>>) attributes {dimension_semantics = [#tpu.dimension_semantics<parallel>, #tpu.dimension_semantics<parallel>], iteration_bounds = array<i64: 1, 1>, scalar_prefetch = 0 : i64, scratch_operands = 0 : i64, tpu.core_type = #tpu.core_type<tc>, window_params = [{transform_indices = @transform_0, window_bounds = array<i64: 4, 8, 512>}, {transform_indices = @transform_1, window_bounds = array<i64: 4, 8, 512>}, {pipeline_mode = #tpu.pipeline_mode<synchronous>, transform_indices = @transform_2, window_bounds = array<i64: 8, 1>}, {transform_indices = @transform_3, window_bounds = array<i64: 4, 8, 512>}]} {
    %c0 = arith.constant 0 : index
    %c0_0 = arith.constant 0 : index
    %0 = vector.load %arg4[%c0, %c0_0] : memref<8x1xf32, #tpu.memory_space<vmem>>, vector<8x1xf32>
    %1 = vector.shape_cast %0 : vector<8x1xf32> to vector<1x8x1xf32>
    %c0_1 = arith.constant 0 : index
    %c0_2 = arith.constant 0 : index
    %c0_3 = arith.constant 0 : index
    %2 = vector.load %arg2[%c0_1, %c0_2, %c0_3] : memref<4x8x512xbf16, #tpu.memory_space<vmem>>, vector<4x8x512xbf16>
    %3 = arith.extf %2 : vector<4x8x512xbf16> to vector<4x8x512xf32>
    %c0_4 = arith.constant 0 : index
    %c0_5 = arith.constant 0 : index
    %c0_6 = arith.constant 0 : index
    %4 = vector.load %arg3[%c0_4, %c0_5, %c0_6] : memref<4x8x512xbf16, #tpu.memory_space<vmem>>, vector<4x8x512xbf16>
    %5 = arith.extf %4 : vector<4x8x512xbf16> to vector<4x8x512xf32>
    %cst = arith.constant 1.000000e+00 : f32
    %6 = vector.broadcast %cst : f32 to vector<1x8x1xf32>
    %7 = arith.subf %6, %1 : vector<1x8x1xf32>
    %8 = vector.broadcast %7 : vector<1x8x1xf32> to vector<4x8x512xf32>
    %9 = arith.mulf %3, %8 : vector<4x8x512xf32>
    %10 = vector.broadcast %1 : vector<1x8x1xf32> to vector<4x8x512xf32>
    %11 = arith.mulf %5, %10 : vector<4x8x512xf32>
    %12 = arith.addf %9, %11 : vector<4x8x512xf32>
    %13 = arith.truncf %12 : vector<4x8x512xf32> to vector<4x8x512xbf16>
    %c0_7 = arith.constant 0 : index
    %c0_8 = arith.constant 0 : index
    %c0_9 = arith.constant 0 : index
    %14 = vector.load %arg5[%c0_7, %c0_8, %c0_9] : memref<4x8x512xbf16, #tpu.memory_space<vmem>>, vector<4x8x512xbf16>
    tpu.vector_store %arg5[%c0_7, %c0_8, %c0_9], %13 {strides = array<i32>} : memref<4x8x512xbf16, #tpu.memory_space<vmem>>, vector<4x8x512xbf16>,
    return
  }
  func.func @transform_0(%arg0: i32, %arg1: i32) -> (i32, i32, i32) {
    %c0_i32 = arith.constant 0 : i32
    %c0_i32_0 = arith.constant 0 : i32
    return %arg0, %c0_i32, %arg1 : i32, i32, i32
  }
  func.func @transform_1(%arg0: i32, %arg1: i32) -> (i32, i32, i32) {
    %c0_i32 = arith.constant 0 : i32
    %c0_i32_0 = arith.constant 0 : i32
    return %arg0, %c0_i32, %arg1 : i32, i32, i32
  }
  func.func @transform_2(%arg0: i32, %arg1: i32) -> (i32, i32) {
    %c0_i32 = arith.constant 0 : i32
    %c0_i32_0 = arith.constant 0 : i32
    %c0_i32_1 = arith.constant 0 : i32
    return %c0_i32, %c0_i32_0 : i32, i32
  }
  func.func @transform_3(%arg0: i32, %arg1: i32) -> (i32, i32, i32) {
    %c0_i32 = arith.constant 0 : i32
    %c0_i32_0 = arith.constant 0 : i32
    return %arg0, %c0_i32, %arg1 : i32, i32, i32
  }
}

module attributes {stable_mosaic.version = 11 : i64} {
  func.func @_lerp_axis_kernel(%arg0: i32, %arg1: i32, %arg2: memref<2x8x2048xbf16, #tpu.memory_space<vmem>>, %arg3: memref<2x8x2048xbf16, #tpu.memory_space<vmem>>, %arg4: memref<8x1xf32, #tpu.memory_space<vmem>>, %arg5: memref<2x8x2048xbf16, #tpu.memory_space<vmem>>) attributes {dimension_semantics = [#tpu.dimension_semantics<parallel>, #tpu.dimension_semantics<parallel>], iteration_bounds = array<i64: 1, 2>, scalar_prefetch = 0 : i64, scratch_operands = 0 : i64, tpu.core_type = #tpu.core_type<tc>, window_params = [{transform_indices = @transform_0, window_bounds = array<i64: 2, 8, 2048>}, {transform_indices = @transform_1, window_bounds = array<i64: 2, 8, 2048>}, {pipeline_mode = #tpu.pipeline_mode<synchronous>, transform_indices = @transform_2, window_bounds = array<i64: 8, 1>}, {transform_indices = @transform_3, window_bounds = array<i64: 2, 8, 2048>}]} {
    %c0 = arith.constant 0 : index
    %c0_0 = arith.constant 0 : index
    %0 = vector.load %arg4[%c0, %c0_0] : memref<8x1xf32, #tpu.memory_space<vmem>>, vector<8x1xf32>
    %1 = vector.shape_cast %0 : vector<8x1xf32> to vector<1x8x1xf32>
    %c0_1 = arith.constant 0 : index
    %c0_2 = arith.constant 0 : index
    %c0_3 = arith.constant 0 : index
    %2 = vector.load %arg2[%c0_1, %c0_2, %c0_3] : memref<2x8x2048xbf16, #tpu.memory_space<vmem>>, vector<2x8x2048xbf16>
    %3 = arith.extf %2 : vector<2x8x2048xbf16> to vector<2x8x2048xf32>
    %c0_4 = arith.constant 0 : index
    %c0_5 = arith.constant 0 : index
    %c0_6 = arith.constant 0 : index
    %4 = vector.load %arg3[%c0_4, %c0_5, %c0_6] : memref<2x8x2048xbf16, #tpu.memory_space<vmem>>, vector<2x8x2048xbf16>
    %5 = arith.extf %4 : vector<2x8x2048xbf16> to vector<2x8x2048xf32>
    %cst = arith.constant 1.000000e+00 : f32
    %6 = vector.broadcast %cst : f32 to vector<1x8x1xf32>
    %7 = arith.subf %6, %1 : vector<1x8x1xf32>
    %8 = vector.broadcast %7 : vector<1x8x1xf32> to vector<2x8x2048xf32>
    %9 = arith.mulf %3, %8 : vector<2x8x2048xf32>
    %10 = vector.broadcast %1 : vector<1x8x1xf32> to vector<2x8x2048xf32>
    %11 = arith.mulf %5, %10 : vector<2x8x2048xf32>
    %12 = arith.addf %9, %11 : vector<2x8x2048xf32>
    %13 = arith.truncf %12 : vector<2x8x2048xf32> to vector<2x8x2048xbf16>
    %c0_7 = arith.constant 0 : index
    %c0_8 = arith.constant 0 : index
    %c0_9 = arith.constant 0 : index
    %14 = vector.load %arg5[%c0_7, %c0_8, %c0_9] : memref<2x8x2048xbf16, #tpu.memory_space<vmem>>, vector<2x8x2048xbf16>
    tpu.vector_store %arg5[%c0_7, %c0_8, %c0_9], %13 {strides = array<i32>} : memref<2x8x2048xbf16, #tpu.memory_space<vmem>>, vector<2x8x2048xbf16>,
    return
  }
  func.func @transform_0(%arg0: i32, %arg1: i32) -> (i32, i32, i32) {
    %c0_i32 = arith.constant 0 : i32
    %c0_i32_0 = arith.constant 0 : i32
    return %arg0, %c0_i32, %arg1 : i32, i32, i32
  }
  func.func @transform_1(%arg0: i32, %arg1: i32) -> (i32, i32, i32) {
    %c0_i32 = arith.constant 0 : i32
    %c0_i32_0 = arith.constant 0 : i32
    return %arg0, %c0_i32, %arg1 : i32, i32, i32
  }
  func.func @transform_2(%arg0: i32, %arg1: i32) -> (i32, i32) {
    %c0_i32 = arith.constant 0 : i32
    %c0_i32_0 = arith.constant 0 : i32
    %c0_i32_1 = arith.constant 0 : i32
    return %c0_i32, %c0_i32_0 : i32, i32
  }
  func.func @transform_3(%arg0: i32, %arg1: i32) -> (i32, i32, i32) {
    %c0_i32 = arith.constant 0 : i32
    %c0_i32_0 = arith.constant 0 : i32
    return %arg0, %c0_i32, %arg1 : i32, i32, i32
  }
}

module attributes {stable_mosaic.version = 11 : i64} {
  func.func @_add_2mm_kernel(%arg0: i32, %arg1: memref<512x16xf32, #tpu.memory_space<vmem>>, %arg2: memref<512x32xbf16, #tpu.memory_space<vmem>>, %arg3: memref<32x16xbf16, #tpu.memory_space<vmem>>, %arg4: memref<512x64xbf16, #tpu.memory_space<vmem>>, %arg5: memref<64x16xbf16, #tpu.memory_space<vmem>>, %arg6: memref<512x16xf32, #tpu.memory_space<vmem>>) attributes {dimension_semantics = [#tpu.dimension_semantics<parallel>], iteration_bounds = array<i64: 2>, scalar_prefetch = 0 : i64, scratch_operands = 0 : i64, tpu.core_type = #tpu.core_type<tc>, window_params = [{transform_indices = @transform_0, window_bounds = array<i64: 512, 16>}, {transform_indices = @transform_1, window_bounds = array<i64: 512, 32>}, {pipeline_mode = #tpu.pipeline_mode<synchronous>, transform_indices = @transform_2, window_bounds = array<i64: 32, 16>}, {transform_indices = @transform_3, window_bounds = array<i64: 512, 64>}, {pipeline_mode = #tpu.pipeline_mode<synchronous>, transform_indices = @transform_4, window_bounds = array<i64: 64, 16>}, {transform_indices = @transform_5, window_bounds = array<i64: 512, 16>}]} {
    %c0 = arith.constant 0 : index
    %c0_0 = arith.constant 0 : index
    %0 = vector.load %arg2[%c0, %c0_0] : memref<512x32xbf16, #tpu.memory_space<vmem>>, vector<512x32xbf16>
    %c0_1 = arith.constant 0 : index
    %c0_2 = arith.constant 0 : index
    %1 = vector.load %arg3[%c0_1, %c0_2] : memref<32x16xbf16, #tpu.memory_space<vmem>>, vector<32x16xbf16>
    %cst = arith.constant dense<0.000000e+00> : vector<512x16xf32>
    %2 = tpu.matmul %0, %1, %cst {dimension_numbers = #tpu.dot_dimension_numbers<[1], [0], [0], [1], [0, 0, 1, 1], [], []>} : vector<512x32xbf16>, vector<32x16xbf16>, vector<512x16xf32> -> vector<512x16xf32>
    %c0_3 = arith.constant 0 : index
    %c0_4 = arith.constant 0 : index
    %3 = vector.load %arg4[%c0_3, %c0_4] : memref<512x64xbf16, #tpu.memory_space<vmem>>, vector<512x64xbf16>
    %c0_5 = arith.constant 0 : index
    %c0_6 = arith.constant 0 : index
    %4 = vector.load %arg5[%c0_5, %c0_6] : memref<64x16xbf16, #tpu.memory_space<vmem>>, vector<64x16xbf16>
    %cst_7 = arith.constant dense<0.000000e+00> : vector<512x16xf32>
    %5 = tpu.matmul %3, %4, %cst_7 {dimension_numbers = #tpu.dot_dimension_numbers<[1], [0], [0], [1], [0, 0, 1, 1], [], []>} : vector<512x64xbf16>, vector<64x16xbf16>, vector<512x16xf32> -> vector<512x16xf32>
    %6 = arith.addf %2, %5 : vector<512x16xf32>
    %c0_8 = arith.constant 0 : index
    %c0_9 = arith.constant 0 : index
    %7 = vector.load %arg1[%c0_8, %c0_9] : memref<512x16xf32, #tpu.memory_space<vmem>>, vector<512x16xf32>
    %8 = arith.addf %7, %6 : vector<512x16xf32>
    %c0_10 = arith.constant 0 : index
    %c0_11 = arith.constant 0 : index
    %9 = vector.load %arg6[%c0_10, %c0_11] : memref<512x16xf32, #tpu.memory_space<vmem>>, vector<512x16xf32>
    tpu.vector_store %arg6[%c0_10, %c0_11], %8 {strides = array<i32>} : memref<512x16xf32, #tpu.memory_space<vmem>>, vector<512x16xf32>,
    return
  }
  func.func @transform_0(%arg0: i32) -> (i32, i32) {
    %c0_i32 = arith.constant 0 : i32
    %c0_i32_0 = arith.constant 0 : i32
    return %arg0, %c0_i32 : i32, i32
  }
  func.func @transform_1(%arg0: i32) -> (i32, i32) {
    %c0_i32 = arith.constant 0 : i32
    %c0_i32_0 = arith.constant 0 : i32
    return %arg0, %c0_i32 : i32, i32
  }
  func.func @transform_2(%arg0: i32) -> (i32, i32) {
    %c0_i32 = arith.constant 0 : i32
    %c0_i32_0 = arith.constant 0 : i32
    %c0_i32_1 = arith.constant 0 : i32
    return %c0_i32, %c0_i32_0 : i32, i32
  }
  func.func @transform_3(%arg0: i32) -> (i32, i32) {
    %c0_i32 = arith.constant 0 : i32
    %c0_i32_0 = arith.constant 0 : i32
    return %arg0, %c0_i32 : i32, i32
  }
  func.func @transform_4(%arg0: i32) -> (i32, i32) {
    %c0_i32 = arith.constant 0 : i32
    %c0_i32_0 = arith.constant 0 : i32
    %c0_i32_1 = arith.constant 0 : i32
    return %c0_i32, %c0_i32_0 : i32, i32
  }
  func.func @transform_5(%arg0: i32) -> (i32, i32) {
    %c0_i32 = arith.constant 0 : i32
    %c0_i32_0 = arith.constant 0 : i32
    return %arg0, %c0_i32 : i32, i32
  }
}

module attributes {stable_mosaic.version = 11 : i64} {
  func.func @_mm_bias_kernel(%arg0: i32, %arg1: memref<64x128xbf16, #tpu.memory_space<vmem>>, %arg2: memref<128x32xbf16, #tpu.memory_space<vmem>>, %arg3: memref<1x32xf32, #tpu.memory_space<vmem>>, %arg4: memref<64x32xf32, #tpu.memory_space<vmem>>) attributes {dimension_semantics = [#tpu.dimension_semantics<parallel>], iteration_bounds = array<i64: 2>, scalar_prefetch = 0 : i64, scratch_operands = 0 : i64, tpu.core_type = #tpu.core_type<tc>, window_params = [{transform_indices = @transform_0, window_bounds = array<i64: 64, 128>}, {pipeline_mode = #tpu.pipeline_mode<synchronous>, transform_indices = @transform_1, window_bounds = array<i64: 128, 32>}, {pipeline_mode = #tpu.pipeline_mode<synchronous>, transform_indices = @transform_2, window_bounds = array<i64: 1, 32>}, {transform_indices = @transform_3, window_bounds = array<i64: 64, 32>}]} {
    %c0 = arith.constant 0 : index
    %c0_0 = arith.constant 0 : index
    %0 = vector.load %arg1[%c0, %c0_0] : memref<64x128xbf16, #tpu.memory_space<vmem>>, vector<64x128xbf16>
    %c0_1 = arith.constant 0 : index
    %c0_2 = arith.constant 0 : index
    %1 = vector.load %arg2[%c0_1, %c0_2] : memref<128x32xbf16, #tpu.memory_space<vmem>>, vector<128x32xbf16>
    %cst = arith.constant dense<0.000000e+00> : vector<64x32xf32>
    %2 = tpu.matmul %0, %1, %cst {dimension_numbers = #tpu.dot_dimension_numbers<[1], [0], [0], [1], [0, 0, 1, 1], [], []>} : vector<64x128xbf16>, vector<128x32xbf16>, vector<64x32xf32> -> vector<64x32xf32>
    %c0_3 = arith.constant 0 : index
    %c0_4 = arith.constant 0 : index
    %3 = vector.load %arg3[%c0_3, %c0_4] : memref<1x32xf32, #tpu.memory_space<vmem>>, vector<1x32xf32>
    %4 = vector.broadcast %3 : vector<1x32xf32> to vector<64x32xf32>
    %5 = arith.addf %2, %4 : vector<64x32xf32>
    %c0_5 = arith.constant 0 : index
    %c0_6 = arith.constant 0 : index
    %6 = vector.load %arg4[%c0_5, %c0_6] : memref<64x32xf32, #tpu.memory_space<vmem>>, vector<64x32xf32>
    tpu.vector_store %arg4[%c0_5, %c0_6], %5 {strides = array<i32>} : memref<64x32xf32, #tpu.memory_space<vmem>>, vector<64x32xf32>,
    return
  }
  func.func @transform_0(%arg0: i32) -> (i32, i32) {
    %c0_i32 = arith.constant 0 : i32
    %c0_i32_0 = arith.constant 0 : i32
    return %arg0, %c0_i32 : i32, i32
  }
  func.func @transform_1(%arg0: i32) -> (i32, i32) {
    %c0_i32 = arith.constant 0 : i32
    %c0_i32_0 = arith.constant 0 : i32
    %c0_i32_1 = arith.constant 0 : i32
    return %c0_i32, %c0_i32_0 : i32, i32
  }
  func.func @transform_2(%arg0: i32) -> (i32, i32) {
    %c0_i32 = arith.constant 0 : i32
    %c0_i32_0 = arith.constant 0 : i32
    %c0_i32_1 = arith.constant 0 : i32
    return %c0_i32, %c0_i32_0 : i32, i32
  }
  func.func @transform_3(%arg0: i32) -> (i32, i32) {
    %c0_i32 = arith.constant 0 : i32
    %c0_i32_0 = arith.constant 0 : i32
    return %arg0, %c0_i32 : i32, i32
  }
}

module attributes {stable_mosaic.version = 11 : i64} {
  func.func @_lerp_axis_kernel(%arg0: i32, %arg1: i32, %arg2: memref<8x4x64xbf16, #tpu.memory_space<vmem>>, %arg3: memref<8x4x64xbf16, #tpu.memory_space<vmem>>, %arg4: memref<4x1xf32, #tpu.memory_space<vmem>>, %arg5: memref<8x4x64xbf16, #tpu.memory_space<vmem>>) attributes {dimension_semantics = [#tpu.dimension_semantics<parallel>, #tpu.dimension_semantics<parallel>], iteration_bounds = array<i64: 1, 1>, scalar_prefetch = 0 : i64, scratch_operands = 0 : i64, tpu.core_type = #tpu.core_type<tc>, window_params = [{transform_indices = @transform_0, window_bounds = array<i64: 8, 4, 64>}, {transform_indices = @transform_1, window_bounds = array<i64: 8, 4, 64>}, {pipeline_mode = #tpu.pipeline_mode<synchronous>, transform_indices = @transform_2, window_bounds = array<i64: 4, 1>}, {transform_indices = @transform_3, window_bounds = array<i64: 8, 4, 64>}]} {
    %c0 = arith.constant 0 : index
    %c0_0 = arith.constant 0 : index
    %0 = vector.load %arg4[%c0, %c0_0] : memref<4x1xf32, #tpu.memory_space<vmem>>, vector<4x1xf32>
    %1 = vector.shape_cast %0 : vector<4x1xf32> to vector<1x4x1xf32>
    %c0_1 = arith.constant 0 : index
    %c0_2 = arith.constant 0 : index
    %c0_3 = arith.constant 0 : index
    %2 = vector.load %arg2[%c0_1, %c0_2, %c0_3] : memref<8x4x64xbf16, #tpu.memory_space<vmem>>, vector<8x4x64xbf16>
    %3 = arith.extf %2 : vector<8x4x64xbf16> to vector<8x4x64xf32>
    %c0_4 = arith.constant 0 : index
    %c0_5 = arith.constant 0 : index
    %c0_6 = arith.constant 0 : index
    %4 = vector.load %arg3[%c0_4, %c0_5, %c0_6] : memref<8x4x64xbf16, #tpu.memory_space<vmem>>, vector<8x4x64xbf16>
    %5 = arith.extf %4 : vector<8x4x64xbf16> to vector<8x4x64xf32>
    %cst = arith.constant 1.000000e+00 : f32
    %6 = vector.broadcast %cst : f32 to vector<1x4x1xf32>
    %7 = arith.subf %6, %1 : vector<1x4x1xf32>
    %8 = vector.broadcast %7 : vector<1x4x1xf32> to vector<8x4x64xf32>
    %9 = arith.mulf %3, %8 : vector<8x4x64xf32>
    %10 = vector.broadcast %1 : vector<1x4x1xf32> to vector<8x4x64xf32>
    %11 = arith.mulf %5, %10 : vector<8x4x64xf32>
    %12 = arith.addf %9, %11 : vector<8x4x64xf32>
    %13 = arith.truncf %12 : vector<8x4x64xf32> to vector<8x4x64xbf16>
    %c0_7 = arith.constant 0 : index
    %c0_8 = arith.constant 0 : index
    %c0_9 = arith.constant 0 : index
    %14 = vector.load %arg5[%c0_7, %c0_8, %c0_9] : memref<8x4x64xbf16, #tpu.memory_space<vmem>>, vector<8x4x64xbf16>
    tpu.vector_store %arg5[%c0_7, %c0_8, %c0_9], %13 {strides = array<i32>} : memref<8x4x64xbf16, #tpu.memory_space<vmem>>, vector<8x4x64xbf16>,
    return
  }
  func.func @transform_0(%arg0: i32, %arg1: i32) -> (i32, i32, i32) {
    %c0_i32 = arith.constant 0 : i32
    %c0_i32_0 = arith.constant 0 : i32
    return %arg0, %c0_i32, %arg1 : i32, i32, i32
  }
  func.func @transform_1(%arg0: i32, %arg1: i32) -> (i32, i32, i32) {
    %c0_i32 = arith.constant 0 : i32
    %c0_i32_0 = arith.constant 0 : i32
    return %arg0, %c0_i32, %arg1 : i32, i32, i32
  }
  func.func @transform_2(%arg0: i32, %arg1: i32) -> (i32, i32) {
    %c0_i32 = arith.constant 0 : i32
    %c0_i32_0 = arith.constant 0 : i32
    %c0_i32_1 = arith.constant 0 : i32
    return %c0_i32, %c0_i32_0 : i32, i32
  }
  func.func @transform_3(%arg0: i32, %arg1: i32) -> (i32, i32, i32) {
    %c0_i32 = arith.constant 0 : i32
    %c0_i32_0 = arith.constant 0 : i32
    return %arg0, %c0_i32, %arg1 : i32, i32, i32
  }
}

module attributes {stable_mosaic.version = 11 : i64} {
  func.func @_lerp_axis_kernel(%arg0: i32, %arg1: i32, %arg2: memref<4x4x256xbf16, #tpu.memory_space<vmem>>, %arg3: memref<4x4x256xbf16, #tpu.memory_space<vmem>>, %arg4: memref<4x1xf32, #tpu.memory_space<vmem>>, %arg5: memref<4x4x256xbf16, #tpu.memory_space<vmem>>) attributes {dimension_semantics = [#tpu.dimension_semantics<parallel>, #tpu.dimension_semantics<parallel>], iteration_bounds = array<i64: 1, 1>, scalar_prefetch = 0 : i64, scratch_operands = 0 : i64, tpu.core_type = #tpu.core_type<tc>, window_params = [{transform_indices = @transform_0, window_bounds = array<i64: 4, 4, 256>}, {transform_indices = @transform_1, window_bounds = array<i64: 4, 4, 256>}, {pipeline_mode = #tpu.pipeline_mode<synchronous>, transform_indices = @transform_2, window_bounds = array<i64: 4, 1>}, {transform_indices = @transform_3, window_bounds = array<i64: 4, 4, 256>}]} {
    %c0 = arith.constant 0 : index
    %c0_0 = arith.constant 0 : index
    %0 = vector.load %arg4[%c0, %c0_0] : memref<4x1xf32, #tpu.memory_space<vmem>>, vector<4x1xf32>
    %1 = vector.shape_cast %0 : vector<4x1xf32> to vector<1x4x1xf32>
    %c0_1 = arith.constant 0 : index
    %c0_2 = arith.constant 0 : index
    %c0_3 = arith.constant 0 : index
    %2 = vector.load %arg2[%c0_1, %c0_2, %c0_3] : memref<4x4x256xbf16, #tpu.memory_space<vmem>>, vector<4x4x256xbf16>
    %3 = arith.extf %2 : vector<4x4x256xbf16> to vector<4x4x256xf32>
    %c0_4 = arith.constant 0 : index
    %c0_5 = arith.constant 0 : index
    %c0_6 = arith.constant 0 : index
    %4 = vector.load %arg3[%c0_4, %c0_5, %c0_6] : memref<4x4x256xbf16, #tpu.memory_space<vmem>>, vector<4x4x256xbf16>
    %5 = arith.extf %4 : vector<4x4x256xbf16> to vector<4x4x256xf32>
    %cst = arith.constant 1.000000e+00 : f32
    %6 = vector.broadcast %cst : f32 to vector<1x4x1xf32>
    %7 = arith.subf %6, %1 : vector<1x4x1xf32>
    %8 = vector.broadcast %7 : vector<1x4x1xf32> to vector<4x4x256xf32>
    %9 = arith.mulf %3, %8 : vector<4x4x256xf32>
    %10 = vector.broadcast %1 : vector<1x4x1xf32> to vector<4x4x256xf32>
    %11 = arith.mulf %5, %10 : vector<4x4x256xf32>
    %12 = arith.addf %9, %11 : vector<4x4x256xf32>
    %13 = arith.truncf %12 : vector<4x4x256xf32> to vector<4x4x256xbf16>
    %c0_7 = arith.constant 0 : index
    %c0_8 = arith.constant 0 : index
    %c0_9 = arith.constant 0 : index
    %14 = vector.load %arg5[%c0_7, %c0_8, %c0_9] : memref<4x4x256xbf16, #tpu.memory_space<vmem>>, vector<4x4x256xbf16>
    tpu.vector_store %arg5[%c0_7, %c0_8, %c0_9], %13 {strides = array<i32>} : memref<4x4x256xbf16, #tpu.memory_space<vmem>>, vector<4x4x256xbf16>,
    return
  }
  func.func @transform_0(%arg0: i32, %arg1: i32) -> (i32, i32, i32) {
    %c0_i32 = arith.constant 0 : i32
    %c0_i32_0 = arith.constant 0 : i32
    return %arg0, %c0_i32, %arg1 : i32, i32, i32
  }
  func.func @transform_1(%arg0: i32, %arg1: i32) -> (i32, i32, i32) {
    %c0_i32 = arith.constant 0 : i32
    %c0_i32_0 = arith.constant 0 : i32
    return %arg0, %c0_i32, %arg1 : i32, i32, i32
  }
  func.func @transform_2(%arg0: i32, %arg1: i32) -> (i32, i32) {
    %c0_i32 = arith.constant 0 : i32
    %c0_i32_0 = arith.constant 0 : i32
    %c0_i32_1 = arith.constant 0 : i32
    return %c0_i32, %c0_i32_0 : i32, i32
  }
  func.func @transform_3(%arg0: i32, %arg1: i32) -> (i32, i32, i32) {
    %c0_i32 = arith.constant 0 : i32
    %c0_i32_0 = arith.constant 0 : i32
    return %arg0, %c0_i32, %arg1 : i32, i32, i32
  }
}

module attributes {stable_mosaic.version = 11 : i64} {
  func.func @_lerp_axis_kernel(%arg0: i32, %arg1: i32, %arg2: memref<2x4x1024xbf16, #tpu.memory_space<vmem>>, %arg3: memref<2x4x1024xbf16, #tpu.memory_space<vmem>>, %arg4: memref<4x1xf32, #tpu.memory_space<vmem>>, %arg5: memref<2x4x1024xbf16, #tpu.memory_space<vmem>>) attributes {dimension_semantics = [#tpu.dimension_semantics<parallel>, #tpu.dimension_semantics<parallel>], iteration_bounds = array<i64: 1, 1>, scalar_prefetch = 0 : i64, scratch_operands = 0 : i64, tpu.core_type = #tpu.core_type<tc>, window_params = [{transform_indices = @transform_0, window_bounds = array<i64: 2, 4, 1024>}, {transform_indices = @transform_1, window_bounds = array<i64: 2, 4, 1024>}, {pipeline_mode = #tpu.pipeline_mode<synchronous>, transform_indices = @transform_2, window_bounds = array<i64: 4, 1>}, {transform_indices = @transform_3, window_bounds = array<i64: 2, 4, 1024>}]} {
    %c0 = arith.constant 0 : index
    %c0_0 = arith.constant 0 : index
    %0 = vector.load %arg4[%c0, %c0_0] : memref<4x1xf32, #tpu.memory_space<vmem>>, vector<4x1xf32>
    %1 = vector.shape_cast %0 : vector<4x1xf32> to vector<1x4x1xf32>
    %c0_1 = arith.constant 0 : index
    %c0_2 = arith.constant 0 : index
    %c0_3 = arith.constant 0 : index
    %2 = vector.load %arg2[%c0_1, %c0_2, %c0_3] : memref<2x4x1024xbf16, #tpu.memory_space<vmem>>, vector<2x4x1024xbf16>
    %3 = arith.extf %2 : vector<2x4x1024xbf16> to vector<2x4x1024xf32>
    %c0_4 = arith.constant 0 : index
    %c0_5 = arith.constant 0 : index
    %c0_6 = arith.constant 0 : index
    %4 = vector.load %arg3[%c0_4, %c0_5, %c0_6] : memref<2x4x1024xbf16, #tpu.memory_space<vmem>>, vector<2x4x1024xbf16>
    %5 = arith.extf %4 : vector<2x4x1024xbf16> to vector<2x4x1024xf32>
    %cst = arith.constant 1.000000e+00 : f32
    %6 = vector.broadcast %cst : f32 to vector<1x4x1xf32>
    %7 = arith.subf %6, %1 : vector<1x4x1xf32>
    %8 = vector.broadcast %7 : vector<1x4x1xf32> to vector<2x4x1024xf32>
    %9 = arith.mulf %3, %8 : vector<2x4x1024xf32>
    %10 = vector.broadcast %1 : vector<1x4x1xf32> to vector<2x4x1024xf32>
    %11 = arith.mulf %5, %10 : vector<2x4x1024xf32>
    %12 = arith.addf %9, %11 : vector<2x4x1024xf32>
    %13 = arith.truncf %12 : vector<2x4x1024xf32> to vector<2x4x1024xbf16>
    %c0_7 = arith.constant 0 : index
    %c0_8 = arith.constant 0 : index
    %c0_9 = arith.constant 0 : index
    %14 = vector.load %arg5[%c0_7, %c0_8, %c0_9] : memref<2x4x1024xbf16, #tpu.memory_space<vmem>>, vector<2x4x1024xbf16>
    tpu.vector_store %arg5[%c0_7, %c0_8, %c0_9], %13 {strides = array<i32>} : memref<2x4x1024xbf16, #tpu.memory_space<vmem>>, vector<2x4x1024xbf16>,
    return
  }
  func.func @transform_0(%arg0: i32, %arg1: i32) -> (i32, i32, i32) {
    %c0_i32 = arith.constant 0 : i32
    %c0_i32_0 = arith.constant 0 : i32
    return %arg0, %c0_i32, %arg1 : i32, i32, i32
  }
  func.func @transform_1(%arg0: i32, %arg1: i32) -> (i32, i32, i32) {
    %c0_i32 = arith.constant 0 : i32
    %c0_i32_0 = arith.constant 0 : i32
    return %arg0, %c0_i32, %arg1 : i32, i32, i32
  }
  func.func @transform_2(%arg0: i32, %arg1: i32) -> (i32, i32) {
    %c0_i32 = arith.constant 0 : i32
    %c0_i32_0 = arith.constant 0 : i32
    %c0_i32_1 = arith.constant 0 : i32
    return %c0_i32, %c0_i32_0 : i32, i32
  }
  func.func @transform_3(%arg0: i32, %arg1: i32) -> (i32, i32, i32) {
    %c0_i32 = arith.constant 0 : i32
    %c0_i32_0 = arith.constant 0 : i32
    return %arg0, %c0_i32, %arg1 : i32, i32, i32
  }
}

module attributes {stable_mosaic.version = 11 : i64} {
  func.func @_add_mm_kernel(%arg0: i32, %arg1: memref<64x32xf32, #tpu.memory_space<vmem>>, %arg2: memref<64x32xf32, #tpu.memory_space<vmem>>, %arg3: memref<64x64xbf16, #tpu.memory_space<vmem>>, %arg4: memref<64x32xbf16, #tpu.memory_space<vmem>>, %arg5: memref<64x32xf32, #tpu.memory_space<vmem>>) attributes {dimension_semantics = [#tpu.dimension_semantics<parallel>], iteration_bounds = array<i64: 2>, scalar_prefetch = 0 : i64, scratch_operands = 0 : i64, tpu.core_type = #tpu.core_type<tc>, window_params = [{transform_indices = @transform_0, window_bounds = array<i64: 64, 32>}, {transform_indices = @transform_1, window_bounds = array<i64: 64, 32>}, {transform_indices = @transform_2, window_bounds = array<i64: 64, 64>}, {pipeline_mode = #tpu.pipeline_mode<synchronous>, transform_indices = @transform_3, window_bounds = array<i64: 64, 32>}, {transform_indices = @transform_4, window_bounds = array<i64: 64, 32>}]} {
    %c0 = arith.constant 0 : index
    %c0_0 = arith.constant 0 : index
    %0 = vector.load %arg3[%c0, %c0_0] : memref<64x64xbf16, #tpu.memory_space<vmem>>, vector<64x64xbf16>
    %c0_1 = arith.constant 0 : index
    %c0_2 = arith.constant 0 : index
    %1 = vector.load %arg4[%c0_1, %c0_2] : memref<64x32xbf16, #tpu.memory_space<vmem>>, vector<64x32xbf16>
    %cst = arith.constant dense<0.000000e+00> : vector<64x32xf32>
    %2 = tpu.matmul %0, %1, %cst {dimension_numbers = #tpu.dot_dimension_numbers<[1], [0], [0], [1], [0, 0, 1, 1], [], []>} : vector<64x64xbf16>, vector<64x32xbf16>, vector<64x32xf32> -> vector<64x32xf32>
    %c0_3 = arith.constant 0 : index
    %c0_4 = arith.constant 0 : index
    %3 = vector.load %arg1[%c0_3, %c0_4] : memref<64x32xf32, #tpu.memory_space<vmem>>, vector<64x32xf32>
    %c0_5 = arith.constant 0 : index
    %c0_6 = arith.constant 0 : index
    %4 = vector.load %arg2[%c0_5, %c0_6] : memref<64x32xf32, #tpu.memory_space<vmem>>, vector<64x32xf32>
    %5 = arith.addf %3, %4 : vector<64x32xf32>
    %6 = arith.addf %5, %2 : vector<64x32xf32>
    %c0_7 = arith.constant 0 : index
    %c0_8 = arith.constant 0 : index
    %7 = vector.load %arg5[%c0_7, %c0_8] : memref<64x32xf32, #tpu.memory_space<vmem>>, vector<64x32xf32>
    tpu.vector_store %arg5[%c0_7, %c0_8], %6 {strides = array<i32>} : memref<64x32xf32, #tpu.memory_space<vmem>>, vector<64x32xf32>,
    return
  }
  func.func @transform_0(%arg0: i32) -> (i32, i32) {
    %c0_i32 = arith.constant 0 : i32
    %c0_i32_0 = arith.constant 0 : i32
    return %arg0, %c0_i32 : i32, i32
  }
  func.func @transform_1(%arg0: i32) -> (i32, i32) {
    %c0_i32 = arith.constant 0 : i32
    %c0_i32_0 = arith.constant 0 : i32
    return %arg0, %c0_i32 : i32, i32
  }
  func.func @transform_2(%arg0: i32) -> (i32, i32) {
    %c0_i32 = arith.constant 0 : i32
    %c0_i32_0 = arith.constant 0 : i32
    return %arg0, %c0_i32 : i32, i32
  }
  func.func @transform_3(%arg0: i32) -> (i32, i32) {
    %c0_i32 = arith.constant 0 : i32
    %c0_i32_0 = arith.constant 0 : i32
    %c0_i32_1 = arith.constant 0 : i32
    return %c0_i32, %c0_i32_0 : i32, i32
  }
  func.func @transform_4(%arg0: i32) -> (i32, i32) {
    %c0_i32 = arith.constant 0 : i32
    %c0_i32_0 = arith.constant 0 : i32
    return %arg0, %c0_i32 : i32, i32
  }
}

module attributes {stable_mosaic.version = 11 : i64} {
  func.func @_add_2mm_bias_kernel(%arg0: i32, %arg1: memref<8x64xf32, #tpu.memory_space<vmem>>, %arg2: memref<8x256xbf16, #tpu.memory_space<vmem>>, %arg3: memref<256x64xbf16, #tpu.memory_space<vmem>>, %arg4: memref<8x256xbf16, #tpu.memory_space<vmem>>, %arg5: memref<256x64xbf16, #tpu.memory_space<vmem>>, %arg6: memref<1x64xf32, #tpu.memory_space<vmem>>, %arg7: memref<8x64xf32, #tpu.memory_space<vmem>>) attributes {dimension_semantics = [#tpu.dimension_semantics<parallel>], iteration_bounds = array<i64: 2>, scalar_prefetch = 0 : i64, scratch_operands = 0 : i64, tpu.core_type = #tpu.core_type<tc>, window_params = [{transform_indices = @transform_0, window_bounds = array<i64: 8, 64>}, {transform_indices = @transform_1, window_bounds = array<i64: 8, 256>}, {pipeline_mode = #tpu.pipeline_mode<synchronous>, transform_indices = @transform_2, window_bounds = array<i64: 256, 64>}, {transform_indices = @transform_3, window_bounds = array<i64: 8, 256>}, {pipeline_mode = #tpu.pipeline_mode<synchronous>, transform_indices = @transform_4, window_bounds = array<i64: 256, 64>}, {pipeline_mode = #tpu.pipeline_mode<synchronous>, transform_indices = @transform_5, window_bounds = array<i64: 1, 64>}, {transform_indices = @transform_6, window_bounds = array<i64: 8, 64>}]} {
    %c0 = arith.constant 0 : index
    %c0_0 = arith.constant 0 : index
    %0 = vector.load %arg2[%c0, %c0_0] : memref<8x256xbf16, #tpu.memory_space<vmem>>, vector<8x256xbf16>
    %c0_1 = arith.constant 0 : index
    %c0_2 = arith.constant 0 : index
    %1 = vector.load %arg3[%c0_1, %c0_2] : memref<256x64xbf16, #tpu.memory_space<vmem>>, vector<256x64xbf16>
    %cst = arith.constant dense<0.000000e+00> : vector<8x64xf32>
    %2 = tpu.matmul %0, %1, %cst {dimension_numbers = #tpu.dot_dimension_numbers<[1], [0], [0], [1], [0, 0, 1, 1], [], []>} : vector<8x256xbf16>, vector<256x64xbf16>, vector<8x64xf32> -> vector<8x64xf32>
    %c0_3 = arith.constant 0 : index
    %c0_4 = arith.constant 0 : index
    %3 = vector.load %arg4[%c0_3, %c0_4] : memref<8x256xbf16, #tpu.memory_space<vmem>>, vector<8x256xbf16>
    %c0_5 = arith.constant 0 : index
    %c0_6 = arith.constant 0 : index
    %4 = vector.load %arg5[%c0_5, %c0_6] : memref<256x64xbf16, #tpu.memory_space<vmem>>, vector<256x64xbf16>
    %cst_7 = arith.constant dense<0.000000e+00> : vector<8x64xf32>
    %5 = tpu.matmul %3, %4, %cst_7 {dimension_numbers = #tpu.dot_dimension_numbers<[1], [0], [0], [1], [0, 0, 1, 1], [], []>} : vector<8x256xbf16>, vector<256x64xbf16>, vector<8x64xf32> -> vector<8x64xf32>
    %6 = arith.addf %2, %5 : vector<8x64xf32>
    %c0_8 = arith.constant 0 : index
    %c0_9 = arith.constant 0 : index
    %7 = vector.load %arg1[%c0_8, %c0_9] : memref<8x64xf32, #tpu.memory_space<vmem>>, vector<8x64xf32>
    %8 = arith.addf %7, %6 : vector<8x64xf32>
    %c0_10 = arith.constant 0 : index
    %c0_11 = arith.constant 0 : index
    %9 = vector.load %arg6[%c0_10, %c0_11] : memref<1x64xf32, #tpu.memory_space<vmem>>, vector<1x64xf32>
    %10 = vector.broadcast %9 : vector<1x64xf32> to vector<8x64xf32>
    %11 = arith.addf %8, %10 : vector<8x64xf32>
    %c0_12 = arith.constant 0 : index
    %c0_13 = arith.constant 0 : index
    %12 = vector.load %arg7[%c0_12, %c0_13] : memref<8x64xf32, #tpu.memory_space<vmem>>, vector<8x64xf32>
    tpu.vector_store %arg7[%c0_12, %c0_13], %11 {strides = array<i32>} : memref<8x64xf32, #tpu.memory_space<vmem>>, vector<8x64xf32>,
    return
  }
  func.func @transform_0(%arg0: i32) -> (i32, i32) {
    %c0_i32 = arith.constant 0 : i32
    %c0_i32_0 = arith.constant 0 : i32
    return %arg0, %c0_i32 : i32, i32
  }
  func.func @transform_1(%arg0: i32) -> (i32, i32) {
    %c0_i32 = arith.constant 0 : i32
    %c0_i32_0 = arith.constant 0 : i32
    return %arg0, %c0_i32 : i32, i32
  }
  func.func @transform_2(%arg0: i32) -> (i32, i32) {
    %c0_i32 = arith.constant 0 : i32
    %c0_i32_0 = arith.constant 0 : i32
    %c0_i32_1 = arith.constant 0 : i32
    return %c0_i32, %c0_i32_0 : i32, i32
  }
  func.func @transform_3(%arg0: i32) -> (i32, i32) {
    %c0_i32 = arith.constant 0 : i32
    %c0_i32_0 = arith.constant 0 : i32
    return %arg0, %c0_i32 : i32, i32
  }
  func.func @transform_4(%arg0: i32) -> (i32, i32) {
    %c0_i32 = arith.constant 0 : i32
    %c0_i32_0 = arith.constant 0 : i32
    %c0_i32_1 = arith.constant 0 : i32
    return %c0_i32, %c0_i32_0 : i32, i32
  }
  func.func @transform_5(%arg0: i32) -> (i32, i32) {
    %c0_i32 = arith.constant 0 : i32
    %c0_i32_0 = arith.constant 0 : i32
    %c0_i32_1 = arith.constant 0 : i32
    return %c0_i32, %c0_i32_0 : i32, i32
  }
  func.func @transform_6(%arg0: i32) -> (i32, i32) {
    %c0_i32 = arith.constant 0 : i32
    %c0_i32_0 = arith.constant 0 : i32
    return %arg0, %c0_i32 : i32, i32
  }
}

</mosaic_0001>

<bundles_post_ra>
// kernel: skip_connection_forward.14
= control target key start
LH: loop header
LB: loop body
LE: loop exit
PB: predicated region body
PF: predicated region fallthrough
CT: control target
= control target key end

     0   :  { %v144_v0 = vmov 0   ;;  %s268_s2 = inlined_call_operand.vmem [shape: f32[8,1], index: 2, kind: input, shape index: {}]   ;;  %s269_s0 = inlined_call_operand.vmem [shape: bf16[8,8,256], index: 0, kind: input, shape index: {}]   ;;  %s270_s1 = inlined_call_operand.vmem [shape: bf16[8,8,256], index: 1, kind: input, shape index: {}]   ;;  %s271_s3 = inlined_call_operand.vmem [shape: bf16[8,8,256], index: 3, kind: output, shape index: {}]  }
   0x1   :  { %143 = vset.pattern.permute.xlu0 %v144_v0  ;;  %v14_v1 = vld [vmem:[%s268_s2] sm:$0xff]  ;;  %v16_v4 = vld [vmem:[%s269_s0 + $0x8] sm:$0xff]  ;;  %v17_v5 = vld [vmem:[%s269_s0 + $0x10] sm:$0xff] }
   0x2   :  { %v63_v2 = vsub.f32 1.0, %v14_v1  ;;  %v15_v3 = vld [vmem:[%s269_s0] sm:$0xff]  ;;  %v18_v6 = vld [vmem:[%s269_s0 + $0x18] sm:$0xff]  ;;  %v20_v8 = vld [vmem:[%s269_s0 + $0x28] sm:$0xff]  ;;  %v25_v13 = vunpack.c.l.bf16 %v16_v4  ;;  %v26_v14 = vunpack.c.h.bf16 %v16_v4  ;;  %v27_v15 = vunpack.c.l.bf16 %v17_v5 }
   0x3   :  { %v19_v7 = vld [vmem:[%s269_s0 + $0x20] sm:$0xff]  ;;  %v189_v9 = vld [vmem:[%s269_s0 + $0x30] sm:$0xff]  ;;  %v23_v10 = vunpack.c.l.bf16 %v15_v3  ;;  %v194_v11 = vld [vmem:[%s269_s0 + $0x38] sm:$0xff]  ;;  %v24_v12 = vunpack.c.h.bf16 %v15_v3  ;;  %v28_v17 = vunpack.c.h.bf16 %v17_v5  ;;  %v29_v18 = vunpack.c.l.bf16 %v18_v6 }
   0x4   :  { %66 = vperm.xlu0 %143, %v63_v2   ;;  %v39_v16 = vld [vmem:[%s270_s1] sm:$0xff]  ;;  %v30_v19 = vunpack.c.h.bf16 %v18_v6  ;;  %v31_v20 = vunpack.c.l.bf16 %v19_v7  ;;  %v40_v21 = vld [vmem:[%s270_s1 + $0x8] sm:$0xff]  ;;  %v41_v22 = vld [vmem:[%s270_s1 + $0x10] sm:$0xff]  ;;  %v32_v24 = vunpack.c.h.bf16 %v19_v7  ;;  %v33_v25 = vunpack.c.l.bf16 %v20_v8 }
   0x5   :  { %v34_v26 = vunpack.c.h.bf16 %v20_v8  ;;  %v35_v27 = vunpack.c.l.bf16 %v189_v9  ;;  %v42_v28 = vld [vmem:[%s270_s1 + $0x18] sm:$0xff]  ;;  %v43_v29 = vld [vmem:[%s270_s1 + $0x20] sm:$0xff]  ;;  %v36_v30 = vunpack.c.h.bf16 %v189_v9  ;;  %v37_v31 = vunpack.c.l.bf16 %v194_v11  ;;  %v44_v33 = vld [vmem:[%s270_s1 + $0x28] sm:$0xff] }
   0x6   :  { %v38_v32 = vunpack.c.h.bf16 %v194_v11  ;;  %v45_v34 = vld [vmem:[%s270_s1 + $0x30] sm:$0xff]  ;;  %v47_v35 = vunpack.c.l.bf16 %v39_v16  ;;  %v46_v36 = vld [vmem:[%s270_s1 + $0x38] sm:$0xff]  ;;  %v48_v37 = vunpack.c.h.bf16 %v39_v16  ;;  %v49_v38 = vunpack.c.l.bf16 %v40_v21 }
   0x7   :  { %v50_v39 = vunpack.c.h.bf16 %v40_v21  ;;  %v51_v40 = vunpack.c.l.bf16 %v41_v22  ;;  %v52_v41 = vunpack.c.h.bf16 %v41_v22  ;;  %v53_v42 = vunpack.c.l.bf16 %v42_v28 }
   0x8   :  { %v54_v43 = vunpack.c.h.bf16 %v42_v28  ;;  %v55_v44 = vunpack.c.l.bf16 %v43_v29  ;;  %v56_v45 = vunpack.c.h.bf16 %v43_v29  ;;  %v57_v46 = vunpack.c.l.bf16 %v44_v33 }
   0x9   :  { %v58_v47 = vunpack.c.h.bf16 %v44_v33  ;;  %v59_v48 = vunpack.c.l.bf16 %v45_v34  ;;  %v60_v49 = vunpack.c.h.bf16 %v45_v34  ;;  %v61_v50 = vunpack.c.l.bf16 %v46_v36 }
   0xa   :  { %v62_v51 = vunpack.c.h.bf16 %v46_v36 }
   0xc   :  { %87 = vperm.xlu0 %143, %v14_v1  }
  0x76   :  { %v205_v23 = vpop.permute.xlu0 %66 }
  0x77   :  { %v69_v52 = vmul.f32 %v205_v23, %v23_v10  ;;  %v70_v53 = vmul.f32 %v205_v23, %v24_v12  ;;  %v71_v54 = vmul.f32 %v205_v23, %v25_v13  ;;  %v72_v55 = vmul.f32 %v205_v23, %v26_v14 }
  0x78   :  { %v73_v56 = vmul.f32 %v205_v23, %v27_v15  ;;  %v74_v57 = vmul.f32 %v205_v23, %v28_v17  ;;  %v75_v58 = vmul.f32 %v205_v23, %v29_v18  ;;  %v76_v59 = vmul.f32 %v205_v23, %v30_v19 }
  0x79   :  { %v77_v60 = vmul.f32 %v205_v23, %v31_v20  ;;  %v78_v62 = vmul.f32 %v205_v23, %v32_v24  ;;  %v79_v63 = vmul.f32 %v205_v23, %v33_v25  ;;  %v80_v0 = vmul.f32 %v205_v23, %v34_v26 }
  0x7a   :  { %v81_v1 = vmul.f32 %v205_v23, %v35_v27  ;;  %v82_v28 = vmul.f32 %v205_v23, %v36_v30  ;;  %v83_v29 = vmul.f32 %v205_v23, %v37_v31 }
  0x7e   :  { %v88_v61 = vpop.permute.xlu0 %87 }
  0x7f   :  { %v90_v2 = vmul.f32 %v88_v61, %v47_v35  ;;  %v91_v3 = vmul.f32 %v88_v61, %v48_v37  ;;  %v92_v4 = vmul.f32 %v88_v61, %v49_v38  ;;  %v93_v5 = vmul.f32 %v88_v61, %v50_v39 }
  0x80   :  { %v94_v6 = vmul.f32 %v88_v61, %v51_v40  ;;  %v95_v7 = vmul.f32 %v88_v61, %v52_v41  ;;  %v96_v8 = vmul.f32 %v88_v61, %v53_v42  ;;  %v97_v9 = vmul.f32 %v88_v61, %v54_v43 }
  0x81   :  { %v98_v10 = vmul.f32 %v88_v61, %v55_v44  ;;  %v99_v12 = vmul.f32 %v88_v61, %v56_v45  ;;  %v100_v13 = vmul.f32 %v88_v61, %v57_v46  ;;  %v101_v14 = vmul.f32 %v88_v61, %v58_v47 }
  0x82   :  { %v102_v15 = vmul.f32 %v88_v61, %v59_v48  ;;  %v103_v16 = vmul.f32 %v88_v61, %v60_v49  ;;  %v104_v17 = vmul.f32 %v88_v61, %v61_v50  ;;  %v105_v18 = vmul.f32 %v88_v61, %v62_v51 }
  0x83   :  { %v106_v19 = vadd.f32 %v90_v2, %v69_v52  ;;  %v107_v20 = vadd.f32 %v91_v3, %v70_v53  ;;  %v108_v21 = vadd.f32 %v92_v4, %v71_v54  ;;  %v109_v22 = vadd.f32 %v93_v5, %v72_v55 }
  0x84   :  { %v110_v24 = vadd.f32 %v94_v6, %v73_v56  ;;  %v111_v25 = vadd.f32 %v95_v7, %v74_v57  ;;  %v112_v26 = vadd.f32 %v96_v8, %v75_v58  ;;  %v113_v27 = vadd.f32 %v97_v9, %v76_v59 }
  0x85   :  { %v114_v33 = vadd.f32 %v98_v10, %v77_v60  ;;  %v115_v34 = vadd.f32 %v99_v12, %v78_v62  ;;  %v84_v35 = vmul.f32 %v205_v23, %v38_v32  ;;  %v116_v36 = vadd.f32 %v100_v13, %v79_v63 }
  0x86   :  { %v117_v37 = vadd.f32 %v101_v14, %v80_v0  ;;  %v118_v38 = vadd.f32 %v102_v15, %v81_v1  ;;  %v119_v39 = vadd.f32 %v103_v16, %v82_v28  ;;  %v122_v40 = vpack.c.bf16 %v107_v20, %v106_v19 }
  0x87   :  { %v123_v41 = vpack.c.bf16 %v109_v22, %v108_v21  ;;  %v124_v42 = vpack.c.bf16 %v111_v25, %v110_v24  ;;  %v120_v43 = vadd.f32 %v104_v17, %v83_v29  ;;  %v121_v44 = vadd.f32 %v105_v18, %v84_v35 }
  0x88   :  { %v125_v45 = vpack.c.bf16 %v113_v27, %v112_v26  ;;  %v126_v46 = vpack.c.bf16 %v115_v34, %v114_v33  ;;  %130 = vst [vmem:[%s271_s3] sm:$0xff] %v122_v40  ;;  %v127_v30 = vpack.c.bf16 %v117_v37, %v116_v36  ;;  %v128_v11 = vpack.c.bf16 %v119_v39, %v118_v38 }
  0x89   :  { %131 = vst [vmem:[%s271_s3 + $0x8] sm:$0xff] %v123_v41  ;;  %v129_v23 = vpack.c.bf16 %v121_v44, %v120_v43 }
  0x8a   :  { %132 = vst [vmem:[%s271_s3 + $0x10] sm:$0xff] %v124_v42 }
  0x8b   :  { %133 = vst [vmem:[%s271_s3 + $0x18] sm:$0xff] %v125_v45 }
  0x8c   :  { %134 = vst [vmem:[%s271_s3 + $0x20] sm:$0xff] %v126_v46 }
  0x8d   :  { %135 = vst [vmem:[%s271_s3 + $0x28] sm:$0xff] %v127_v30 }
  0x8e   :  { %136 = vst [vmem:[%s271_s3 + $0x30] sm:$0xff] %v128_v11 }
  0x8f   :  { %137 = vst [vmem:[%s271_s3 + $0x38] sm:$0xff] %v129_v23 }

// kernel: skip_connection_forward.13
= control target key start
LH: loop header
LB: loop body
LE: loop exit
PB: predicated region body
PF: predicated region fallthrough
CT: control target
= control target key end

     0   :  { %v479_v0 = vmov 0   ;;  %vm282_vm0 = vcmask 257024   ;;  %s1019_s2 = inlined_call_operand.vmem [shape: f32[8,1], index: 2, kind: input, shape index: {}]   ;;  %s1020_s0 = inlined_call_operand.vmem [shape: bf16[32,8,32], index: 0, kind: input, shape index: {}]   ;;  %s1021_s1 = inlined_call_operand.vmem [shape: bf16[32,8,32], index: 1, kind: input, shape index: {}]   ;;  %s1022_s3 = inlined_call_operand.vmem [shape: bf16[32,8,32], index: 3, kind: output, shape index: {}]  }
   0x1   :  { %478 = vset.pattern.permute.xlu0 %v479_v0  ;;  %v14_v1 = vld [vmem:[%s1019_s2] sm:$0xff]  ;;  %v511_v4 = vld [vmem:[%s1020_s0 + $0x8] sm:$0xff]   ;;  %v516_v5 = vld [vmem:[%s1020_s0 + $0x10] sm:$0xff]  }
   0x2   :  { %v143_v2 = vsub.f32 1.0, %v14_v1  ;;  %v506_v3 = vld [vmem:[%s1020_s0] sm:$0xff]   ;;  %v521_v6 = vld [vmem:[%s1020_s0 + $0x18] sm:$0xff]   ;;  %v533_v10 = vld [vmem:[%s1020_s0 + $0x28] sm:$0xff]   ;;  %v325_v12 = vunpack.c.l.bf16 %v511_v4  ;;  %v326_v13 = vunpack.c.h.bf16 %v511_v4  ;;  %v329_v14 = vunpack.c.l.bf16 %v516_v5 }
   0x3   :  { %v526_v7 = vld [vmem:[%s1020_s0 + $0x20] sm:$0xff]   ;;  %v321_v8 = vunpack.c.l.bf16 %v506_v3  ;;  %v322_v9 = vunpack.c.h.bf16 %v506_v3  ;;  %v538_v11 = vld [vmem:[%s1020_s0 + $0x30] sm:$0xff]   ;;  %v330_v15 = vunpack.c.h.bf16 %v516_v5  ;;  %v547_v16 = vld [vmem:[%s1020_s0 + $0x38] sm:$0xff]   ;;  %v333_v19 = vunpack.c.l.bf16 %v521_v6 }
   0x4   :  { %146 = vperm.xlu0 %478, %v143_v2   ;;  %v552_v17 = vld [vmem:[%s1020_s0 + $0x40] sm:$0xff]   ;;  %v334_v20 = vunpack.c.h.bf16 %v521_v6  ;;  %v337_v21 = vunpack.c.l.bf16 %v526_v7  ;;  %v338_v22 = vunpack.c.h.bf16 %v526_v7  ;;  %v563_v23 = vld [vmem:[%s1020_s0 + $0x48] sm:$0xff]   ;;  %v568_v24 = vld [vmem:[%s1020_s0 + $0x50] sm:$0xff]   ;;  %v341_v25 = vunpack.c.l.bf16 %v533_v10 }
   0x5   :  { %v342_v26 = vunpack.c.h.bf16 %v533_v10  ;;  %v345_v27 = vunpack.c.l.bf16 %v538_v11  ;;  %v577_v29 = vld [vmem:[%s1020_s0 + $0x58] sm:$0xff]   ;;  %v582_v30 = vld [vmem:[%s1020_s0 + $0x60] sm:$0xff]   ;;  %v591_v35 = vld [vmem:[%s1020_s0 + $0x68] sm:$0xff]  }
   0x6   :  { %v596_v36 = vld [vmem:[%s1020_s0 + $0x70] sm:$0xff]   ;;  %v605_v41 = vld [vmem:[%s1020_s0 + $0x78] sm:$0xff]   ;;  %v384_v42 = vld [vmem:[%s1021_s1] sm:$0xff]  }
   0x7   :  { %v462_v47 = vld [vmem:[%s1021_s1 + $0x8] sm:$0xff]   ;;  %v620_v48 = vld [vmem:[%s1021_s1 + $0x10] sm:$0xff]   ;;  %v629_v53 = vld [vmem:[%s1021_s1 + $0x18] sm:$0xff]   ;;  %v385_v57 = vunpack.c.l.bf16 %v384_v42  ;;  %v386_v58 = vunpack.c.h.bf16 %v384_v42 }
   0x8   :  { %v634_v54 = vld [vmem:[%s1021_s1 + $0x20] sm:$0xff]   ;;  %v641_v59 = vld [vmem:[%s1021_s1 + $0x28] sm:$0xff]   ;;  %v646_v60 = vld [vmem:[%s1021_s1 + $0x30] sm:$0xff]   ;;  %v389_v61 = vunpack.c.l.bf16 %v462_v47  ;;  %v390_v62 = vunpack.c.h.bf16 %v462_v47  ;;  %v393_v63 = vunpack.c.l.bf16 %v620_v48  ;;  %v394_v0 = vunpack.c.h.bf16 %v620_v48 }
   0x9   :  { %v658_v2 = vld [vmem:[%s1021_s1 + $0x40] sm:$0xff]   ;;  %v397_v42 = vunpack.c.l.bf16 %v629_v53  ;;  %v398_v56 = vunpack.c.h.bf16 %v629_v53  ;;  %v401_v47 = vunpack.c.l.bf16 %v634_v54  ;;  %v402_v55 = vunpack.c.h.bf16 %v634_v54  ;;  %v667_v48 = vld [vmem:[%s1021_s1 + $0x48] sm:$0xff]   ;;  %v672_v52 = vld [vmem:[%s1021_s1 + $0x50] sm:$0xff]  }
   0xa   :  { %v405_v51 = vunpack.c.l.bf16 %v641_v59  ;;  %v406_v50 = vunpack.c.h.bf16 %v641_v59  ;;  %v409_v53 = vunpack.c.l.bf16 %v646_v60  ;;  %v410_v49 = vunpack.c.h.bf16 %v646_v60  ;;  %v681_v54 = vld [vmem:[%s1021_s1 + $0x58] sm:$0xff]   ;;  %v686_v46 = vld [vmem:[%s1021_s1 + $0x60] sm:$0xff]   ;;  %v697_v39 = vld [vmem:[%s1021_s1 + $0x68] sm:$0xff]  }
   0xb   :  { %v706_v32 = vld [vmem:[%s1021_s1 + $0x70] sm:$0xff]   ;;  %v716_v33 = vld [vmem:[%s1021_s1 + $0x78] sm:$0xff]  }
   0xc   :  { %183 = vperm.xlu0 %478, %v14_v1   ;;  %v653_v1 = vld [vmem:[%s1021_s1 + $0x38] sm:$0xff]   ;;  %v445_v43 = vunpack.c.l.bf16 %v716_v33 }
  0x76   :  { %v554_v18 = vpop.permute.xlu0 %146 }
  0x77   :  { %v149_v37 = vmul.f32 %v321_v8, %v554_v18  ;;  %v153_v8 = vmul.f32 %v329_v14, %v554_v18  ;;  %v155_v14 = vmul.f32 %v333_v19, %v554_v18  ;;  %v158_v6 = vmul.f32 %v338_v22, %v554_v18 }
  0x78   :  { %v160_v7 = vmul.f32 %v342_v26, %v554_v18 }
  0x7e   :  { %v688_v45 = vpop.permute.xlu0 %183 }
  0x7f   :  { %v186_v34 = vmul.f32 %v385_v57, %v688_v45  ;;  %v187_v59 = vmul.f32 %v386_v58, %v688_v45  ;;  %v188_v28 = vmul.f32 %v389_v61, %v688_v45  ;;  %v189_v38 = vmul.f32 %v390_v62, %v688_v45 }
  0x80   :  { %v150_v57 = vmul.f32 %v322_v9, %v554_v18  ;;  %v151_v58 = vmul.f32 %v325_v12, %v554_v18  ;;  %v190_v61 = vmul.f32 %v393_v63, %v688_v45  ;;  %v152_v62 = vmul.f32 %v326_v13, %v554_v18 }
  0x81   :  { %v191_v31 = vmul.f32 %v394_v0, %v688_v45  ;;  %v192_v3 = vmul.f32 %v397_v42, %v688_v45  ;;  %v218_v9 = vadd.f32 %v186_v34, %v149_v37  ;;  %v446_v12 = vunpack.c.h.bf16 %v716_v33 }
  0x82   :  { %v219_v40 = vadd.f32 %v187_v59, %v150_v57  ;;  %v220_v44 = vadd.f32 %v188_v28, %v151_v58  ;;  %v154_v63 = vmul.f32 %v330_v15, %v554_v18  ;;  %v193_v4 = vmul.f32 %v398_v56, %v688_v45 }
  0x83   :  { %v221_v13 = vadd.f32 %v189_v38, %v152_v62  ;;  %v156_v0 = vmul.f32 %v334_v20, %v554_v18  ;;  %v194_v34 = vmul.f32 %v401_v47, %v688_v45  ;;  %v222_v28 = vadd.f32 %v190_v61, %v153_v8 }
  0x84   :  { %v157_v37 = vmul.f32 %v337_v21, %v554_v18  ;;  %v195_v5 = vmul.f32 %v402_v55, %v688_v45  ;;  %v196_v15 = vmul.f32 %v405_v51, %v688_v45  ;;  %v223_v38 = vadd.f32 %v191_v31, %v154_v63 }
  0x85   :  { %v224_v56 = vadd.f32 %v192_v3, %v155_v14  ;;  %v250_v42 = vpack.c.bf16 %v218_v9, %v218_v9  ;;  %v251_v59 = vpack.c.bf16 %v219_v40, %v219_v40  ;;  %v252_v19 = vpack.c.bf16 %v220_v44, %v220_v44 }
  0x86   :  { %v197_v20 = vmul.f32 %v406_v50, %v688_v45  ;;  %v225_v47 = vadd.f32 %v193_v4, %v156_v0  ;;  %v253_v57 = vpack.c.bf16 %v221_v13, %v221_v13  ;;  %v159_v21 = vmul.f32 %v341_v25, %v554_v18 }
  0x87   :  { %v198_v31 = vmul.f32 %v409_v53, %v688_v45  ;;  %v226_v51 = vadd.f32 %v194_v34, %v157_v37  ;;  %v254_v55 = vpack.c.bf16 %v222_v28, %v222_v28  ;;  %283 = vst.msk [vmem:[%s1022_s3] sm:$0xf] %vm282_vm0, %v250_v42  ;;  %v199_v22 = vmul.f32 %v410_v49, %v688_v45 }
  0x88   :  { %v227_v25 = vadd.f32 %v195_v5, %v158_v6  ;;  %v255_v40 = vpack.c.bf16 %v223_v38, %v223_v38  ;;  %284 = vst.msk [vmem:[%s1022_s3 + $0x4] sm:$0xf] %vm282_vm0, %v251_v59  ;;  %v161_v44 = vmul.f32 %v345_v27, %v554_v18  ;;  %v1023_v50 = vunpack.c.l.bf16 %v653_v1 }
  0x89   :  { %v228_v26 = vadd.f32 %v196_v15, %v159_v21  ;;  %v256_v53 = vpack.c.bf16 %v224_v56, %v224_v56  ;;  %285 = vst.msk [vmem:[%s1022_s3 + $0x8] sm:$0xf] %vm282_vm0, %v252_v19  ;;  %v1024_v49 = vunpack.c.h.bf16 %v538_v11  ;;  %v1025_v58 = vunpack.c.h.bf16 %v653_v1 }
  0x8a   :  { %v200_v10 = vmul.f32 %v1023_v50, %v688_v45  ;;  %v229_v27 = vadd.f32 %v197_v20, %v160_v7  ;;  %v257_v62 = vpack.c.bf16 %v225_v47, %v225_v47  ;;  %286 = vst.msk [vmem:[%s1022_s3 + $0xc] sm:$0xf] %vm282_vm0, %v253_v57  ;;  %v1026_v8 = vunpack.c.l.bf16 %v547_v16 }
  0x8b   :  { %v162_v60 = vmul.f32 %v1024_v49, %v554_v18  ;;  %v201_v61 = vmul.f32 %v1025_v58, %v688_v45  ;;  %v1027_v9 = vunpack.c.l.bf16 %v658_v2  ;;  %v230_v63 = vadd.f32 %v198_v31, %v161_v44  ;;  %287 = vst.msk [vmem:[%s1022_s3 + $0x10] sm:$0xf] %vm282_vm0, %v254_v55 }
  0x8c   :  { %v163_v3 = vmul.f32 %v1026_v8, %v554_v18  ;;  %v258_v4 = vpack.c.bf16 %v226_v51, %v226_v51  ;;  %v1028_v1 = vunpack.c.h.bf16 %v547_v16  ;;  %v1029_v14 = vunpack.c.h.bf16 %v658_v2  ;;  %288 = vst.msk [vmem:[%s1022_s3 + $0x14] sm:$0xf] %vm282_vm0, %v255_v40 }
  0x8d   :  { %v202_v11 = vmul.f32 %v1027_v9, %v688_v45  ;;  %v231_v34 = vadd.f32 %v199_v22, %v162_v60  ;;  %v259_v28 = vpack.c.bf16 %v227_v25, %v227_v25  ;;  %v1030_v37 = vunpack.c.l.bf16 %v552_v17  ;;  %289 = vst.msk [vmem:[%s1022_s3 + $0x18] sm:$0xf] %vm282_vm0, %v256_v53 }
  0x8e   :  { %v164_v13 = vmul.f32 %v1028_v1, %v554_v18  ;;  %v203_v0 = vmul.f32 %v1029_v14, %v688_v45  ;;  %v1031_v15 = vunpack.c.l.bf16 %v667_v48  ;;  %v232_v38 = vadd.f32 %v200_v10, %v163_v3  ;;  %290 = vst.msk [vmem:[%s1022_s3 + $0x1c] sm:$0xf] %vm282_vm0, %v257_v62 }
  0x8f   :  { %v165_v5 = vmul.f32 %v1030_v37, %v554_v18  ;;  %v260_v56 = vpack.c.bf16 %v228_v26, %v228_v26  ;;  %v1032_v2 = vunpack.c.h.bf16 %v552_v17  ;;  %v1033_v59 = vunpack.c.h.bf16 %v667_v48  ;;  %291 = vst.msk [vmem:[%s1022_s3 + $0x20] sm:$0xf] %vm282_vm0, %v258_v4 }
  0x90   :  { %v204_v16 = vmul.f32 %v1031_v15, %v688_v45  ;;  %v233_v6 = vadd.f32 %v201_v61, %v164_v13  ;;  %v261_v20 = vpack.c.bf16 %v229_v27, %v229_v27  ;;  %v1034_v47 = vunpack.c.l.bf16 %v563_v23  ;;  %292 = vst.msk [vmem:[%s1022_s3 + $0x24] sm:$0xf] %vm282_vm0, %v259_v28 }
  0x91   :  { %v166_v42 = vmul.f32 %v1032_v2, %v554_v18  ;;  %v205_v19 = vmul.f32 %v1033_v59, %v688_v45  ;;  %v1035_v21 = vunpack.c.l.bf16 %v672_v52  ;;  %v234_v31 = vadd.f32 %v202_v11, %v165_v5  ;;  %293 = vst.msk [vmem:[%s1022_s3 + $0x28] sm:$0xf] %vm282_vm0, %v260_v56 }
  0x92   :  { %v167_v57 = vmul.f32 %v1034_v47, %v554_v18  ;;  %v262_v51 = vpack.c.bf16 %v230_v63, %v230_v63  ;;  %v1036_v48 = vunpack.c.h.bf16 %v563_v23  ;;  %v1037_v7 = vunpack.c.h.bf16 %v672_v52  ;;  %294 = vst.msk [vmem:[%s1022_s3 + $0x2c] sm:$0xf] %vm282_vm0, %v261_v20 }
  0x93   :  { %v206_v17 = vmul.f32 %v1035_v21, %v688_v45  ;;  %v235_v25 = vadd.f32 %v203_v0, %v166_v42  ;;  %v263_v40 = vpack.c.bf16 %v231_v34, %v231_v34  ;;  %v1038_v44 = vunpack.c.l.bf16 %v568_v24 }
  0x94   :  { %v168_v55 = vmul.f32 %v1036_v48, %v554_v18  ;;  %v207_v22 = vmul.f32 %v1037_v7, %v688_v45  ;;  %v1039_v10 = vunpack.c.l.bf16 %v681_v54  ;;  %v236_v26 = vadd.f32 %v204_v16, %v167_v57  ;;  %295 = vst.msk [vmem:[%s1022_s3 + $0x30] sm:$0xf] %vm282_vm0, %v262_v51 }
  0x95   :  { %v169_v50 = vmul.f32 %v1038_v44, %v554_v18  ;;  %v264_v53 = vpack.c.bf16 %v232_v38, %v232_v38  ;;  %v1040_v52 = vunpack.c.h.bf16 %v568_v24  ;;  %v1041_v60 = vunpack.c.h.bf16 %v681_v54  ;;  %296 = vst.msk [vmem:[%s1022_s3 + $0x34] sm:$0xf] %vm282_vm0, %v263_v40 }
  0x96   :  { %v208_v23 = vmul.f32 %v1039_v10, %v688_v45  ;;  %v237_v61 = vadd.f32 %v205_v19, %v168_v55  ;;  %v265_v27 = vpack.c.bf16 %v233_v6, %v233_v6  ;;  %v1042_v62 = vunpack.c.l.bf16 %v577_v29 }
  0x97   :  { %v170_v49 = vmul.f32 %v1040_v52, %v554_v18  ;;  %v209_v58 = vmul.f32 %v1041_v60, %v688_v45  ;;  %v1043_v3 = vunpack.c.l.bf16 %v686_v46  ;;  %v238_v9 = vadd.f32 %v206_v17, %v169_v50  ;;  %297 = vst.msk [vmem:[%s1022_s3 + $0x38] sm:$0xf] %vm282_vm0, %v264_v53 }
  0x98   :  { %v171_v8 = vmul.f32 %v1042_v62, %v554_v18  ;;  %v266_v11 = vpack.c.bf16 %v234_v31, %v234_v31  ;;  %v1044_v54 = vunpack.c.h.bf16 %v577_v29  ;;  %v1045_v4 = vunpack.c.h.bf16 %v686_v46  ;;  %298 = vst.msk [vmem:[%s1022_s3 + $0x3c] sm:$0xf] %vm282_vm0, %v265_v27 }
  0x99   :  { %v210_v24 = vmul.f32 %v1043_v3, %v688_v45  ;;  %v239_v13 = vadd.f32 %v207_v22, %v170_v49  ;;  %v267_v14 = vpack.c.bf16 %v235_v25, %v235_v25  ;;  %v1046_v0 = vunpack.c.l.bf16 %v582_v30 }
  0x9a   :  { %v172_v63 = vmul.f32 %v1044_v54, %v554_v18  ;;  %v211_v1 = vmul.f32 %v1045_v4, %v688_v45  ;;  %v1047_v28 = vunpack.c.l.bf16 %v697_v39  ;;  %v240_v37 = vadd.f32 %v208_v23, %v171_v8  ;;  %299 = vst.msk [vmem:[%s1022_s3 + $0x40] sm:$0xf] %vm282_vm0, %v266_v11 }
  0x9b   :  { %v173_v34 = vmul.f32 %v1046_v0, %v554_v18  ;;  %v268_v5 = vpack.c.bf16 %v236_v26, %v236_v26  ;;  %v1048_v46 = vunpack.c.h.bf16 %v582_v30  ;;  %v1049_v16 = vunpack.c.h.bf16 %v697_v39  ;;  %300 = vst.msk [vmem:[%s1022_s3 + $0x44] sm:$0xf] %vm282_vm0, %v267_v14 }
  0x9c   :  { %v212_v29 = vmul.f32 %v1047_v28, %v688_v45  ;;  %v241_v56 = vadd.f32 %v209_v58, %v172_v63  ;;  %v269_v2 = vpack.c.bf16 %v237_v61, %v237_v61  ;;  %v1050_v42 = vunpack.c.l.bf16 %v591_v35 }
  0x9d   :  { %v174_v15 = vmul.f32 %v1048_v46, %v554_v18  ;;  %v213_v38 = vmul.f32 %v1049_v16, %v688_v45  ;;  %v1051_v19 = vunpack.c.l.bf16 %v706_v32  ;;  %v242_v6 = vadd.f32 %v210_v24, %v173_v34  ;;  %301 = vst.msk [vmem:[%s1022_s3 + $0x48] sm:$0xf] %vm282_vm0, %v268_v5 }
  0x9e   :  { %v175_v59 = vmul.f32 %v1050_v42, %v554_v18  ;;  %v270_v20 = vpack.c.bf16 %v238_v9, %v238_v9  ;;  %v1052_v39 = vunpack.c.h.bf16 %v591_v35  ;;  %v1053_v57 = vunpack.c.h.bf16 %v706_v32  ;;  %302 = vst.msk [vmem:[%s1022_s3 + $0x4c] sm:$0xf] %vm282_vm0, %v269_v2 }
  0x9f   :  { %v214_v30 = vmul.f32 %v1051_v19, %v688_v45  ;;  %v243_v17 = vadd.f32 %v211_v1, %v174_v15  ;;  %v271_v31 = vpack.c.bf16 %v239_v13, %v239_v13  ;;  %v1054_v51 = vunpack.c.l.bf16 %v596_v36 }
  0xa0   :  { %v176_v47 = vmul.f32 %v1052_v39, %v554_v18  ;;  %v215_v21 = vmul.f32 %v1053_v57, %v688_v45  ;;  %v216_v35 = vmul.f32 %v445_v43, %v688_v45  ;;  %v244_v55 = vadd.f32 %v212_v29, %v175_v59  ;;  %303 = vst.msk [vmem:[%s1022_s3 + $0x50] sm:$0xf] %vm282_vm0, %v270_v20 }
  0xa1   :  { %v177_v48 = vmul.f32 %v1054_v51, %v554_v18  ;;  %v272_v7 = vpack.c.bf16 %v240_v37, %v240_v37  ;;  %v1055_v32 = vunpack.c.h.bf16 %v596_v36  ;;  %v217_v25 = vmul.f32 %v446_v12, %v688_v45  ;;  %304 = vst.msk [vmem:[%s1022_s3 + $0x54] sm:$0xf] %vm282_vm0, %v271_v31 }
  0xa2   :  { %v245_v40 = vadd.f32 %v213_v38, %v176_v47  ;;  %v273_v44 = vpack.c.bf16 %v241_v56, %v241_v56  ;;  %v1056_v43 = vunpack.c.l.bf16 %v605_v41  ;;  %v274_v23 = vpack.c.bf16 %v242_v6, %v242_v6 }
  0xa3   :  { %v178_v22 = vmul.f32 %v1055_v32, %v554_v18  ;;  %v246_v10 = vadd.f32 %v214_v30, %v177_v48  ;;  %v1057_v33 = vunpack.c.h.bf16 %v605_v41  ;;  %v275_v12 = vpack.c.bf16 %v243_v17, %v243_v17  ;;  %305 = vst.msk [vmem:[%s1022_s3 + $0x58] sm:$0xf] %vm282_vm0, %v272_v7 }
  0xa4   :  { %v179_v50 = vmul.f32 %v1056_v43, %v554_v18  ;;  %v276_v53 = vpack.c.bf16 %v244_v55, %v244_v55  ;;  %v277_v49 = vpack.c.bf16 %v245_v40, %v245_v40  ;;  %306 = vst.msk [vmem:[%s1022_s3 + $0x5c] sm:$0xf] %vm282_vm0, %v273_v44 }
  0xa5   :  { %v180_v36 = vmul.f32 %v1057_v33, %v554_v18  ;;  %v247_v45 = vadd.f32 %v215_v21, %v178_v22  ;;  %v278_v18 = vpack.c.bf16 %v246_v10, %v246_v10  ;;  %307 = vst.msk [vmem:[%s1022_s3 + $0x60] sm:$0xf] %vm282_vm0, %v274_v23 }
  0xa6   :  { %v248_v26 = vadd.f32 %v216_v35, %v179_v50  ;;  %308 = vst.msk [vmem:[%s1022_s3 + $0x64] sm:$0xf] %vm282_vm0, %v275_v12 }
  0xa7   :  { %v249_v52 = vadd.f32 %v217_v25, %v180_v36  ;;  %v279_v41 = vpack.c.bf16 %v247_v45, %v247_v45  ;;  %309 = vst.msk [vmem:[%s1022_s3 + $0x68] sm:$0xf] %vm282_vm0, %v276_v53 }
  0xa8   :  { %v280_v60 = vpack.c.bf16 %v248_v26, %v248_v26  ;;  %310 = vst.msk [vmem:[%s1022_s3 + $0x6c] sm:$0xf] %vm282_vm0, %v277_v49 }
  0xa9   :  { %v281_v58 = vpack.c.bf16 %v249_v52, %v249_v52  ;;  %311 = vst.msk [vmem:[%s1022_s3 + $0x70] sm:$0xf] %vm282_vm0, %v278_v18 }
  0xaa   :  { %312 = vst.msk [vmem:[%s1022_s3 + $0x74] sm:$0xf] %vm282_vm0, %v279_v41 }
  0xab   :  { %313 = vst.msk [vmem:[%s1022_s3 + $0x78] sm:$0xf] %vm282_vm0, %v280_v60 }
  0xac   :  { %314 = vst.msk [vmem:[%s1022_s3 + $0x7c] sm:$0xf] %vm282_vm0, %v281_v58 }

// kernel: skip_connection_forward.15
= control target key start
LH: loop header
LB: loop body
LE: loop exit
PB: predicated region body
PF: predicated region fallthrough
CT: control target
= control target key end

     0   :  { %v256_v0 = vmov 0   ;;  %s796_s2 = inlined_call_operand.vmem [shape: f32[8,1], index: 2, kind: input, shape index: {}]   ;;  %s797_s0 = inlined_call_operand.vmem [shape: bf16[2,8,2048], index: 0, kind: input, shape index: {}]   ;;  %s798_s1 = inlined_call_operand.vmem [shape: bf16[2,8,2048], index: 1, kind: input, shape index: {}]   ;;  %s799_s3 = inlined_call_operand.vmem [shape: bf16[2,8,2048], index: 3, kind: output, shape index: {}]  }
   0x1   :  { %255 = vset.pattern.permute.xlu0 %v256_v0  ;;  %v14_v1 = vld [vmem:[%s796_s2] sm:$0xff]  ;;  %v288_v4 = vld [vmem:[%s797_s0 + $0x8] sm:$0xff]  ;;  %v293_v5 = vld [vmem:[%s797_s0 + $0x10] sm:$0xff] }
   0x2   :  { %v111_v2 = vsub.f32 1.0, %v14_v1  ;;  %v283_v3 = vld [vmem:[%s797_s0] sm:$0xff]  ;;  %v298_v6 = vld [vmem:[%s797_s0 + $0x18] sm:$0xff]  ;;  %v308_v8 = vld [vmem:[%s797_s0 + $0x28] sm:$0xff]  ;;  %v33_v14 = vunpack.c.l.bf16 %v288_v4  ;;  %v34_v15 = vunpack.c.h.bf16 %v288_v4  ;;  %v35_v16 = vunpack.c.l.bf16 %v293_v5 }
   0x3   :  { %v303_v7 = vld [vmem:[%s797_s0 + $0x20] sm:$0xff]  ;;  %v313_v9 = vld [vmem:[%s797_s0 + $0x30] sm:$0xff]  ;;  %v31_v10 = vunpack.c.l.bf16 %v283_v3  ;;  %v32_v11 = vunpack.c.h.bf16 %v283_v3  ;;  %v320_v12 = vld [vmem:[%s797_s0 + $0x38] sm:$0xff]  ;;  %v36_v17 = vunpack.c.h.bf16 %v293_v5  ;;  %v37_v20 = vunpack.c.l.bf16 %v298_v6 }
   0x4   :  { %114 = vperm.xlu0 %255, %v111_v2   ;;  %v325_v13 = vld [vmem:[%s797_s0 + $0x40] sm:$0xff]  ;;  %v334_v18 = vld [vmem:[%s797_s0 + $0x48] sm:$0xff]  ;;  %v339_v19 = vld [vmem:[%s797_s0 + $0x50] sm:$0xff]  ;;  %v38_v21 = vunpack.c.h.bf16 %v298_v6  ;;  %v39_v22 = vunpack.c.l.bf16 %v303_v7  ;;  %v40_v23 = vunpack.c.h.bf16 %v303_v7  ;;  %v41_v26 = vunpack.c.l.bf16 %v308_v8 }
   0x5   :  { %v348_v24 = vld [vmem:[%s797_s0 + $0x58] sm:$0xff]  ;;  %v353_v25 = vld [vmem:[%s797_s0 + $0x60] sm:$0xff]  ;;  %v42_v27 = vunpack.c.h.bf16 %v308_v8  ;;  %v43_v28 = vunpack.c.l.bf16 %v313_v9  ;;  %v44_v29 = vunpack.c.h.bf16 %v313_v9  ;;  %v362_v30 = vld [vmem:[%s797_s0 + $0x68] sm:$0xff]  ;;  %v45_v32 = vunpack.c.l.bf16 %v320_v12 }
   0x6   :  { %v367_v31 = vld [vmem:[%s797_s0 + $0x70] sm:$0xff]  ;;  %v46_v33 = vunpack.c.h.bf16 %v320_v12  ;;  %v47_v34 = vunpack.c.l.bf16 %v325_v13  ;;  %v48_v35 = vunpack.c.h.bf16 %v325_v13  ;;  %v376_v36 = vld [vmem:[%s797_s0 + $0x78] sm:$0xff]  ;;  %v49_v37 = vunpack.c.l.bf16 %v334_v18  ;;  %v385_v41 = vld [vmem:[%s798_s1] sm:$0xff] }
   0x7   :  { %804 = vst [vmem:[#allocation2_spill] sm:$0xff] %v376_v36  ;;  %v50_v38 = vunpack.c.h.bf16 %v334_v18  ;;  %v51_v39 = vunpack.c.l.bf16 %v339_v19  ;;  %v394_v46 = vld [vmem:[%s798_s1 + $0x8] sm:$0xff]  ;;  %v399_v47 = vld [vmem:[%s798_s1 + $0x10] sm:$0xff]  ;;  %v408_v52 = vld [vmem:[%s798_s1 + $0x18] sm:$0xff]  ;;  %v806_v13 = vunpack.c.h.bf16 %v339_v19  ;;  %v809_v18 = vunpack.c.h.bf16 %v348_v24 }
   0x8   :  { %v413_v53 = vld [vmem:[%s798_s1 + $0x20] sm:$0xff]  ;;  %v420_v56 = vld [vmem:[%s798_s1 + $0x28] sm:$0xff]  ;;  %v425_v57 = vld [vmem:[%s798_s1 + $0x30] sm:$0xff]  ;;  %v813_v19 = vunpack.c.h.bf16 %v353_v25  ;;  %v828_v44 = vunpack.c.h.bf16 %v399_v47  ;;  %v830_v48 = vunpack.c.h.bf16 %v408_v52 }
   0x9   :  { %v432_v60 = vld [vmem:[%s798_s1 + $0x38] sm:$0xff]  ;;  %v437_v61 = vld [vmem:[%s798_s1 + $0x40] sm:$0xff]  ;;  %v446_v2 = vld [vmem:[%s798_s1 + $0x48] sm:$0xff]  ;;  %v832_v42 = vunpack.c.h.bf16 %v413_v53  ;;  %v834_v62 = vunpack.c.h.bf16 %v420_v56  ;;  %v836_v49 = vunpack.c.h.bf16 %v425_v57 }
   0xa   :  { %v451_v55 = vld [vmem:[%s798_s1 + $0x50] sm:$0xff]  ;;  %v467_v58 = vld [vmem:[%s798_s1 + $0x60] sm:$0xff]  ;;  %v476_v51 = vld [vmem:[%s798_s1 + $0x68] sm:$0xff] }
   0xb   :  { %v481_v50 = vld [vmem:[%s798_s1 + $0x70] sm:$0xff]  ;;  %v490_v0 = vld [vmem:[%s798_s1 + $0x78] sm:$0xff] }
   0xc   :  { %151 = vperm.xlu0 %255, %v14_v1   ;;  %v462_v1 = vld [vmem:[%s798_s1 + $0x58] sm:$0xff] }
  0x76   :  { %v457_v59 = vpop.permute.xlu0 %114 }
  0x77   :  { %805 = vst [vmem:[#allocation3_spill] sm:$0xff] %v457_v59  ;;  %v117_v54 = vmul.f32 %v457_v59, %v31_v10  ;;  %v118_v63 = vmul.f32 %v457_v59, %v32_v11  ;;  %v119_v40 = vmul.f32 %v457_v59, %v33_v14  ;;  %v120_v45 = vmul.f32 %v457_v59, %v34_v15 }
  0x78   :  { %v121_v43 = vmul.f32 %v457_v59, %v35_v16  ;;  %v122_v10 = vmul.f32 %v457_v59, %v36_v17  ;;  %v123_v3 = vmul.f32 %v457_v59, %v37_v20  ;;  %v124_v11 = vmul.f32 %v457_v59, %v38_v21 }
  0x79   :  { %v125_v4 = vmul.f32 %v457_v59, %v39_v22  ;;  %v126_v14 = vmul.f32 %v457_v59, %v40_v23  ;;  %v127_v5 = vmul.f32 %v457_v59, %v41_v26  ;;  %v128_v15 = vmul.f32 %v457_v59, %v42_v27 }
  0x7a   :  { %v129_v6 = vmul.f32 %v457_v59, %v43_v28  ;;  %v130_v16 = vmul.f32 %v457_v59, %v44_v29  ;;  %v551_v7 = vmul.f32 %v457_v59, %v45_v32  ;;  %v556_v17 = vmul.f32 %v457_v59, %v46_v33 }
  0x7b   :  { %v561_v8 = vmul.f32 %v457_v59, %v47_v34  ;;  %v566_v9 = vmul.f32 %v457_v59, %v48_v35  ;;  %v573_v21 = vmul.f32 %v457_v59, %v49_v37  ;;  %v578_v12 = vmul.f32 %v457_v59, %v50_v38 }
  0x7c   :  { %v583_v22 = vmul.f32 %v457_v59, %v51_v39  ;;  %v588_v23 = vmul.f32 %v457_v59, %v806_v13  ;;  %v807_v26 = vunpack.c.l.bf16 %v348_v24  ;;  %v598_v28 = vmul.f32 %v457_v59, %v809_v18 }
  0x7d   :  { %v811_v29 = vunpack.c.l.bf16 %v353_v25  ;;  %v608_v33 = vmul.f32 %v457_v59, %v813_v19  ;;  %v815_v34 = vunpack.c.l.bf16 %v362_v30  ;;  %v817_v24 = vunpack.c.h.bf16 %v362_v30 }
  0x7e   :  { %v568_v20 = vpop.permute.xlu0 %151  ;;  %v593_v27 = vmul.f32 %v457_v59, %v807_v26  ;;  %810 = vst [vmem:[#allocation5_spill] sm:$0xff] %v598_v28  ;;  %v819_v38 = vunpack.c.l.bf16 %v367_v31  ;;  %v821_v25 = vunpack.c.h.bf16 %v367_v31  ;;  %v823_v26 = vunpack.c.l.bf16 %v385_v41 }
  0x7f   :  { %v603_v32 = vmul.f32 %v457_v59, %v811_v29  ;;  %814 = vst [vmem:[#allocation7_spill] sm:$0xff] %v608_v33  ;;  %v613_v35 = vmul.f32 %v457_v59, %v815_v34  ;;  %v618_v37 = vmul.f32 %v457_v59, %v817_v24  ;;  %v824_v29 = vunpack.c.h.bf16 %v385_v41 }
  0x80   :  { %808 = vst [vmem:[#allocation4_spill] sm:$0xff] %v593_v27  ;;  %v623_v39 = vmul.f32 %v457_v59, %v819_v38  ;;  %v628_v13 = vmul.f32 %v457_v59, %v821_v25  ;;  %v154_v18 = vmul.f32 %v568_v20, %v823_v26  ;;  %v825_v19 = vunpack.c.l.bf16 %v394_v46 }
  0x81   :  { %812 = vst [vmem:[#allocation6_spill] sm:$0xff] %v603_v32  ;;  %v155_v30 = vmul.f32 %v568_v20, %v824_v29  ;;  %v826_v24 = vunpack.c.h.bf16 %v394_v46  ;;  %v827_v31 = vunpack.c.l.bf16 %v399_v47  ;;  %v159_v26 = vmul.f32 %v568_v20, %v828_v44 }
  0x82   :  { %816 = vst [vmem:[#allocation8_spill] sm:$0xff] %v613_v35  ;;  %v156_v34 = vmul.f32 %v568_v20, %v825_v19  ;;  %v829_v41 = vunpack.c.l.bf16 %v408_v52  ;;  %v161_v19 = vmul.f32 %v568_v20, %v830_v48  ;;  %v831_v46 = vunpack.c.l.bf16 %v413_v53 }
  0x83   :  { %818 = vst [vmem:[#allocation9_spill] sm:$0xff] %v618_v37  ;;  %v157_v38 = vmul.f32 %v568_v20, %v826_v24  ;;  %v158_v25 = vmul.f32 %v568_v20, %v827_v31  ;;  %v163_v31 = vmul.f32 %v568_v20, %v832_v42  ;;  %v833_v47 = vunpack.c.l.bf16 %v420_v56 }
  0x84   :  { %820 = vst [vmem:[#allocation10_spill] sm:$0xff] %v623_v39  ;;  %v160_v29 = vmul.f32 %v568_v20, %v829_v41  ;;  %v162_v24 = vmul.f32 %v568_v20, %v831_v46  ;;  %v165_v41 = vmul.f32 %v568_v20, %v834_v62  ;;  %v835_v52 = vunpack.c.l.bf16 %v425_v57 }
  0x85   :  { %822 = vst [vmem:[#allocation11_spill] sm:$0xff] %v628_v13  ;;  %v164_v44 = vmul.f32 %v568_v20, %v833_v47  ;;  %v167_v46 = vmul.f32 %v568_v20, %v836_v49  ;;  %v837_v53 = vunpack.c.l.bf16 %v432_v60  ;;  %v838_v13 = vunpack.c.h.bf16 %v432_v60 }
  0x86   :  { %v166_v48 = vmul.f32 %v568_v20, %v835_v52  ;;  %v839_v56 = vunpack.c.l.bf16 %v437_v61  ;;  %v840_v39 = vunpack.c.h.bf16 %v437_v61  ;;  %v841_v57 = vunpack.c.l.bf16 %v446_v2 }
  0x87   :  { %v168_v42 = vmul.f32 %v568_v20, %v837_v53  ;;  %v169_v47 = vmul.f32 %v568_v20, %v838_v13  ;;  %v842_v37 = vunpack.c.h.bf16 %v446_v2  ;;  %v843_v60 = vunpack.c.l.bf16 %v451_v55 }
  0x88   :  { %v170_v62 = vmul.f32 %v568_v20, %v839_v56  ;;  %v171_v52 = vmul.f32 %v568_v20, %v840_v39  ;;  %v172_v49 = vmul.f32 %v568_v20, %v841_v57  ;;  %v844_v35 = vunpack.c.h.bf16 %v451_v55 }
  0x89   :  { %v173_v53 = vmul.f32 %v568_v20, %v842_v37  ;;  %v174_v13 = vmul.f32 %v568_v20, %v843_v60  ;;  %v186_v33 = vadd.f32 %v154_v18, %v117_v54  ;;  %v187_v61 = vadd.f32 %v155_v30, %v118_v63 }
  0x8a   :  { %v175_v56 = vmul.f32 %v568_v20, %v844_v35  ;;  %v188_v32 = vadd.f32 %v156_v34, %v119_v40  ;;  %v189_v39 = vadd.f32 %v157_v38, %v120_v45  ;;  %v190_v59 = vadd.f32 %v158_v25, %v121_v43 }
  0x8b   :  { %v191_v36 = vadd.f32 %v159_v26, %v122_v10  ;;  %v845_v57 = vunpack.c.l.bf16 %v462_v1  ;;  %v846_v37 = vunpack.c.h.bf16 %v462_v1  ;;  %v192_v27 = vadd.f32 %v160_v29, %v123_v3 }
  0x8c   :  { %v193_v60 = vadd.f32 %v161_v19, %v124_v11  ;;  %v847_v55 = vunpack.c.l.bf16 %v467_v58  ;;  %v848_v54 = vunpack.c.h.bf16 %v467_v58  ;;  %v194_v43 = vadd.f32 %v162_v24, %v125_v4  ;;  %v856_v24 = vld [vmem:[#allocation5_spill] sm:$0xff] }
  0x8d   :  { %v176_v2 = vmul.f32 %v568_v20, %v845_v57  ;;  %v177_v28 = vmul.f32 %v568_v20, %v846_v37  ;;  %v195_v45 = vadd.f32 %v163_v31, %v126_v14  ;;  %v849_v63 = vunpack.c.l.bf16 %v476_v51  ;;  %v866_v57 = vld [vmem:[#allocation11_spill] sm:$0xff] }
  0x8e   :  { %v178_v35 = vmul.f32 %v568_v20, %v847_v55  ;;  %v179_v40 = vmul.f32 %v568_v20, %v848_v54  ;;  %v196_v18 = vadd.f32 %v164_v44, %v127_v5  ;;  %v197_v1 = vadd.f32 %v165_v41, %v128_v15  ;;  %v859_v41 = vld [vmem:[#allocation3_spill] sm:$0xff] }
  0x8f   :  { %v180_v10 = vmul.f32 %v568_v20, %v849_v63  ;;  %v198_v30 = vadd.f32 %v166_v48, %v129_v6  ;;  %v199_v34 = vadd.f32 %v167_v46, %v130_v16  ;;  %v218_v3 = vpack.c.bf16 %v187_v61, %v186_v33  ;;  %v860_v46 = vld [vmem:[#allocation6_spill] sm:$0xff] }
  0x90   :  { %v219_v11 = vpack.c.bf16 %v189_v39, %v188_v32  ;;  %v220_v38 = vpack.c.bf16 %v191_v36, %v190_v59  ;;  %v850_v25 = vunpack.c.h.bf16 %v476_v51  ;;  %v200_v58 = vadd.f32 %v168_v42, %v551_v7  ;;  %v855_v32 = vld [vmem:[#allocation4_spill] sm:$0xff]  ;;  %v865_v61 = vld [vmem:[#allocation10_spill] sm:$0xff] }
  0x91   :  { %v201_v4 = vadd.f32 %v169_v47, %v556_v17  ;;  %v221_v14 = vpack.c.bf16 %v193_v60, %v192_v27  ;;  %v851_v29 = vunpack.c.l.bf16 %v481_v50  ;;  %v202_v5 = vadd.f32 %v170_v62, %v561_v8  ;;  %234 = vst [vmem:[%s799_s3] sm:$0xff] %v218_v3  ;;  %v861_v47 = vld [vmem:[#allocation7_spill] sm:$0xff] }
  0x92   :  { %v181_v26 = vmul.f32 %v568_v20, %v850_v25  ;;  %v203_v15 = vadd.f32 %v171_v52, %v566_v9  ;;  %v222_v6 = vpack.c.bf16 %v195_v45, %v194_v43  ;;  %v852_v36 = vunpack.c.h.bf16 %v481_v50  ;;  %235 = vst [vmem:[%s799_s3 + $0x8] sm:$0xff] %v219_v11  ;;  %v863_v52 = vld [vmem:[#allocation8_spill] sm:$0xff] }
  0x93   :  { %v182_v19 = vmul.f32 %v568_v20, %v851_v29  ;;  %v204_v59 = vadd.f32 %v172_v49, %v573_v21  ;;  %v205_v16 = vadd.f32 %v173_v53, %v578_v12  ;;  %v223_v7 = vpack.c.bf16 %v197_v1, %v196_v18  ;;  %236 = vst [vmem:[%s799_s3 + $0x10] sm:$0xff] %v220_v38  ;;  %v864_v53 = vld [vmem:[#allocation9_spill] sm:$0xff] }
  0x94   :  { %v183_v51 = vmul.f32 %v568_v20, %v852_v36  ;;  %v853_v17 = vunpack.c.l.bf16 %v490_v0  ;;  %v206_v9 = vadd.f32 %v174_v13, %v583_v22  ;;  %v207_v27 = vadd.f32 %v175_v56, %v588_v23  ;;  %237 = vst [vmem:[%s799_s3 + $0x18] sm:$0xff] %v221_v14  ;;  %v857_v22 = vld [vmem:[#allocation2_spill] sm:$0xff] }
  0x95   :  { %v224_v50 = vpack.c.bf16 %v199_v34, %v198_v30  ;;  %v854_v21 = vunpack.c.h.bf16 %v490_v0  ;;  %v208_v33 = vadd.f32 %v176_v2, %v855_v32  ;;  %v209_v31 = vadd.f32 %v177_v28, %v856_v24  ;;  %238 = vst [vmem:[%s799_s3 + $0x20] sm:$0xff] %v222_v6 }
  0x96   :  { %v184_v8 = vmul.f32 %v568_v20, %v853_v17  ;;  %v225_v44 = vpack.c.bf16 %v201_v4, %v200_v58  ;;  %v858_v23 = vunpack.c.l.bf16 %v857_v22  ;;  %v210_v42 = vadd.f32 %v178_v35, %v860_v46  ;;  %239 = vst [vmem:[%s799_s3 + $0x28] sm:$0xff] %v223_v7 }
  0x97   :  { %v185_v12 = vmul.f32 %v568_v20, %v854_v21  ;;  %v211_v62 = vadd.f32 %v179_v40, %v861_v47  ;;  %v226_v0 = vpack.c.bf16 %v203_v15, %v202_v5  ;;  %v862_v20 = vunpack.c.h.bf16 %v857_v22  ;;  %240 = vst [vmem:[%s799_s3 + $0x30] sm:$0xff] %v224_v50 }
  0x98   :  { %v147_v48 = vmul.f32 %v859_v41, %v858_v23  ;;  %v212_v49 = vadd.f32 %v180_v10, %v863_v52  ;;  %v213_v13 = vadd.f32 %v181_v26, %v864_v53  ;;  %v227_v56 = vpack.c.bf16 %v205_v16, %v204_v59  ;;  %241 = vst [vmem:[%s799_s3 + $0x38] sm:$0xff] %v225_v44 }
  0x99   :  { %v148_v28 = vmul.f32 %v859_v41, %v862_v20  ;;  %v214_v39 = vadd.f32 %v182_v19, %v865_v61  ;;  %v215_v2 = vadd.f32 %v183_v51, %v866_v57  ;;  %v228_v37 = vpack.c.bf16 %v207_v27, %v206_v9  ;;  %242 = vst [vmem:[%s799_s3 + $0x40] sm:$0xff] %v226_v0 }
  0x9a   :  { %v216_v60 = vadd.f32 %v184_v8, %v147_v48  ;;  %v229_v35 = vpack.c.bf16 %v209_v31, %v208_v33  ;;  %v230_v54 = vpack.c.bf16 %v211_v62, %v210_v42  ;;  %v231_v40 = vpack.c.bf16 %v213_v13, %v212_v49  ;;  %243 = vst [vmem:[%s799_s3 + $0x48] sm:$0xff] %v227_v56 }
  0x9b   :  { %v217_v55 = vadd.f32 %v185_v12, %v148_v28  ;;  %v232_v43 = vpack.c.bf16 %v215_v2, %v214_v39  ;;  %244 = vst [vmem:[%s799_s3 + $0x50] sm:$0xff] %v228_v37 }
  0x9c   :  { %245 = vst [vmem:[%s799_s3 + $0x58] sm:$0xff] %v229_v35 }
  0x9d   :  { %v233_v45 = vpack.c.bf16 %v217_v55, %v216_v60  ;;  %246 = vst [vmem:[%s799_s3 + $0x60] sm:$0xff] %v230_v54 }
  0x9e   :  { %247 = vst [vmem:[%s799_s3 + $0x68] sm:$0xff] %v231_v40 }
  0x9f   :  { %248 = vst [vmem:[%s799_s3 + $0x70] sm:$0xff] %v232_v43 }
  0xa0   :  { %249 = vst [vmem:[%s799_s3 + $0x78] sm:$0xff] %v233_v45 }

// kernel: skip_connection_forward.16
= control target key start
LH: loop header
LB: loop body
LE: loop exit
PB: predicated region body
PF: predicated region fallthrough
CT: control target
= control target key end

     0   :  { %v143_v0 = vmov 0   ;;  %vm90_vm0 = vcmask 519168   ;;  %s223_s2 = inlined_call_operand.vmem [shape: f32[8,1], index: 2, kind: input, shape index: {}]   ;;  %s224_s0 = inlined_call_operand.vmem [shape: bf16[8,8,64], index: 0, kind: input, shape index: {}]   ;;  %s225_s1 = inlined_call_operand.vmem [shape: bf16[8,8,64], index: 1, kind: input, shape index: {}]   ;;  %s226_s3 = inlined_call_operand.vmem [shape: bf16[8,8,64], index: 3, kind: output, shape index: {}]  }
   0x1   :  { %142 = vset.pattern.permute.xlu0 %v143_v0  ;;  %v14_v1 = vld [vmem:[%s223_s2] sm:$0xff]  ;;  %v135_v5 = vld [vmem:[%s224_s0 + $0x8] sm:$0xff]   ;;  %v136_v6 = vld [vmem:[%s224_s0 + $0x10] sm:$0xff]  }
   0x2   :  { %v47_v2 = vsub.f32 1.0, %v14_v1  ;;  %v104_v4 = vld [vmem:[%s224_s0] sm:$0xff]   ;;  %v137_v7 = vld [vmem:[%s224_s0 + $0x18] sm:$0xff]   ;;  %v138_v9 = vld [vmem:[%s225_s1 + $0x8] sm:$0xff]   ;;  %v109_v12 = vunpack.c.l.bf16 %v135_v5  ;;  %v110_v15 = vunpack.c.h.bf16 %v135_v5  ;;  %v113_v16 = vunpack.c.l.bf16 %v136_v6 }
   0x3   :  { %v120_v8 = vld [vmem:[%s225_s1] sm:$0xff]   ;;  %v105_v10 = vunpack.c.l.bf16 %v104_v4  ;;  %v106_v11 = vunpack.c.h.bf16 %v104_v4  ;;  %v139_v13 = vld [vmem:[%s225_s1 + $0x10] sm:$0xff]   ;;  %v140_v14 = vld [vmem:[%s225_s1 + $0x18] sm:$0xff]   ;;  %v114_v17 = vunpack.c.h.bf16 %v136_v6  ;;  %v117_v18 = vunpack.c.l.bf16 %v137_v7 }
   0x4   :  { %50 = vperm.xlu0 %142, %v47_v2   ;;  %v121_v19 = vunpack.c.l.bf16 %v120_v8  ;;  %v122_v20 = vunpack.c.h.bf16 %v120_v8  ;;  %v125_v21 = vunpack.c.l.bf16 %v138_v9  ;;  %v126_v22 = vunpack.c.h.bf16 %v138_v9 }
   0x5   :  { %v129_v23 = vunpack.c.l.bf16 %v139_v13  ;;  %v130_v24 = vunpack.c.h.bf16 %v139_v13  ;;  %v133_v25 = vunpack.c.l.bf16 %v140_v14  ;;  %v134_v26 = vunpack.c.h.bf16 %v140_v14 }
   0x6   :  { %v118_v27 = vunpack.c.h.bf16 %v137_v7 }
   0xc   :  { %63 = vperm.xlu0 %142, %v14_v1  }
  0x76   :  { %v51_v3 = vpop.permute.xlu0 %50 }
  0x77   :  { %v53_v28 = vmul.f32 %v105_v10, %v51_v3  ;;  %v54_v29 = vmul.f32 %v106_v11, %v51_v3  ;;  %v55_v30 = vmul.f32 %v109_v12, %v51_v3  ;;  %v56_v32 = vmul.f32 %v110_v15, %v51_v3 }
  0x78   :  { %v57_v33 = vmul.f32 %v113_v16, %v51_v3  ;;  %v58_v34 = vmul.f32 %v114_v17, %v51_v3  ;;  %v59_v35 = vmul.f32 %v117_v18, %v51_v3  ;;  %v60_v48 = vmul.f32 %v118_v27, %v51_v3 }
  0x7e   :  { %v64_v31 = vpop.permute.xlu0 %63 }
  0x7f   :  { %v66_v36 = vmul.f32 %v121_v19, %v64_v31  ;;  %v67_v37 = vmul.f32 %v122_v20, %v64_v31  ;;  %v68_v38 = vmul.f32 %v125_v21, %v64_v31  ;;  %v69_v39 = vmul.f32 %v126_v22, %v64_v31 }
  0x80   :  { %v70_v40 = vmul.f32 %v129_v23, %v64_v31  ;;  %v71_v41 = vmul.f32 %v130_v24, %v64_v31  ;;  %v72_v42 = vmul.f32 %v133_v25, %v64_v31  ;;  %v73_v43 = vmul.f32 %v134_v26, %v64_v31 }
  0x81   :  { %v74_v44 = vadd.f32 %v66_v36, %v53_v28  ;;  %v75_v45 = vadd.f32 %v67_v37, %v54_v29  ;;  %v76_v46 = vadd.f32 %v68_v38, %v55_v30  ;;  %v77_v47 = vadd.f32 %v69_v39, %v56_v32 }
  0x82   :  { %v78_v49 = vadd.f32 %v70_v40, %v57_v33  ;;  %v79_v50 = vadd.f32 %v71_v41, %v58_v34  ;;  %v80_v51 = vadd.f32 %v72_v42, %v59_v35  ;;  %v81_v55 = vadd.f32 %v73_v43, %v60_v48 }
  0x83   :  { %v82_v52 = vpack.c.bf16 %v74_v44, %v74_v44  ;;  %v83_v53 = vpack.c.bf16 %v75_v45, %v75_v45  ;;  %v84_v54 = vpack.c.bf16 %v76_v46, %v76_v46  ;;  %v85_v56 = vpack.c.bf16 %v77_v47, %v77_v47 }
  0x84   :  { %v86_v57 = vpack.c.bf16 %v78_v49, %v78_v49  ;;  %v87_v58 = vpack.c.bf16 %v79_v50, %v79_v50  ;;  %v88_v59 = vpack.c.bf16 %v80_v51, %v80_v51  ;;  %v89_v60 = vpack.c.bf16 %v81_v55, %v81_v55 }
  0x85   :  { %91 = vst.msk [vmem:[%s226_s3] sm:$0xf] %vm90_vm0, %v82_v52 }
  0x86   :  { %92 = vst.msk [vmem:[%s226_s3 + $0x4] sm:$0xf] %vm90_vm0, %v83_v53 }
  0x87   :  { %93 = vst.msk [vmem:[%s226_s3 + $0x8] sm:$0xf] %vm90_vm0, %v84_v54 }
  0x88   :  { %94 = vst.msk [vmem:[%s226_s3 + $0xc] sm:$0xf] %vm90_vm0, %v85_v56 }
  0x89   :  { %95 = vst.msk [vmem:[%s226_s3 + $0x10] sm:$0xf] %vm90_vm0, %v86_v57 }
  0x8a   :  { %96 = vst.msk [vmem:[%s226_s3 + $0x14] sm:$0xf] %vm90_vm0, %v87_v58 }
  0x8b   :  { %97 = vst.msk [vmem:[%s226_s3 + $0x18] sm:$0xf] %vm90_vm0, %v88_v59 }
  0x8c   :  { %98 = vst.msk [vmem:[%s226_s3 + $0x1c] sm:$0xf] %vm90_vm0, %v89_v60 }

// kernel: skip_connection_forward.17
= control target key start
LH: loop header
LB: loop body
LE: loop exit
PB: predicated region body
PF: predicated region fallthrough
CT: control target
= control target key end

     0   :  { %v144_v0 = vmov 0   ;;  %s268_s2 = inlined_call_operand.vmem [shape: f32[8,1], index: 2, kind: input, shape index: {}]   ;;  %s269_s0 = inlined_call_operand.vmem [shape: bf16[4,8,512], index: 0, kind: input, shape index: {}]   ;;  %s270_s1 = inlined_call_operand.vmem [shape: bf16[4,8,512], index: 1, kind: input, shape index: {}]   ;;  %s271_s3 = inlined_call_operand.vmem [shape: bf16[4,8,512], index: 3, kind: output, shape index: {}]  }
   0x1   :  { %143 = vset.pattern.permute.xlu0 %v144_v0  ;;  %v14_v1 = vld [vmem:[%s268_s2] sm:$0xff]  ;;  %v16_v4 = vld [vmem:[%s269_s0 + $0x8] sm:$0xff]  ;;  %v17_v5 = vld [vmem:[%s269_s0 + $0x10] sm:$0xff] }
   0x2   :  { %v63_v2 = vsub.f32 1.0, %v14_v1  ;;  %v15_v3 = vld [vmem:[%s269_s0] sm:$0xff]  ;;  %v18_v6 = vld [vmem:[%s269_s0 + $0x18] sm:$0xff]  ;;  %v20_v8 = vld [vmem:[%s269_s0 + $0x28] sm:$0xff]  ;;  %v25_v13 = vunpack.c.l.bf16 %v16_v4  ;;  %v26_v14 = vunpack.c.h.bf16 %v16_v4  ;;  %v27_v15 = vunpack.c.l.bf16 %v17_v5 }
   0x3   :  { %v19_v7 = vld [vmem:[%s269_s0 + $0x20] sm:$0xff]  ;;  %v189_v9 = vld [vmem:[%s269_s0 + $0x30] sm:$0xff]  ;;  %v23_v10 = vunpack.c.l.bf16 %v15_v3  ;;  %v194_v11 = vld [vmem:[%s269_s0 + $0x38] sm:$0xff]  ;;  %v24_v12 = vunpack.c.h.bf16 %v15_v3  ;;  %v28_v17 = vunpack.c.h.bf16 %v17_v5  ;;  %v29_v18 = vunpack.c.l.bf16 %v18_v6 }
   0x4   :  { %66 = vperm.xlu0 %143, %v63_v2   ;;  %v39_v16 = vld [vmem:[%s270_s1] sm:$0xff]  ;;  %v30_v19 = vunpack.c.h.bf16 %v18_v6  ;;  %v31_v20 = vunpack.c.l.bf16 %v19_v7  ;;  %v40_v21 = vld [vmem:[%s270_s1 + $0x8] sm:$0xff]  ;;  %v41_v22 = vld [vmem:[%s270_s1 + $0x10] sm:$0xff]  ;;  %v32_v24 = vunpack.c.h.bf16 %v19_v7  ;;  %v33_v25 = vunpack.c.l.bf16 %v20_v8 }
   0x5   :  { %v34_v26 = vunpack.c.h.bf16 %v20_v8  ;;  %v35_v27 = vunpack.c.l.bf16 %v189_v9  ;;  %v42_v28 = vld [vmem:[%s270_s1 + $0x18] sm:$0xff]  ;;  %v43_v29 = vld [vmem:[%s270_s1 + $0x20] sm:$0xff]  ;;  %v36_v30 = vunpack.c.h.bf16 %v189_v9  ;;  %v37_v31 = vunpack.c.l.bf16 %v194_v11  ;;  %v44_v33 = vld [vmem:[%s270_s1 + $0x28] sm:$0xff] }
   0x6   :  { %v38_v32 = vunpack.c.h.bf16 %v194_v11  ;;  %v45_v34 = vld [vmem:[%s270_s1 + $0x30] sm:$0xff]  ;;  %v47_v35 = vunpack.c.l.bf16 %v39_v16  ;;  %v46_v36 = vld [vmem:[%s270_s1 + $0x38] sm:$0xff]  ;;  %v48_v37 = vunpack.c.h.bf16 %v39_v16  ;;  %v49_v38 = vunpack.c.l.bf16 %v40_v21 }
   0x7   :  { %v50_v39 = vunpack.c.h.bf16 %v40_v21  ;;  %v51_v40 = vunpack.c.l.bf16 %v41_v22  ;;  %v52_v41 = vunpack.c.h.bf16 %v41_v22  ;;  %v53_v42 = vunpack.c.l.bf16 %v42_v28 }
   0x8   :  { %v54_v43 = vunpack.c.h.bf16 %v42_v28  ;;  %v55_v44 = vunpack.c.l.bf16 %v43_v29  ;;  %v56_v45 = vunpack.c.h.bf16 %v43_v29  ;;  %v57_v46 = vunpack.c.l.bf16 %v44_v33 }
   0x9   :  { %v58_v47 = vunpack.c.h.bf16 %v44_v33  ;;  %v59_v48 = vunpack.c.l.bf16 %v45_v34  ;;  %v60_v49 = vunpack.c.h.bf16 %v45_v34  ;;  %v61_v50 = vunpack.c.l.bf16 %v46_v36 }
   0xa   :  { %v62_v51 = vunpack.c.h.bf16 %v46_v36 }
   0xc   :  { %87 = vperm.xlu0 %143, %v14_v1  }
  0x76   :  { %v205_v23 = vpop.permute.xlu0 %66 }
  0x77   :  { %v69_v52 = vmul.f32 %v205_v23, %v23_v10  ;;  %v70_v53 = vmul.f32 %v205_v23, %v24_v12  ;;  %v71_v54 = vmul.f32 %v205_v23, %v25_v13  ;;  %v72_v55 = vmul.f32 %v205_v23, %v26_v14 }
  0x78   :  { %v73_v56 = vmul.f32 %v205_v23, %v27_v15  ;;  %v74_v57 = vmul.f32 %v205_v23, %v28_v17  ;;  %v75_v58 = vmul.f32 %v205_v23, %v29_v18  ;;  %v76_v59 = vmul.f32 %v205_v23, %v30_v19 }
  0x79   :  { %v77_v60 = vmul.f32 %v205_v23, %v31_v20  ;;  %v78_v62 = vmul.f32 %v205_v23, %v32_v24  ;;  %v79_v63 = vmul.f32 %v205_v23, %v33_v25  ;;  %v80_v0 = vmul.f32 %v205_v23, %v34_v26 }
  0x7a   :  { %v81_v1 = vmul.f32 %v205_v23, %v35_v27  ;;  %v82_v28 = vmul.f32 %v205_v23, %v36_v30  ;;  %v83_v29 = vmul.f32 %v205_v23, %v37_v31 }
  0x7e   :  { %v88_v61 = vpop.permute.xlu0 %87 }
  0x7f   :  { %v90_v2 = vmul.f32 %v88_v61, %v47_v35  ;;  %v91_v3 = vmul.f32 %v88_v61, %v48_v37  ;;  %v92_v4 = vmul.f32 %v88_v61, %v49_v38  ;;  %v93_v5 = vmul.f32 %v88_v61, %v50_v39 }
  0x80   :  { %v94_v6 = vmul.f32 %v88_v61, %v51_v40  ;;  %v95_v7 = vmul.f32 %v88_v61, %v52_v41  ;;  %v96_v8 = vmul.f32 %v88_v61, %v53_v42  ;;  %v97_v9 = vmul.f32 %v88_v61, %v54_v43 }
  0x81   :  { %v98_v10 = vmul.f32 %v88_v61, %v55_v44  ;;  %v99_v12 = vmul.f32 %v88_v61, %v56_v45  ;;  %v100_v13 = vmul.f32 %v88_v61, %v57_v46  ;;  %v101_v14 = vmul.f32 %v88_v61, %v58_v47 }
  0x82   :  { %v102_v15 = vmul.f32 %v88_v61, %v59_v48  ;;  %v103_v16 = vmul.f32 %v88_v61, %v60_v49  ;;  %v104_v17 = vmul.f32 %v88_v61, %v61_v50  ;;  %v105_v18 = vmul.f32 %v88_v61, %v62_v51 }
  0x83   :  { %v106_v19 = vadd.f32 %v90_v2, %v69_v52  ;;  %v107_v20 = vadd.f32 %v91_v3, %v70_v53  ;;  %v108_v21 = vadd.f32 %v92_v4, %v71_v54  ;;  %v109_v22 = vadd.f32 %v93_v5, %v72_v55 }
  0x84   :  { %v110_v24 = vadd.f32 %v94_v6, %v73_v56  ;;  %v111_v25 = vadd.f32 %v95_v7, %v74_v57  ;;  %v112_v26 = vadd.f32 %v96_v8, %v75_v58  ;;  %v113_v27 = vadd.f32 %v97_v9, %v76_v59 }
  0x85   :  { %v114_v33 = vadd.f32 %v98_v10, %v77_v60  ;;  %v115_v34 = vadd.f32 %v99_v12, %v78_v62  ;;  %v84_v35 = vmul.f32 %v205_v23, %v38_v32  ;;  %v116_v36 = vadd.f32 %v100_v13, %v79_v63 }
  0x86   :  { %v117_v37 = vadd.f32 %v101_v14, %v80_v0  ;;  %v118_v38 = vadd.f32 %v102_v15, %v81_v1  ;;  %v119_v39 = vadd.f32 %v103_v16, %v82_v28  ;;  %v122_v40 = vpack.c.bf16 %v107_v20, %v106_v19 }
  0x87   :  { %v123_v41 = vpack.c.bf16 %v109_v22, %v108_v21  ;;  %v124_v42 = vpack.c.bf16 %v111_v25, %v110_v24  ;;  %v120_v43 = vadd.f32 %v104_v17, %v83_v29  ;;  %v121_v44 = vadd.f32 %v105_v18, %v84_v35 }
  0x88   :  { %v125_v45 = vpack.c.bf16 %v113_v27, %v112_v26  ;;  %v126_v46 = vpack.c.bf16 %v115_v34, %v114_v33  ;;  %130 = vst [vmem:[%s271_s3] sm:$0xff] %v122_v40  ;;  %v127_v30 = vpack.c.bf16 %v117_v37, %v116_v36  ;;  %v128_v11 = vpack.c.bf16 %v119_v39, %v118_v38 }
  0x89   :  { %131 = vst [vmem:[%s271_s3 + $0x8] sm:$0xff] %v123_v41  ;;  %v129_v23 = vpack.c.bf16 %v121_v44, %v120_v43 }
  0x8a   :  { %132 = vst [vmem:[%s271_s3 + $0x10] sm:$0xff] %v124_v42 }
  0x8b   :  { %133 = vst [vmem:[%s271_s3 + $0x18] sm:$0xff] %v125_v45 }
  0x8c   :  { %134 = vst [vmem:[%s271_s3 + $0x20] sm:$0xff] %v126_v46 }
  0x8d   :  { %135 = vst [vmem:[%s271_s3 + $0x28] sm:$0xff] %v127_v30 }
  0x8e   :  { %136 = vst [vmem:[%s271_s3 + $0x30] sm:$0xff] %v128_v11 }
  0x8f   :  { %137 = vst [vmem:[%s271_s3 + $0x38] sm:$0xff] %v129_v23 }

// kernel: skip_connection_forward.18
= control target key start
LH: loop header
LB: loop body
LE: loop exit
PB: predicated region body
PF: predicated region fallthrough
CT: control target
= control target key end

     0   :  { %s828_s12 = smov 0   ;;  %s830_s13 = smov 0   ;;  %s1393_s0 = inlined_call_operand.vmem [shape: bf16[2,8,4096], index: 0, kind: input, shape index: {}]   ;;  %s1394_s1 = inlined_call_operand.vmem [shape: bf16[2,8,4096], index: 1, kind: input, shape index: {}]   ;;  %s1395_s2 = inlined_call_operand.vmem [shape: f32[8,1], index: 2, kind: input, shape index: {}]   ;;  %s1396_s3 = inlined_call_operand.vmem [shape: bf16[2,8,4096], index: 3, kind: output, shape index: {}]  }
   0x1   :  { %s832_s14 = smov 0   ;;  %s834_s15 = smov 0  }
   0x2   :  { %s836_s16 = smov 0  }
   0x3 LB: > { %s22_s17 = sadd.s32 1, %s801_s15  ;;  %s703_s18 = sadd.s32 4294967295, %s805_s16   ;;  %s805_s16 = sphi %s836_s16, %s13_s16   ;;  %s801_s15 = sphi %s834_s15, %s1469_s15   ;;  %s797_s14 = sphi %s832_s14, %s1468_s14   ;;  %s793_s13 = sphi %s830_s13, %s1467_s13   ;;  %s789_s12 = sphi %s828_s12, %s1466_s12  }
   0x4   : > { %p23_p0 = scmp.ge.s32.totalorder %s22_s17, 2  ;;  %p41_p1 = scmp.ne.s32.totalorder %s793_s13, %s789_s12 }
   0x5   : > { %p42_p2 = scmp.eq.s32.totalorder %s805_s16, 0  ;;  %p122_p4 = scmp.eq.s32.totalorder %s703_s18, 1 }
   0x6   : > { %s1471_s17 = smov (%p23_p0, %s22_s17), 0  ;;  %s34_s21 = sadd.s32 1, %s793_s13 }
   0x7   : > { %p860_p3 = por %p42_p2, %p41_p1  ;;  %s30_s20 = ssub.s32 %s801_s15, %s1471_s17 }
   0x8   : > { %p32_p5 = scmp.eq.s32.totalorder %s30_s20, 0  ;;  %p867_p6 = por %p122_p4, %p41_p1 }
   0x9   : > { %p706_p7 = scmp.ge.s32.totalorder %s805_s16, 2 }
   0xa   : > { %s872_s23 = scalar_select %p32_p5, %s793_s13, %s34_s21  }
   0xb   : > { %147 = sbr.rel (%p706_p7) target bundleno = 56 (0x38), region = 20 }
  0x10   : > { %150 = sbr.rel (!%p860_p3) target bundleno = 36 (0x24), region = 24  ;;  %s152_s24 = sand.u32 (%p860_p3), 1, %s793_s13  }
  0x11   : > { %s722_s25 = sshll.u32 (%p860_p3), %s801_s15, 6  ;;  %s707_s26 = sshll.u32 (%p860_p3), %s152_s24, 7 }
  0x12   : > { %s882_s29 = scalar_lea.vmem (%p860_p3), %s1393_s0, %s722_s25  ;;  %s154_s30 = scalar_lea.vmem (%p860_p3), [#allocation2], %s707_s26 }
  0x13   : > { %v173_v0 = vld [vmem:[%s882_s29] sm:$0xff] (%p860_p3)  ;;  %v175_v1 = vld [vmem:[%s882_s29 + $0x8] sm:$0xff] (%p860_p3)  ;;  %v177_v2 = vld [vmem:[%s882_s29 + $0x10] sm:$0xff] (%p860_p3) }
  0x14   : > { %174 = vst [vmem:[%s154_s30] sm:$0xff] (%p860_p3), %v173_v0  ;;  %v179_v3 = vld [vmem:[%s882_s29 + $0x18] sm:$0xff] (%p860_p3)  ;;  %v181_v4 = vld [vmem:[%s882_s29 + $0x20] sm:$0xff] (%p860_p3)  ;;  %v183_v5 = vld [vmem:[%s882_s29 + $0x28] sm:$0xff] (%p860_p3) }
  0x15   : > { %176 = vst [vmem:[%s154_s30 + $0x8] sm:$0xff] %v175_v1  ;;  %v185_v6 = vld [vmem:[%s882_s29 + $0x30] sm:$0xff]  ;;  %v187_v7 = vld [vmem:[%s882_s29 + $0x38] sm:$0xff]  ;;  %v189_v8 = vld [vmem:[%s882_s29 + $0x80] sm:$0xff] }
  0x16   : > { %178 = vst [vmem:[%s154_s30 + $0x10] sm:$0xff] %v177_v2  ;;  %v191_v9 = vld [vmem:[%s882_s29 + $0x88] sm:$0xff]  ;;  %v193_v10 = vld [vmem:[%s882_s29 + $0x90] sm:$0xff]  ;;  %v195_v11 = vld [vmem:[%s882_s29 + $0x98] sm:$0xff] }
  0x17   : > { %180 = vst [vmem:[%s154_s30 + $0x18] sm:$0xff] %v179_v3  ;;  %v197_v12 = vld [vmem:[%s882_s29 + $0xa0] sm:$0xff]  ;;  %v199_v13 = vld [vmem:[%s882_s29 + $0xa8] sm:$0xff]  ;;  %v201_v14 = vld [vmem:[%s882_s29 + $0xb0] sm:$0xff] }
  0x18   : > { %182 = vst [vmem:[%s154_s30 + $0x20] sm:$0xff] %v181_v4  ;;  %v203_v15 = vld [vmem:[%s882_s29 + $0xb8] sm:$0xff] }
  0x19   : > { %184 = vst [vmem:[%s154_s30 + $0x28] sm:$0xff] %v183_v5 }
  0x1a   : > { %186 = vst [vmem:[%s154_s30 + $0x30] sm:$0xff] %v185_v6 }
  0x1b   : > { %188 = vst [vmem:[%s154_s30 + $0x38] sm:$0xff] %v187_v7 }
  0x1c   : > { %190 = vst [vmem:[%s154_s30 + $0x40] sm:$0xff] %v189_v8 }
  0x1d   : > { %192 = vst [vmem:[%s154_s30 + $0x48] sm:$0xff] %v191_v9 }
  0x1e   : > { %194 = vst [vmem:[%s154_s30 + $0x50] sm:$0xff] %v193_v10 }
  0x1f   : > { %196 = vst [vmem:[%s154_s30 + $0x58] sm:$0xff] %v195_v11 }
  0x20   : > { %198 = vst [vmem:[%s154_s30 + $0x60] sm:$0xff] %v197_v12 }
  0x21   : > { %200 = vst [vmem:[%s154_s30 + $0x68] sm:$0xff] %v199_v13 }
  0x22   : > { %202 = vst [vmem:[%s154_s30 + $0x70] sm:$0xff] %v201_v14 }
  0x23   : > { %204 = vst [vmem:[%s154_s30 + $0x78] sm:$0xff] %v203_v15 }
  0x24 PF: > { %210 = sbr.rel (!%p860_p3) target bundleno = 56 (0x38), region = 47  ;;  %s212_s4 = sand.u32 (%p860_p3), 1, %s793_s13  }
  0x25   : > { %s723_s5 = sshll.u32 (%p860_p3), %s801_s15, 6  ;;  %s710_s6 = sshll.u32 (%p860_p3), %s212_s4, 7 }
  0x26   : > { %s907_s9 = scalar_lea.vmem (%p860_p3), %s1394_s1, %s723_s5  ;;  %s214_s10 = scalar_lea.vmem (%p860_p3), [#allocation3], %s710_s6 }
  0x27   : > { %v233_v16 = vld [vmem:[%s907_s9] sm:$0xff] (%p860_p3)  ;;  %v235_v17 = vld [vmem:[%s907_s9 + $0x8] sm:$0xff] (%p860_p3)  ;;  %v237_v18 = vld [vmem:[%s907_s9 + $0x10] sm:$0xff] (%p860_p3) }
  0x28   : > { %234 = vst [vmem:[%s214_s10] sm:$0xff] (%p860_p3), %v233_v16  ;;  %v239_v19 = vld [vmem:[%s907_s9 + $0x18] sm:$0xff] (%p860_p3)  ;;  %v241_v20 = vld [vmem:[%s907_s9 + $0x20] sm:$0xff] (%p860_p3)  ;;  %v243_v21 = vld [vmem:[%s907_s9 + $0x28] sm:$0xff] (%p860_p3) }
  0x29   : > { %236 = vst [vmem:[%s214_s10 + $0x8] sm:$0xff] %v235_v17  ;;  %v245_v22 = vld [vmem:[%s907_s9 + $0x30] sm:$0xff]  ;;  %v247_v23 = vld [vmem:[%s907_s9 + $0x38] sm:$0xff]  ;;  %v249_v24 = vld [vmem:[%s907_s9 + $0x80] sm:$0xff] }
  0x2a   : > { %238 = vst [vmem:[%s214_s10 + $0x10] sm:$0xff] %v237_v18  ;;  %v251_v25 = vld [vmem:[%s907_s9 + $0x88] sm:$0xff]  ;;  %v253_v26 = vld [vmem:[%s907_s9 + $0x90] sm:$0xff]  ;;  %v255_v27 = vld [vmem:[%s907_s9 + $0x98] sm:$0xff] }
  0x2b   : > { %240 = vst [vmem:[%s214_s10 + $0x18] sm:$0xff] %v239_v19  ;;  %v257_v28 = vld [vmem:[%s907_s9 + $0xa0] sm:$0xff]  ;;  %v259_v29 = vld [vmem:[%s907_s9 + $0xa8] sm:$0xff]  ;;  %v261_v30 = vld [vmem:[%s907_s9 + $0xb0] sm:$0xff] }
  0x2c   : > { %242 = vst [vmem:[%s214_s10 + $0x20] sm:$0xff] %v241_v20  ;;  %v263_v31 = vld [vmem:[%s907_s9 + $0xb8] sm:$0xff] }
  0x2d   : > { %244 = vst [vmem:[%s214_s10 + $0x28] sm:$0xff] %v243_v21 }
  0x2e   : > { %246 = vst [vmem:[%s214_s10 + $0x30] sm:$0xff] %v245_v22 }
  0x2f   : > { %248 = vst [vmem:[%s214_s10 + $0x38] sm:$0xff] %v247_v23 }
  0x30   : > { %250 = vst [vmem:[%s214_s10 + $0x40] sm:$0xff] %v249_v24 }
  0x31   : > { %252 = vst [vmem:[%s214_s10 + $0x48] sm:$0xff] %v251_v25 }
  0x32   : > { %254 = vst [vmem:[%s214_s10 + $0x50] sm:$0xff] %v253_v26 }
  0x33   : > { %256 = vst [vmem:[%s214_s10 + $0x58] sm:$0xff] %v255_v27 }
  0x34   : > { %258 = vst [vmem:[%s214_s10 + $0x60] sm:$0xff] %v257_v28 }
  0x35   : > { %260 = vst [vmem:[%s214_s10 + $0x68] sm:$0xff] %v259_v29 }
  0x36   : > { %262 = vst [vmem:[%s214_s10 + $0x70] sm:$0xff] %v261_v30 }
  0x37   : > { %264 = vst [vmem:[%s214_s10 + $0x78] sm:$0xff] %v263_v31 }
  0x38 PF: > { %p713_p8 = scmp.ge.s32.totalorder %s805_s16, 1  ;;  %p269_p9 = scmp.lt.s32.totalorder %s805_s16, 3 }
  0x3a   : > { %p270_p10 = pnand %p713_p8, %p269_p9 }
  0x3c   : > { %273 = sbr.rel (%p270_p10) target bundleno = 241 (0xf1), region = 70 }
  0x41   : > { %v315_v32 = vld [vmem:[%s1395_s2] sm:$0xff]  ;;  %v807_v33 = vmov 0   ;;  %s276_s19 = sand.u32 1, %s789_s12   ;;  %s724_s25 = sshll.u32 (%p867_p6), %s797_s14, 6 }
  0x42   : > { %766 = vset.pattern.permute.xlu0 %v807_v33  ;;  %v412_v34 = vsub.f32 1.0, %v315_v32  ;;  %s931_s20 = sshll.u32 %s276_s19, 7  ;;  %s563_s28 = scalar_lea.vmem (%p867_p6), %s1396_s3, %s724_s25 }
  0x43   : > { %s934_s21 = scalar_lea.vmem [#allocation2], %s931_s20  ;;  %s1007_s12 = scalar_lea.vmem [#allocation3], %s931_s20 }
  0x44   : > { %415 = vperm.xlu0 %766, %v412_v34   ;;  %v937_v35 = vld [vmem:[%s934_s21] sm:$0xff]  ;;  %v940_v36 = vld [vmem:[%s934_s21 + $0x8] sm:$0xff]  ;;  %v943_v37 = vld [vmem:[%s934_s21 + $0x10] sm:$0xff]  ;;  %s1311_s24 = scalar_lea.vmem [#allocation4], %s931_s20 }
  0x45   : > { %v946_v38 = vld [vmem:[%s934_s21 + $0x18] sm:$0xff]  ;;  %v949_v39 = vld [vmem:[%s934_s21 + $0x20] sm:$0xff]  ;;  %v952_v40 = vld [vmem:[%s934_s21 + $0x28] sm:$0xff]  ;;  %v332_v42 = vunpack.c.l.bf16 %v937_v35  ;;  %v333_v43 = vunpack.c.h.bf16 %v937_v35  ;;  %v334_v46 = vunpack.c.l.bf16 %v940_v36  ;;  %v335_v47 = vunpack.c.h.bf16 %v940_v36 }
  0x46   : > { %v955_v41 = vld [vmem:[%s934_s21 + $0x30] sm:$0xff]  ;;  %v960_v44 = vld [vmem:[%s934_s21 + $0x38] sm:$0xff]  ;;  %v963_v45 = vld [vmem:[%s934_s21 + $0x40] sm:$0xff]  ;;  %v336_v48 = vunpack.c.l.bf16 %v943_v37  ;;  %v337_v49 = vunpack.c.h.bf16 %v943_v37  ;;  %v338_v52 = vunpack.c.l.bf16 %v946_v38  ;;  %v339_v53 = vunpack.c.h.bf16 %v946_v38 }
  0x47   : > { %v970_v50 = vld [vmem:[%s934_s21 + $0x48] sm:$0xff]  ;;  %v973_v51 = vld [vmem:[%s934_s21 + $0x50] sm:$0xff]  ;;  %v340_v54 = vunpack.c.l.bf16 %v949_v39  ;;  %v341_v55 = vunpack.c.h.bf16 %v949_v39  ;;  %v980_v56 = vld [vmem:[%s934_s21 + $0x58] sm:$0xff]  ;;  %v342_v58 = vunpack.c.l.bf16 %v952_v40  ;;  %v343_v59 = vunpack.c.h.bf16 %v952_v40 }
  0x48   : > { %v983_v57 = vld [vmem:[%s934_s21 + $0x60] sm:$0xff]  ;;  %v344_v60 = vunpack.c.l.bf16 %v955_v41  ;;  %v345_v61 = vunpack.c.h.bf16 %v955_v41  ;;  %v990_v62 = vld [vmem:[%s934_s21 + $0x68] sm:$0xff]  ;;  %v993_v63 = vld [vmem:[%s934_s21 + $0x70] sm:$0xff]  ;;  %v346_v0 = vunpack.c.l.bf16 %v960_v44  ;;  %v347_v1 = vunpack.c.h.bf16 %v960_v44 }
  0x49   : > { %v348_v2 = vunpack.c.l.bf16 %v963_v45  ;;  %v349_v3 = vunpack.c.h.bf16 %v963_v45  ;;  %v1000_v4 = vld [vmem:[%s934_s21 + $0x78] sm:$0xff]  ;;  %v350_v5 = vunpack.c.l.bf16 %v970_v50  ;;  %v351_v6 = vunpack.c.h.bf16 %v970_v50  ;;  %v1010_v9 = vld [vmem:[%s1007_s12] sm:$0xff]  ;;  %v1017_v14 = vld [vmem:[%s1007_s12 + $0x8] sm:$0xff] }
  0x4a   : > { %1403 = vst [vmem:[#allocation5_spill] sm:$0xff] %v1000_v4  ;;  %v352_v7 = vunpack.c.l.bf16 %v973_v51  ;;  %v1020_v15 = vld [vmem:[%s1007_s12 + $0x10] sm:$0xff]  ;;  %v1027_v20 = vld [vmem:[%s1007_s12 + $0x18] sm:$0xff]  ;;  %v1030_v21 = vld [vmem:[%s1007_s12 + $0x20] sm:$0xff]  ;;  %v1405_v45 = vunpack.c.h.bf16 %v973_v51  ;;  %v1408_v50 = vunpack.c.h.bf16 %v980_v56  ;;  %v1412_v51 = vunpack.c.h.bf16 %v983_v57 }
  0x4b   : > { %v1035_v24 = vld [vmem:[%s1007_s12 + $0x28] sm:$0xff]  ;;  %v1038_v25 = vld [vmem:[%s1007_s12 + $0x30] sm:$0xff]  ;;  %v1043_v28 = vld [vmem:[%s1007_s12 + $0x38] sm:$0xff]  ;;  %v1427_v22 = vunpack.c.h.bf16 %v1020_v15  ;;  %v1429_v18 = vunpack.c.h.bf16 %v1027_v20  ;;  %v1431_v12 = vunpack.c.h.bf16 %v1030_v21 }
  0x4c   : > { %452 = vperm.xlu0 %766, %v315_v32   ;;  %v1046_v29 = vld [vmem:[%s1007_s12 + $0x40] sm:$0xff]  ;;  %v1053_v34 = vld [vmem:[%s1007_s12 + $0x48] sm:$0xff]  ;;  %v1056_v23 = vld [vmem:[%s1007_s12 + $0x50] sm:$0xff]  ;;  %v1433_v26 = vunpack.c.h.bf16 %v1035_v24  ;;  %v1435_v10 = vunpack.c.h.bf16 %v1038_v25 }
  0x4d   : > { %v1065_v19 = vld [vmem:[%s1007_s12 + $0x58] sm:$0xff]  ;;  %v1068_v32 = vld [vmem:[%s1007_s12 + $0x60] sm:$0xff]  ;;  %v1075_v27 = vld [vmem:[%s1007_s12 + $0x68] sm:$0xff] }
  0x4e   : > { %v1078_v16 = vld [vmem:[%s1007_s12 + $0x70] sm:$0xff]  ;;  %v1085_v11 = vld [vmem:[%s1007_s12 + $0x78] sm:$0xff] }
  0xb6   : > { %v1062_v31 = vpop.permute.xlu0 %415 }
  0xb7   : > { %1404 = vst [vmem:[#allocation6_spill] sm:$0xff] %v1062_v31  ;;  %v418_v30 = vmul.f32 %v1062_v31, %v332_v42  ;;  %v419_v13 = vmul.f32 %v1062_v31, %v333_v43  ;;  %v420_v8 = vmul.f32 %v1062_v31, %v334_v46  ;;  %v421_v17 = vmul.f32 %v1062_v31, %v335_v47 }
  0xb8   : > { %v422_v33 = vmul.f32 %v1062_v31, %v336_v48  ;;  %v423_v42 = vmul.f32 %v1062_v31, %v337_v49  ;;  %v424_v35 = vmul.f32 %v1062_v31, %v338_v52  ;;  %v425_v43 = vmul.f32 %v1062_v31, %v339_v53 }
  0xb9   : > { %v426_v36 = vmul.f32 %v1062_v31, %v340_v54  ;;  %v427_v46 = vmul.f32 %v1062_v31, %v341_v55  ;;  %v428_v37 = vmul.f32 %v1062_v31, %v342_v58  ;;  %v429_v47 = vmul.f32 %v1062_v31, %v343_v59 }
  0xba   : > { %v430_v38 = vmul.f32 %v1062_v31, %v344_v60  ;;  %v431_v48 = vmul.f32 %v1062_v31, %v345_v61  ;;  %v432_v39 = vmul.f32 %v1062_v31, %v346_v0  ;;  %v433_v49 = vmul.f32 %v1062_v31, %v347_v1 }
  0xbb   : > { %v1152_v40 = vmul.f32 %v1062_v31, %v348_v2  ;;  %v1157_v52 = vmul.f32 %v1062_v31, %v349_v3  ;;  %v1164_v53 = vmul.f32 %v1062_v31, %v350_v5  ;;  %v1169_v44 = vmul.f32 %v1062_v31, %v351_v6 }
  0xbc   : > { %v1174_v54 = vmul.f32 %v1062_v31, %v352_v7  ;;  %v1179_v55 = vmul.f32 %v1062_v31, %v1405_v45  ;;  %v1406_v58 = vunpack.c.l.bf16 %v980_v56  ;;  %v1189_v60 = vmul.f32 %v1062_v31, %v1408_v50 }
  0xbd   : > { %v1410_v61 = vunpack.c.l.bf16 %v983_v57  ;;  %v1199_v1 = vmul.f32 %v1062_v31, %v1412_v51  ;;  %v1414_v2 = vunpack.c.l.bf16 %v990_v62  ;;  %v1416_v56 = vunpack.c.h.bf16 %v990_v62 }
  0xbe   : > { %v1159_v41 = vpop.permute.xlu0 %452  ;;  %v1184_v59 = vmul.f32 %v1062_v31, %v1406_v58  ;;  %1409 = vst [vmem:[#allocation8_spill] sm:$0xff] %v1189_v60  ;;  %v1418_v6 = vunpack.c.l.bf16 %v993_v63  ;;  %v1420_v57 = vunpack.c.h.bf16 %v993_v63  ;;  %v1422_v58 = vunpack.c.l.bf16 %v1010_v9 }
  0xbf   : > { %v1194_v0 = vmul.f32 %v1062_v31, %v1410_v61  ;;  %1413 = vst [vmem:[#allocation10_spill] sm:$0xff] %v1199_v1  ;;  %v1204_v3 = vmul.f32 %v1062_v31, %v1414_v2  ;;  %v1209_v5 = vmul.f32 %v1062_v31, %v1416_v56  ;;  %v1423_v61 = vunpack.c.h.bf16 %v1010_v9 }
  0xc0   : > { %1407 = vst [vmem:[#allocation7_spill] sm:$0xff] %v1184_v59  ;;  %v1214_v7 = vmul.f32 %v1062_v31, %v1418_v6  ;;  %v1219_v45 = vmul.f32 %v1062_v31, %v1420_v57  ;;  %v455_v50 = vmul.f32 %v1159_v41, %v1422_v58  ;;  %v1424_v51 = vunpack.c.l.bf16 %v1017_v14 }
  0xc1   : > { %1411 = vst [vmem:[#allocation9_spill] sm:$0xff] %v1194_v0  ;;  %v456_v62 = vmul.f32 %v1159_v41, %v1423_v61  ;;  %v1425_v56 = vunpack.c.h.bf16 %v1017_v14  ;;  %v1426_v63 = vunpack.c.l.bf16 %v1020_v15  ;;  %v460_v58 = vmul.f32 %v1159_v41, %v1427_v22 }
  0xc2   : > { %1415 = vst [vmem:[#allocation11_spill] sm:$0xff] %v1204_v3  ;;  %v457_v2 = vmul.f32 %v1159_v41, %v1424_v51  ;;  %v1428_v9 = vunpack.c.l.bf16 %v1027_v20  ;;  %v462_v51 = vmul.f32 %v1159_v41, %v1429_v18  ;;  %v1430_v14 = vunpack.c.l.bf16 %v1030_v21 }
  0xc3   : > { %1417 = vst [vmem:[#allocation12_spill] sm:$0xff] %v1209_v5  ;;  %v458_v6 = vmul.f32 %v1159_v41, %v1425_v56  ;;  %v459_v57 = vmul.f32 %v1159_v41, %v1426_v63  ;;  %v464_v63 = vmul.f32 %v1159_v41, %v1431_v12  ;;  %v1432_v15 = vunpack.c.l.bf16 %v1035_v24 }
  0xc4   : > { %1419 = vst [vmem:[#allocation13_spill] sm:$0xff] %v1214_v7  ;;  %v461_v61 = vmul.f32 %v1159_v41, %v1428_v9  ;;  %v463_v56 = vmul.f32 %v1159_v41, %v1430_v14  ;;  %v466_v9 = vmul.f32 %v1159_v41, %v1433_v26  ;;  %v1434_v20 = vunpack.c.l.bf16 %v1038_v25 }
  0xc5   : > { %1421 = vst [vmem:[#allocation14_spill] sm:$0xff] %v1219_v45  ;;  %v465_v22 = vmul.f32 %v1159_v41, %v1432_v15  ;;  %v468_v14 = vmul.f32 %v1159_v41, %v1435_v10  ;;  %v1436_v21 = vunpack.c.l.bf16 %v1043_v28  ;;  %v1437_v45 = vunpack.c.h.bf16 %v1043_v28 }
  0xc6   : > { %v467_v18 = vmul.f32 %v1159_v41, %v1434_v20  ;;  %v1438_v24 = vunpack.c.l.bf16 %v1046_v29  ;;  %v1439_v7 = vunpack.c.h.bf16 %v1046_v29  ;;  %v1440_v25 = vunpack.c.l.bf16 %v1053_v34 }
  0xc7   : > { %v469_v12 = vmul.f32 %v1159_v41, %v1436_v21  ;;  %v470_v15 = vmul.f32 %v1159_v41, %v1437_v45  ;;  %v1441_v5 = vunpack.c.h.bf16 %v1053_v34  ;;  %v1442_v28 = vunpack.c.l.bf16 %v1056_v23 }
  0xc8   : > { %v471_v26 = vmul.f32 %v1159_v41, %v1438_v24  ;;  %v472_v20 = vmul.f32 %v1159_v41, %v1439_v7  ;;  %v473_v10 = vmul.f32 %v1159_v41, %v1440_v25  ;;  %v1443_v3 = vunpack.c.h.bf16 %v1056_v23 }
  0xc9   : > { %v474_v21 = vmul.f32 %v1159_v41, %v1441_v5  ;;  %v475_v45 = vmul.f32 %v1159_v41, %v1442_v28  ;;  %v487_v1 = vadd.f32 %v455_v50, %v418_v30  ;;  %v488_v29 = vadd.f32 %v456_v62, %v419_v13 }
  0xca   : > { %v476_v24 = vmul.f32 %v1159_v41, %v1443_v3  ;;  %v489_v0 = vadd.f32 %v457_v2, %v420_v8  ;;  %v490_v7 = vadd.f32 %v458_v6, %v421_v17  ;;  %v491_v31 = vadd.f32 %v459_v57, %v422_v33 }
  0xcb   : > { %v492_v4 = vadd.f32 %v460_v58, %v423_v42  ;;  %v1444_v25 = vunpack.c.l.bf16 %v1065_v19  ;;  %v1445_v5 = vunpack.c.h.bf16 %v1065_v19  ;;  %v493_v59 = vadd.f32 %v461_v61, %v424_v35 }
  0xcc   : > { %v494_v28 = vadd.f32 %v462_v51, %v425_v43  ;;  %v1446_v23 = vunpack.c.l.bf16 %v1068_v32  ;;  %v1447_v13 = vunpack.c.h.bf16 %v1068_v32  ;;  %v495_v17 = vadd.f32 %v463_v56, %v426_v36 }
  0xcd   : > { %v477_v34 = vmul.f32 %v1159_v41, %v1444_v25  ;;  %v478_v60 = vmul.f32 %v1159_v41, %v1445_v5  ;;  %v496_v30 = vadd.f32 %v464_v63, %v427_v46  ;;  %v1448_v33 = vunpack.c.l.bf16 %v1075_v27  ;;  %v1465_v25 = vld [vmem:[#allocation14_spill] sm:$0xff] }
  0xce   : > { %v479_v3 = vmul.f32 %v1159_v41, %v1446_v23  ;;  %v480_v8 = vmul.f32 %v1159_v41, %v1447_v13  ;;  %v497_v19 = vadd.f32 %v465_v22, %v428_v37  ;;  %v498_v50 = vadd.f32 %v466_v9, %v429_v47  ;;  %v1456_v9 = vld [vmem:[#allocation5_spill] sm:$0xff] }
  0xcf   : > { %v481_v42 = vmul.f32 %v1159_v41, %v1448_v33  ;;  %v499_v62 = vadd.f32 %v467_v18, %v430_v38  ;;  %v500_v35 = vadd.f32 %v468_v14, %v431_v48  ;;  %v519_v43 = vpack.c.bf16 %v488_v29, %v487_v1  ;;  %v1455_v1 = vld [vmem:[#allocation8_spill] sm:$0xff]  ;;  %v1458_v14 = vld [vmem:[#allocation6_spill] sm:$0xff]  ;;  %v1464_v29 = vld [vmem:[#allocation13_spill] sm:$0xff] }
  0xd0   : > { %v520_v2 = vpack.c.bf16 %v490_v7, %v489_v0  ;;  %v521_v6 = vpack.c.bf16 %v492_v4, %v491_v31  ;;  %v1449_v57 = vunpack.c.h.bf16 %v1075_v27  ;;  %v501_v58 = vadd.f32 %v469_v12, %v432_v39  ;;  %v1454_v0 = vld [vmem:[#allocation7_spill] sm:$0xff]  ;;  %v1459_v12 = vld [vmem:[#allocation9_spill] sm:$0xff] }
  0xd1   : > { %v502_v61 = vadd.f32 %v470_v15, %v433_v49  ;;  %v522_v36 = vpack.c.bf16 %v494_v28, %v493_v59  ;;  %v1450_v46 = vunpack.c.l.bf16 %v1078_v16  ;;  %v503_v56 = vadd.f32 %v471_v26, %v1152_v40  ;;  %535 = vst [vmem:[%s1311_s24] sm:$0xff] %v519_v43  ;;  %v1460_v15 = vld [vmem:[#allocation10_spill] sm:$0xff] }
  0xd2   : > { %v482_v32 = vmul.f32 %v1159_v41, %v1449_v57  ;;  %v504_v37 = vadd.f32 %v472_v20, %v1157_v52  ;;  %v523_v47 = vpack.c.bf16 %v496_v30, %v495_v17  ;;  %v1451_v4 = vunpack.c.h.bf16 %v1078_v16  ;;  %536 = vst [vmem:[%s1311_s24 + $0x8] sm:$0xff] %v520_v2 }
  0xd3   : > { %v483_v51 = vmul.f32 %v1159_v41, %v1450_v46  ;;  %v505_v31 = vadd.f32 %v473_v10, %v1164_v53  ;;  %v506_v38 = vadd.f32 %v474_v21, %v1169_v44  ;;  %v524_v48 = vpack.c.bf16 %v498_v50, %v497_v19  ;;  %537 = vst [vmem:[%s1311_s24 + $0x10] sm:$0xff] %v521_v6  ;;  %v1463_v21 = vld [vmem:[#allocation12_spill] sm:$0xff] }
  0xd4   : > { %v484_v27 = vmul.f32 %v1159_v41, %v1451_v4  ;;  %v1452_v39 = vunpack.c.l.bf16 %v1085_v11  ;;  %v507_v40 = vadd.f32 %v475_v45, %v1174_v54  ;;  %v508_v52 = vadd.f32 %v476_v24, %v1179_v55  ;;  %538 = vst [vmem:[%s1311_s24 + $0x18] sm:$0xff] %v522_v36 }
  0xd5   : > { %v525_v59 = vpack.c.bf16 %v500_v35, %v499_v62  ;;  %v1453_v16 = vunpack.c.h.bf16 %v1085_v11  ;;  %v509_v44 = vadd.f32 %v477_v34, %v1454_v0  ;;  %v510_v63 = vadd.f32 %v478_v60, %v1455_v1  ;;  %539 = vst [vmem:[%s1311_s24 + $0x20] sm:$0xff] %v523_v47  ;;  %v1462_v60 = vld [vmem:[#allocation11_spill] sm:$0xff] }
  0xd6   : > { %v485_v49 = vmul.f32 %v1159_v41, %v1452_v39  ;;  %v526_v22 = vpack.c.bf16 %v502_v61, %v501_v58  ;;  %v1457_v18 = vunpack.c.l.bf16 %v1456_v9  ;;  %v511_v55 = vadd.f32 %v479_v3, %v1459_v12  ;;  %540 = vst [vmem:[%s1311_s24 + $0x28] sm:$0xff] %v524_v48 }
  0xd7   : > { %v486_v53 = vmul.f32 %v1159_v41, %v1453_v16  ;;  %v512_v26 = vadd.f32 %v480_v8, %v1460_v15  ;;  %v527_v20 = vpack.c.bf16 %v504_v37, %v503_v56  ;;  %v1461_v11 = vunpack.c.h.bf16 %v1456_v9  ;;  %541 = vst [vmem:[%s1311_s24 + $0x30] sm:$0xff] %v525_v59 }
  0xd8   : > { %v448_v54 = vmul.f32 %v1458_v14, %v1457_v18  ;;  %v513_v10 = vadd.f32 %v481_v42, %v1462_v60  ;;  %v514_v45 = vadd.f32 %v482_v32, %v1463_v21  ;;  %v528_v24 = vpack.c.bf16 %v506_v38, %v505_v31  ;;  %542 = vst [vmem:[%s1311_s24 + $0x38] sm:$0xff] %v526_v22  ;;  %v576_v33 = vld [vmem:[%s1311_s24] sm:$0xff] (%p867_p6) }
  0xd9   : > { %v449_v41 = vmul.f32 %v1458_v14, %v1461_v11  ;;  %v515_v7 = vadd.f32 %v483_v51, %v1464_v29  ;;  %v516_v34 = vadd.f32 %v484_v27, %v1465_v25  ;;  %v529_v5 = vpack.c.bf16 %v508_v52, %v507_v40  ;;  %543 = vst [vmem:[%s1311_s24 + $0x40] sm:$0xff] %v527_v20  ;;  %v578_v42 = vld [vmem:[%s1311_s24 + $0x8] sm:$0xff] (%p867_p6) }
  0xda   : > { %v517_v28 = vadd.f32 %v485_v49, %v448_v54  ;;  %v530_v3 = vpack.c.bf16 %v510_v63, %v509_v44  ;;  %v531_v13 = vpack.c.bf16 %v512_v26, %v511_v55  ;;  %v532_v8 = vpack.c.bf16 %v514_v45, %v513_v10  ;;  %544 = vst [vmem:[%s1311_s24 + $0x48] sm:$0xff] %v528_v24  ;;  %v580_v19 = vld [vmem:[%s1311_s24 + $0x10] sm:$0xff] (%p867_p6) }
  0xdb   : > { %v518_v23 = vadd.f32 %v486_v53, %v449_v41  ;;  %v533_v17 = vpack.c.bf16 %v516_v34, %v515_v7  ;;  %545 = vst [vmem:[%s1311_s24 + $0x50] sm:$0xff] %v529_v5  ;;  %v582_v50 = vld [vmem:[%s1311_s24 + $0x18] sm:$0xff] (%p867_p6) }
  0xdc   : > { %546 = vst [vmem:[%s1311_s24 + $0x58] sm:$0xff] %v530_v3  ;;  %557 = sbr.rel (!%p867_p6) target bundleno = 241 (0xf1), region = 82  ;;  %v584_v62 = vld [vmem:[%s1311_s24 + $0x20] sm:$0xff] (%p867_p6) }
  0xdd   : > { %v534_v30 = vpack.c.bf16 %v518_v23, %v517_v28  ;;  %547 = vst [vmem:[%s1311_s24 + $0x60] sm:$0xff] %v531_v13  ;;  %v586_v35 = vld [vmem:[%s1311_s24 + $0x28] sm:$0xff] (%p867_p6) }
  0xde   : > { %548 = vst [vmem:[%s1311_s24 + $0x68] sm:$0xff] %v532_v8  ;;  %v588_v43 = vld [vmem:[%s1311_s24 + $0x30] sm:$0xff] (%p867_p6) }
  0xdf   : > { %549 = vst [vmem:[%s1311_s24 + $0x70] sm:$0xff] %v533_v17  ;;  %v590_v2 = vld [vmem:[%s1311_s24 + $0x38] sm:$0xff] (%p867_p6) }
  0xe0   : > { %550 = vst [vmem:[%s1311_s24 + $0x78] sm:$0xff] %v534_v30  ;;  %v592_v6 = vld [vmem:[%s1311_s24 + $0x40] sm:$0xff] (%p867_p6) }
  0xe1   : > { %577 = vst [vmem:[%s563_s28] sm:$0xff] %v576_v33  ;;  %v594_v57 = vld [vmem:[%s1311_s24 + $0x48] sm:$0xff] }
  0xe2   : > { %579 = vst [vmem:[%s563_s28 + $0x8] sm:$0xff] %v578_v42  ;;  %v596_v32 = vld [vmem:[%s1311_s24 + $0x50] sm:$0xff] }
  0xe3   : > { %581 = vst [vmem:[%s563_s28 + $0x10] sm:$0xff] %v580_v19  ;;  %v598_v58 = vld [vmem:[%s1311_s24 + $0x58] sm:$0xff] }
  0xe4   : > { %583 = vst [vmem:[%s563_s28 + $0x18] sm:$0xff] %v582_v50  ;;  %v600_v61 = vld [vmem:[%s1311_s24 + $0x60] sm:$0xff] }
  0xe5   : > { %585 = vst [vmem:[%s563_s28 + $0x20] sm:$0xff] %v584_v62  ;;  %v602_v36 = vld [vmem:[%s1311_s24 + $0x68] sm:$0xff] }
  0xe6   : > { %587 = vst [vmem:[%s563_s28 + $0x28] sm:$0xff] %v586_v35  ;;  %v604_v46 = vld [vmem:[%s1311_s24 + $0x70] sm:$0xff] }
  0xe7   : > { %589 = vst [vmem:[%s563_s28 + $0x30] sm:$0xff] %v588_v43  ;;  %v606_v51 = vld [vmem:[%s1311_s24 + $0x78] sm:$0xff] }
  0xe8   : > { %591 = vst [vmem:[%s563_s28 + $0x38] sm:$0xff] %v590_v2 }
  0xe9   : > { %593 = vst [vmem:[%s563_s28 + $0x80] sm:$0xff] %v592_v6 }
  0xea   : > { %595 = vst [vmem:[%s563_s28 + $0x88] sm:$0xff] %v594_v57 }
  0xeb   : > { %597 = vst [vmem:[%s563_s28 + $0x90] sm:$0xff] %v596_v32 }
  0xec   : > { %599 = vst [vmem:[%s563_s28 + $0x98] sm:$0xff] %v598_v58 }
  0xed   : > { %601 = vst [vmem:[%s563_s28 + $0xa0] sm:$0xff] %v600_v61 }
  0xee   : > { %603 = vst [vmem:[%s563_s28 + $0xa8] sm:$0xff] %v602_v36 }
  0xef   : > { %605 = vst [vmem:[%s563_s28 + $0xb0] sm:$0xff] %v604_v46 }
  0xf0   : > { %607 = vst [vmem:[%s563_s28 + $0xb8] sm:$0xff] %v606_v51 }
  0xf1 PF: > { %s13_s16 = sadd.s32 1, %s805_s16   ;;  %s1466_s12 = smov %s793_s13 }
  0xf2   : > { %p10_p11 = scmp.ge.s32.totalorder %s13_s16, 4   ;;  %s1467_s13 = smov %s872_s23 }
  0xf3   : > { %s1468_s14 = smov %s801_s15  ;;  %s1469_s15 = smov %s1471_s17 }
  0xf4   :  { %12 = sbr.rel (!%p10_p11) target bundleno = 3 (0x3), region = 144 }

// kernel: skip_connection_forward.22
= control target key start
LH: loop header
LB: loop body
LE: loop exit
PB: predicated region body
PF: predicated region fallthrough
CT: control target
= control target key end

     0   :  { %10 = vsyncpa [#allocation3], 0  ;;  %s2619_s0 = inlined_call_operand.vmem [shape: f32[1024,16], index: 0, kind: input, shape index: {}]   ;;  %s2620_s1 = inlined_call_operand.vmem [shape: bf16[1024,32], index: 1, kind: input, shape index: {}]   ;;  %s2621_s2 = inlined_call_operand.vmem [shape: bf16[32,16], index: 2, kind: input, shape index: {}]   ;;  %s2622_s3 = inlined_call_operand.vmem [shape: bf16[1024,64], index: 3, kind: input, shape index: {}]   ;;  %s2623_s4 = inlined_call_operand.vmem [shape: bf16[64,16], index: 4, kind: input, shape index: {}]   ;;  %s2624_s5 = inlined_call_operand.hbm [shape: f32[1024,16], index: 5, kind: output, shape index: {}]  }
   0x1   :  { %12 = vsyncpa [#allocation3 + $0x1], 0  ;;  %s2168_s18 = smov 0   ;;  %s2170_s19 = smov 0  }
   0x2   :  { %s2172_s20 = smov 0   ;;  %s2174_s21 = smov 0  }
   0x3 LB: > { %s2189_s22 = sadd.s32 4294967295, %s2134_s21   ;;  %s1594_s23 = sadd.s32 4294967294, %s2134_s21   ;;  %s2134_s21 = sphi %s2174_s21, %s2630_s21   ;;  %s2130_s20 = sphi %s2172_s20, %s2629_s20   ;;  %s2126_s19 = sphi %s2170_s19, %s2628_s19   ;;  %s2122_s18 = sphi %s2168_s18, %s2627_s18  }
   0x4   : > { %s2193_s24 = sadd.s32 1, %s2134_s21   ;;  %s145_s25 = sadd.s32 1, %s2130_s20 }
   0x5   : > { %s142_s26 = ssub.s32 %s2134_s21, %s2193_s24  ;;  %p155_p0 = scmp.ne.s32.totalorder %s2130_s20, %s2126_s19 }
   0x6   : > { %p143_p1 = scmp.eq.s32.totalorder %s142_s26, 0  ;;  %p156_p2 = scmp.eq.s32.totalorder %s2189_s22, 1 }
   0x7   : > { %p161_p3 = scmp.ne.s32.totalorder %s2126_s19, %s2122_s18  ;;  %p162_p4 = scmp.eq.s32.totalorder %s1594_s23, 1 }
   0x8   : > { %s2204_s27 = scalar_select %p143_p1, %s2130_s20, %s145_s25  }
   0x9   : > { %p2206_p5 = por %p156_p2, %p155_p0  ;;  %p2210_p6 = por %p162_p4, %p161_p3 }
   0xa   : > { %p1597_p7 = scmp.ge.s32.totalorder %s2134_s21, 1  ;;  %p213_p8 = scmp.lt.s32.totalorder %s2134_s21, 3 }
   0xc   : > { %p214_p9 = pnand %p1597_p7, %p213_p8 }
   0xd   : > { %s1599_s9 = sshll.u32 (!%p214_p9), %s2189_s22, 6  ;;  %s248_s11 = sand.u32 (!%p214_p9), 1, %s2126_s19  }
   0xe   : > { %217 = sbr.rel (%p214_p9) target bundleno = 426 (0x1aa), region = 40  ;;  %p252_p10 = scmp.lt.s32.totalorder (!%p214_p9), %s1599_s9, 127 }
   0xf   : > { %s1598_s15 = sshll.u32 (!%p214_p9), %s248_s11, 9  ;;  %s2024_s16 = sshll.u32 (!%p214_p9), %s2189_s22, 9 }
  0x10   : > { %s1504_s25 = scalar_lea.hbm (!%p214_p9), %s2624_s5, %s2024_s16  ;;  %s1493_s30 = scalar_lea.sflag (!%p214_p9), [#allocation3], %s248_s11 }
  0x11   : > { %s1507_s26 = sshll.u32 (!%p214_p9), %s1504_s25, 4  ;;  %s2092_s12 = scalar_lea.hbm (!%p214_p9), %s2624_s5, 1024  ;;  %s1508_s26 = int_to_ptr.hbm [resolvable:$true] %s1507_s26 }
  0x12   : > { %s2086_s6 = sshra.s32 (!%p214_p9), %s1508_s26, 4  ;;  %s2087_s6 = int_to_ptr.hbm [resolvable:$true] %s2086_s6 }
  0x13   : > { %v2023_v0 = vld [vmem:[%s2623_s4 + $0x18] sm:$0xff]  ;;  %v1987_v1 = vld [vmem:[%s2621_s2 + $0x8] sm:$0xff]  ;;  %v2022_v2 = vld [vmem:[%s2623_s4 + $0x10] sm:$0xff]  ;;  %s2632_s9 = smov (!%p252_p10, %s1599_s9), 127  ;;  %vm1033_vm0 = vcmask 261120   ;;  %vm595_vm1 = vcmask 523264   ;;  %p2093_p0 = scmp.lt.s32.totalorder %s2087_s6, %s2624_s5 }
  0x14   : > { %696 = vmatpush.bf16.msra.mxu0 %v2023_v0  ;;  %2025 = vmatpush.bf16.msra.mxu2 %v2023_v0  ;;  %v1986_v3 = vld [vmem:[%s2621_s2] sm:$0xff]  ;;  %s1602_s14 = sshll.u32 %s2632_s9, 2  ;;  %v2021_v4 = vld [vmem:[%s2623_s4 + $0x8] sm:$0xff]  ;;  %s1600_s10 = sshll.u32 %s2632_s9, 3  ;;  %vm1427_vm2 = vcmask 130048  }
  0x15   : > { %1136 = vmatpush.bf16.msra.mxu1 %v1987_v1  ;;  %2029 = vmatpush.bf16.msra.mxu3 %v1987_v1  ;;  %s2235_s17 = scalar_lea.vmem %s2620_s1, %s1602_s14  ;;  %v2020_v7 = vld [vmem:[%s2623_s4] sm:$0xff]  ;;  %s2249_s8 = scalar_lea.vmem %s2622_s3, %s1602_s14 }
  0x16   : > { %v1954_v5 = vld [vmem:[%s2235_s17] sm:$0xff]  ;;  %v1971_v6 = vld [vmem:[%s2235_s17 + $0x88] sm:$0xff]  ;;  %v1972_v11 = vld [vmem:[%s2235_s17 + $0x90] sm:$0xff]  ;;  %s2320_s14 = scalar_lea.vmem %s2619_s0, %s1600_s10  ;;  %s2330_s9 = scalar_lea.vmem [#allocation2], %s1598_s15 }
  0x17   : > { %v1988_v8 = vld [vmem:[%s2249_s8] sm:$0xff]  ;;  %v1955_v10 = vld [vmem:[%s2235_s17 + $0x8] sm:$0xff]  ;;  %v1956_v14 = vld [vmem:[%s2235_s17 + $0x10] sm:$0xff]  ;;  %s1505_s22 = sshll.u32 %s2330_s9, 4  ;;  %s2088_s7 = scalar_lea.hbm %s2087_s6, 512  ;;  %s1506_s22 = int_to_ptr.vmem [resolvable:$true] %s1505_s22 }
  0x18   : > { %697 = vmatpush.bf16.msra.mxu0 %v2022_v2  ;;  %2026 = vmatpush.bf16.msra.mxu2 %v2022_v2  ;;  %v2004_v9 = vld [vmem:[%s2249_s8 + $0x80] sm:$0xff]  ;;  %v1989_v12 = vld [vmem:[%s2249_s8 + $0x8] sm:$0xff]  ;;  %v1973_v15 = vld [vmem:[%s2235_s17 + $0x98] sm:$0xff]  ;;  %p2089_p11 = scmp.ne.s32.totalorder %s2087_s6, %s2088_s7  ;;  %p2094_p1 = scmp.lt.s32.totalorder %s2092_s12, %s2088_s7 }
  0x19   : > { %1137 = vmatpush.bf16.msra.mxu1 %v1986_v3  ;;  %2030 = vmatpush.bf16.msra.mxu3 %v1986_v3  ;;  %v2005_v13 = vld [vmem:[%s2249_s8 + $0x88] sm:$0xff]  ;;  %v1990_v16 = vld [vmem:[%s2249_s8 + $0x10] sm:$0xff]  ;;  %v1957_v18 = vld [vmem:[%s2235_s17 + $0x18] sm:$0xff] }
  0x1a   : > { %v2006_v17 = vld [vmem:[%s2249_s8 + $0x90] sm:$0xff]  ;;  %v1974_v19 = vld [vmem:[%s2235_s17 + $0xa0] sm:$0xff]  ;;  %v1991_v20 = vld [vmem:[%s2249_s8 + $0x18] sm:$0xff]  ;;  %p2090_p12 = pnand %p2089_p11, %p2206_p5  ;;  %p2095_p2 = por %p2094_p1, %p2093_p0 }
  0x1b   : > { %v2007_v21 = vld [vmem:[%s2249_s8 + $0x98] sm:$0xff]  ;;  %v1958_v22 = vld [vmem:[%s2235_s17 + $0x20] sm:$0xff]  ;;  %v1975_v23 = vld [vmem:[%s2235_s17 + $0xa8] sm:$0xff] }
  0x1c   : > { %1917 = vmatmul.msk.bf16.vlgmr.msra.gmra.mxu1 %vm1033_vm0, %v1954_v5  ;;  %698 = vmatpush.bf16.msra.mxu0 %v2021_v4  ;;  %v1992_v24 = vld [vmem:[%s2249_s8 + $0x20] sm:$0xff]  ;;  %v1959_v26 = vld [vmem:[%s2235_s17 + $0x28] sm:$0xff]  ;;  %v1976_v27 = vld [vmem:[%s2235_s17 + $0xb0] sm:$0xff]  ;;  %p2091_p13 = pneg %p2090_p12 }
  0x1d   : > { %2027 = vmatpush.bf16.msra.mxu2 %v2021_v4  ;;  %1934 = vmatmul.msk.bf16.vlgmr.msra.gmra.mxu3 %vm1033_vm0, %v1971_v6  ;;  %v2008_v25 = vld [vmem:[%s2249_s8 + $0xa0] sm:$0xff]  ;;  %v1993_v28 = vld [vmem:[%s2249_s8 + $0x28] sm:$0xff]  ;;  %v1960_v30 = vld [vmem:[%s2235_s17 + $0x30] sm:$0xff] }
  0x1e   : > { %v2009_v29 = vld [vmem:[%s2249_s8 + $0xa8] sm:$0xff]  ;;  %v1977_v31 = vld [vmem:[%s2235_s17 + $0xb8] sm:$0xff]  ;;  %v1994_v32 = vld [vmem:[%s2249_s8 + $0x30] sm:$0xff]  ;;  %p2096_p3 = pnand %p2095_p2, %p2091_p13 }
  0x1f   : > { %v2010_v33 = vld [vmem:[%s2249_s8 + $0xb0] sm:$0xff]  ;;  %v1961_v34 = vld [vmem:[%s2235_s17 + $0x38] sm:$0xff]  ;;  %v1978_v35 = vld [vmem:[%s2235_s17 + $0xc0] sm:$0xff] }
  0x20   : > { %699 = vmatpush.bf16.msra.mxu0 %v2020_v7  ;;  %v1995_v36 = vld [vmem:[%s2249_s8 + $0x38] sm:$0xff]  ;;  %v1962_v38 = vld [vmem:[%s2235_s17 + $0x40] sm:$0xff]  ;;  %v1979_v40 = vld [vmem:[%s2235_s17 + $0xc8] sm:$0xff] }
  0x21   : > { %2028 = vmatpush.bf16.msra.mxu2 %v2020_v7  ;;  %v2011_v37 = vld [vmem:[%s2249_s8 + $0xb8] sm:$0xff]  ;;  %v1996_v41 = vld [vmem:[%s2249_s8 + $0x40] sm:$0xff]  ;;  %v1300_v51 = vld [vmem:[%s2320_s14 + $0x8] sm:$0xff] }
  0x22   : > { %v1299_v43 = vld [vmem:[%s2320_s14] sm:$0xff]  ;;  %v1963_v52 = vld [vmem:[%s2235_s17 + $0x48] sm:$0xff]  ;;  %v1980_v56 = vld [vmem:[%s2235_s17 + $0xd0] sm:$0xff] }
  0x23   : > { %1749 = vmatmul.msk.bf16.vlgmr.msra.gmra.mxu0 %vm595_vm1, %v1988_v8  ;;  %v2012_v44 = vld [vmem:[%s2249_s8 + $0xc0] sm:$0xff]  ;;  %v1997_v59 = vld [vmem:[%s2249_s8 + $0x48] sm:$0xff]  ;;  %v1301_v61 = vld [vmem:[%s2320_s14 + $0x10] sm:$0xff] }
  0x24   : > { %1765 = vmatmul.msk.bf16.vlgmr.msra.gmra.mxu2 %vm595_vm1, %v2004_v9  ;;  %v2013_v62 = vld [vmem:[%s2249_s8 + $0xc8] sm:$0xff]  ;;  %v1333_v4 = vld [vmem:[%s2320_s14 + $0x110] sm:$0xff]  ;;  %v1302_v7 = vld [vmem:[%s2320_s14 + $0x18] sm:$0xff] }
  0x25   : > { %v1964_v8 = vld [vmem:[%s2235_s17 + $0x50] sm:$0xff] }
  0x2c   : > { %1918 = vmatmul.msk.bf16.gmra.mxu1 %vm1033_vm0, %v1955_v10 }
  0x2d   : > { %1935 = vmatmul.msk.bf16.gmra.mxu3 %vm1033_vm0, %v1972_v11 }
  0x33   : > { %1750 = vmatmul.msk.bf16.gmra.mxu0 %vm595_vm1, %v1989_v12  ;;  %v1981_v12 = vld [vmem:[%s2235_s17 + $0xd8] sm:$0xff] }
  0x34   : > { %1766 = vmatmul.msk.bf16.gmra.mxu2 %vm595_vm1, %v2005_v13 }
  0x3c   : > { %1919 = vmatmul.msk.bf16.gmra.mxu1 %vm1033_vm0, %v1956_v14 }
  0x3d   : > { %1936 = vmatmul.msk.bf16.gmra.mxu3 %vm1033_vm0, %v1973_v15 }
  0x43   : > { %1751 = vmatmul.msk.bf16.gmra.mxu0 %vm595_vm1, %v1990_v16  ;;  %v1334_v16 = vld [vmem:[%s2320_s14 + $0x118] sm:$0xff] }
  0x44   : > { %1767 = vmatmul.msk.bf16.gmra.mxu2 %vm595_vm1, %v2006_v17  ;;  %v1998_v17 = vld [vmem:[%s2249_s8 + $0x50] sm:$0xff] }
  0x4c   : > { %1920 = vmatmul.msk.bf16.gmra.mxu1 %vm1033_vm0, %v1957_v18 }
  0x4d   : > { %1937 = vmatmul.msk.bf16.gmra.mxu3 %vm1033_vm0, %v1974_v19 }
  0x53   : > { %1752 = vmatmul.msk.bf16.gmra.mxu0 %vm595_vm1, %v1991_v20  ;;  %v1303_v20 = vld [vmem:[%s2320_s14 + $0x20] sm:$0xff] }
  0x54   : > { %1768 = vmatmul.msk.bf16.gmra.mxu2 %vm595_vm1, %v2007_v21  ;;  %v2014_v21 = vld [vmem:[%s2249_s8 + $0xd0] sm:$0xff] }
  0x5c   : > { %1921 = vmatmul.msk.bf16.gmra.mxu1 %vm1033_vm0, %v1958_v22 }
  0x5d   : > { %1938 = vmatmul.msk.bf16.gmra.mxu3 %vm1033_vm0, %v1975_v23 }
  0x63   : > { %1753 = vmatmul.msk.bf16.gmra.mxu0 %vm595_vm1, %v1992_v24 }
  0x64   : > { %1769 = vmatmul.msk.bf16.gmra.mxu2 %vm595_vm1, %v2008_v25 }
  0x6c   : > { %1922 = vmatmul.msk.bf16.gmra.mxu1 %vm1033_vm0, %v1959_v26 }
  0x6d   : > { %1939 = vmatmul.msk.bf16.gmra.mxu3 %vm1033_vm0, %v1976_v27 }
  0x73   : > { %1754 = vmatmul.msk.bf16.gmra.mxu0 %vm595_vm1, %v1993_v28  ;;  %v1335_v28 = vld [vmem:[%s2320_s14 + $0x120] sm:$0xff] }
  0x74   : > { %1770 = vmatmul.msk.bf16.gmra.mxu2 %vm595_vm1, %v2009_v29 }
  0x7c   : > { %1923 = vmatmul.msk.bf16.gmra.mxu1 %vm1033_vm0, %v1960_v30 }
  0x7d   : > { %1940 = vmatmul.msk.bf16.gmra.mxu3 %vm1033_vm0, %v1977_v31  ;;  %v1304_v31 = vld [vmem:[%s2320_s14 + $0x28] sm:$0xff] }
  0x83   : > { %1755 = vmatmul.msk.bf16.gmra.mxu0 %vm595_vm1, %v1994_v32  ;;  %v1965_v32 = vld [vmem:[%s2235_s17 + $0x58] sm:$0xff] }
  0x84   : > { %1771 = vmatmul.msk.bf16.gmra.mxu2 %vm595_vm1, %v2010_v33 }
  0x8c   : > { %1924 = vmatmul.msk.bf16.gmra.mxu1 %vm1033_vm0, %v1961_v34 }
  0x8d   : > { %1941 = vmatmul.msk.bf16.gmra.mxu3 %vm1033_vm0, %v1978_v35 }
  0x93   : > { %1756 = vmatmul.msk.bf16.gmra.mxu0 %vm595_vm1, %v1995_v36  ;;  %v1982_v36 = vld [vmem:[%s2235_s17 + $0xe0] sm:$0xff] }
  0x94   : > { %1772 = vmatmul.msk.bf16.gmra.mxu2 %vm595_vm1, %v2011_v37 }
  0x99   : > { %v1139_v39 = vpop.f32.mrf.mxu1 }
  0x9c   : > { %1925 = vmatmul.msk.bf16.gmra.mxu1 %vm1033_vm0, %v1962_v38 }
  0x9d   : > { %1942 = vmatmul.msk.bf16.gmra.mxu3 %vm1033_vm0, %v1979_v40  ;;  %v1336_v40 = vld [vmem:[%s2320_s14 + $0x128] sm:$0xff] }
  0xa0   : > { %v701_v42 = vpop.f32.mrf.mxu0  ;;  %v1224_v45 = vpop.f32.mrf.mxu3 }
  0xa1   : > { %v1140_v46 = vadd.f32 %v1139_v39, %v701_v42  ;;  %v1141_v47 = vpop.f32.mrf.mxu1 }
  0xa3   : > { %v1363_v48 = vadd.f32 %v1299_v43, %v1140_v46  ;;  %1757 = vmatmul.msk.bf16.gmra.mxu0 %vm595_vm1, %v1996_v41  ;;  %v1999_v41 = vld [vmem:[%s2249_s8 + $0x58] sm:$0xff] }
  0xa4   : > { %1773 = vmatmul.msk.bf16.gmra.mxu2 %vm595_vm1, %v2012_v44  ;;  %v1305_v44 = vld [vmem:[%s2320_s14 + $0x30] sm:$0xff] }
  0xa5   : > { %1428 = vst.msk [vmem:[%s2330_s9] sm:$0xff] %vm1427_vm2, %v1363_v48 }
  0xa7   : > { %v2334_v49 = vpop.f32.mrf.mxu2 }
  0xa8   : > { %v703_v50 = vpop.f32.mrf.mxu0  ;;  %v1226_v53 = vpop.f32.mrf.mxu3 }
  0xa9   : > { %v1142_v54 = vadd.f32 %v1141_v47, %v703_v50  ;;  %v1144_v55 = vpop.f32.mrf.mxu1 }
  0xab   : > { %v1364_v57 = vadd.f32 %v1300_v51, %v1142_v54 }
  0xac   : > { %1926 = vmatmul.msk.bf16.gmra.mxu1 %vm1033_vm0, %v1963_v52 }
  0xad   : > { %1429 = vst.msk [vmem:[%s2330_s9 + $0x8] sm:$0xff] %vm1427_vm2, %v1364_v57  ;;  %1943 = vmatmul.msk.bf16.gmra.mxu3 %vm1033_vm0, %v1980_v56  ;;  %v1306_v56 = vld [vmem:[%s2320_s14 + $0x38] sm:$0xff]  ;;  %v1966_v57 = vld [vmem:[%s2235_s17 + $0x60] sm:$0xff] }
  0xaf   : > { %v2343_v58 = vpop.f32.mrf.mxu2 }
  0xb0   : > { %v706_v60 = vpop.f32.mrf.mxu0  ;;  %v1229_v63 = vpop.f32.mrf.mxu3 }
  0xb1   : > { %v1145_v0 = vadd.f32 %v1144_v55, %v706_v60  ;;  %v1146_v1 = vpop.f32.mrf.mxu1 }
  0xb3   : > { %v1365_v2 = vadd.f32 %v1301_v61, %v1145_v0  ;;  %1758 = vmatmul.msk.bf16.gmra.mxu0 %vm595_vm1, %v1997_v59 }
  0xb4   : > { %1774 = vmatmul.msk.bf16.gmra.mxu2 %vm595_vm1, %v2013_v62  ;;  %v1983_v62 = vld [vmem:[%s2235_s17 + $0xe8] sm:$0xff] }
  0xb5   : > { %1430 = vst.msk [vmem:[%s2330_s9 + $0x10] sm:$0xff] %vm1427_vm2, %v1365_v2  ;;  %v1338_v2 = vld [vmem:[%s2320_s14 + $0x138] sm:$0xff] }
  0xb7   : > { %v786_v3 = vpop.f32.mrf.mxu2 }
  0xb8   : > { %v1225_v5 = vadd.f32 %v1224_v45, %v786_v3  ;;  %v708_v6 = vpop.f32.mrf.mxu0  ;;  %v1231_v9 = vpop.f32.mrf.mxu3  ;;  %v2015_v45 = vld [vmem:[%s2249_s8 + $0xd8] sm:$0xff]  ;;  %v2000_v3 = vld [vmem:[%s2249_s8 + $0x60] sm:$0xff] }
  0xb9   : > { %v1147_v10 = vadd.f32 %v1146_v1, %v708_v6  ;;  %v1149_v11 = vpop.f32.mrf.mxu1  ;;  %v1307_v6 = vld [vmem:[%s2320_s14 + $0x40] sm:$0xff] }
  0xba   : > { %v1397_v13 = vadd.f32 %v1333_v4, %v1225_v5 }
  0xbb   : > { %v1366_v14 = vadd.f32 %v1302_v7, %v1147_v10  ;;  %v2016_v7 = vld [vmem:[%s2249_s8 + $0xe0] sm:$0xff] }
  0xbc   : > { %1462 = vst.msk [vmem:[%s2330_s9 + $0x110] sm:$0xff] %vm1427_vm2, %v1397_v13  ;;  %1927 = vmatmul.msk.bf16.gmra.mxu1 %vm1033_vm0, %v1964_v8 }
  0xbd   : > { %1431 = vst.msk [vmem:[%s2330_s9 + $0x18] sm:$0xff] %vm1427_vm2, %v1366_v14  ;;  %1944 = vmatmul.msk.bf16.gmra.mxu3 %vm1033_vm0, %v1981_v12  ;;  %v1339_v14 = vld [vmem:[%s2320_s14 + $0x140] sm:$0xff] }
  0xbf   : > { %v788_v15 = vpop.f32.mrf.mxu2 }
  0xc0   : > { %v1227_v18 = vadd.f32 %v1226_v53, %v788_v15  ;;  %v711_v19 = vpop.f32.mrf.mxu0  ;;  %v1234_v22 = vpop.f32.mrf.mxu3  ;;  %v1337_v53 = vld [vmem:[%s2320_s14 + $0x130] sm:$0xff] }
  0xc1   : > { %v1150_v23 = vadd.f32 %v1149_v11, %v711_v19  ;;  %v1151_v24 = vpop.f32.mrf.mxu1 }
  0xc2   : > { %v1398_v25 = vadd.f32 %v1334_v16, %v1227_v18  ;;  %v1967_v18 = vld [vmem:[%s2235_s17 + $0x68] sm:$0xff] }
  0xc3   : > { %v1367_v26 = vadd.f32 %v1303_v20, %v1150_v23  ;;  %1759 = vmatmul.msk.bf16.gmra.mxu0 %vm595_vm1, %v1998_v17  ;;  %v1308_v17 = vld [vmem:[%s2320_s14 + $0x48] sm:$0xff] }
  0xc4   : > { %1463 = vst.msk [vmem:[%s2330_s9 + $0x118] sm:$0xff] %vm1427_vm2, %v1398_v25  ;;  %1775 = vmatmul.msk.bf16.gmra.mxu2 %vm595_vm1, %v2014_v21 }
  0xc5   : > { %1432 = vst.msk [vmem:[%s2330_s9 + $0x20] sm:$0xff] %vm1427_vm2, %v1367_v26  ;;  %v1340_v26 = vld [vmem:[%s2320_s14 + $0x148] sm:$0xff] }
  0xc7   : > { %v791_v27 = vpop.f32.mrf.mxu2 }
  0xc8   : > { %v1230_v29 = vadd.f32 %v1229_v63, %v791_v27  ;;  %v713_v30 = vpop.f32.mrf.mxu0  ;;  %v1236_v33 = vpop.f32.mrf.mxu3  ;;  %v2001_v27 = vld [vmem:[%s2249_s8 + $0x68] sm:$0xff] }
  0xc9   : > { %v1152_v34 = vadd.f32 %v1151_v24, %v713_v30  ;;  %v1154_v35 = vpop.f32.mrf.mxu1  ;;  %v1309_v30 = vld [vmem:[%s2320_s14 + $0x50] sm:$0xff] }
  0xca   : > { %v1399_v37 = vadd.f32 %v1335_v28, %v1230_v29 }
  0xcb   : > { %v1368_v38 = vadd.f32 %v1304_v31, %v1152_v34  ;;  %v2017_v31 = vld [vmem:[%s2249_s8 + $0xe8] sm:$0xff] }
  0xcc   : > { %1464 = vst.msk [vmem:[%s2330_s9 + $0x120] sm:$0xff] %vm1427_vm2, %v1399_v37  ;;  %1928 = vmatmul.msk.bf16.gmra.mxu1 %vm1033_vm0, %v1965_v32 }
  0xcd   : > { %1433 = vst.msk [vmem:[%s2330_s9 + $0x28] sm:$0xff] %vm1427_vm2, %v1368_v38  ;;  %1945 = vmatmul.msk.bf16.gmra.mxu3 %vm1033_vm0, %v1982_v36  ;;  %v1341_v38 = vld [vmem:[%s2320_s14 + $0x150] sm:$0xff] }
  0xcf   : > { %v793_v39 = vpop.f32.mrf.mxu2 }
  0xd0   : > { %v1232_v42 = vadd.f32 %v1231_v9, %v793_v39  ;;  %v716_v43 = vpop.f32.mrf.mxu0  ;;  %v1239_v46 = vpop.f32.mrf.mxu3 }
  0xd1   : > { %v1155_v47 = vadd.f32 %v1154_v35, %v716_v43  ;;  %v1156_v48 = vpop.f32.mrf.mxu1 }
  0xd2   : > { %v1400_v50 = vadd.f32 %v1336_v40, %v1232_v42  ;;  %v1968_v42 = vld [vmem:[%s2235_s17 + $0x70] sm:$0xff] }
  0xd3   : > { %v1369_v51 = vadd.f32 %v1305_v44, %v1155_v47  ;;  %1760 = vmatmul.msk.bf16.gmra.mxu0 %vm595_vm1, %v1999_v41  ;;  %v1310_v41 = vld [vmem:[%s2320_s14 + $0x58] sm:$0xff] }
  0xd4   : > { %1465 = vst.msk [vmem:[%s2330_s9 + $0x128] sm:$0xff] %vm1427_vm2, %v1400_v50  ;;  %1776 = vmatmul.msk.bf16.gmra.mxu2 %vm595_vm1, %v2015_v45 }
  0xd5   : > { %1434 = vst.msk [vmem:[%s2330_s9 + $0x30] sm:$0xff] %vm1427_vm2, %v1369_v51  ;;  %v1342_v51 = vld [vmem:[%s2320_s14 + $0x158] sm:$0xff] }
  0xd7   : > { %v796_v52 = vpop.f32.mrf.mxu2 }
  0xd8   : > { %v1235_v54 = vadd.f32 %v1234_v22, %v796_v52  ;;  %v718_v55 = vpop.f32.mrf.mxu0  ;;  %v1241_v59 = vpop.f32.mrf.mxu3  ;;  %v1984_v22 = vld [vmem:[%s2235_s17 + $0xf0] sm:$0xff] }
  0xd9   : > { %v1157_v60 = vadd.f32 %v1156_v48, %v718_v55  ;;  %v1159_v61 = vpop.f32.mrf.mxu1  ;;  %v2002_v52 = vld [vmem:[%s2249_s8 + $0x70] sm:$0xff]  ;;  %v1311_v55 = vld [vmem:[%s2320_s14 + $0x60] sm:$0xff] }
  0xda   : > { %v1401_v63 = vadd.f32 %v1337_v53, %v1235_v54 }
  0xdb   : > { %v1370_v0 = vadd.f32 %v1306_v56, %v1157_v60  ;;  %v2018_v56 = vld [vmem:[%s2249_s8 + $0xf0] sm:$0xff] }
  0xdc   : > { %1466 = vst.msk [vmem:[%s2330_s9 + $0x130] sm:$0xff] %vm1427_vm2, %v1401_v63  ;;  %1929 = vmatmul.msk.bf16.gmra.mxu1 %vm1033_vm0, %v1966_v57 }
  0xdd   : > { %1435 = vst.msk [vmem:[%s2330_s9 + $0x38] sm:$0xff] %vm1427_vm2, %v1370_v0  ;;  %1946 = vmatmul.msk.bf16.gmra.mxu3 %vm1033_vm0, %v1983_v62  ;;  %v1343_v0 = vld [vmem:[%s2320_s14 + $0x160] sm:$0xff] }
  0xdf   : > { %v798_v1 = vpop.f32.mrf.mxu2 }
  0xe0   : > { %v1237_v4 = vadd.f32 %v1236_v33, %v798_v1  ;;  %v721_v5 = vpop.f32.mrf.mxu0  ;;  %v1244_v8 = vpop.f32.mrf.mxu3 }
  0xe1   : > { %v1160_v9 = vadd.f32 %v1159_v61, %v721_v5  ;;  %v1161_v10 = vpop.f32.mrf.mxu1 }
  0xe2   : > { %v1402_v11 = vadd.f32 %v1338_v2, %v1237_v4  ;;  %v1969_v4 = vld [vmem:[%s2235_s17 + $0x78] sm:$0xff] }
  0xe3   : > { %v1371_v12 = vadd.f32 %v1307_v6, %v1160_v9  ;;  %1761 = vmatmul.msk.bf16.gmra.mxu0 %vm595_vm1, %v2000_v3  ;;  %v1312_v3 = vld [vmem:[%s2320_s14 + $0x68] sm:$0xff] }
  0xe4   : > { %1467 = vst.msk [vmem:[%s2330_s9 + $0x138] sm:$0xff] %vm1427_vm2, %v1402_v11  ;;  %1777 = vmatmul.msk.bf16.gmra.mxu2 %vm595_vm1, %v2016_v7  ;;  %v1344_v11 = vld [vmem:[%s2320_s14 + $0x168] sm:$0xff] }
  0xe5   : > { %1436 = vst.msk [vmem:[%s2330_s9 + $0x40] sm:$0xff] %vm1427_vm2, %v1371_v12  ;;  %v2003_v12 = vld [vmem:[%s2249_s8 + $0x78] sm:$0xff] }
  0xe7   : > { %v801_v13 = vpop.f32.mrf.mxu2 }
  0xe8   : > { %v1240_v15 = vadd.f32 %v1239_v46, %v801_v13  ;;  %v723_v16 = vpop.f32.mrf.mxu0  ;;  %v1246_v19 = vpop.f32.mrf.mxu3  ;;  %v1985_v46 = vld [vmem:[%s2235_s17 + $0xf8] sm:$0xff] }
  0xe9   : > { %v1162_v20 = vadd.f32 %v1161_v10, %v723_v16  ;;  %v1164_v21 = vpop.f32.mrf.mxu1  ;;  %v2019_v16 = vld [vmem:[%s2249_s8 + $0xf8] sm:$0xff] }
  0xea   : > { %v1403_v23 = vadd.f32 %v1339_v14, %v1240_v15  ;;  %v1313_v15 = vld [vmem:[%s2320_s14 + $0x70] sm:$0xff] }
  0xeb   : > { %v1372_v24 = vadd.f32 %v1308_v17, %v1162_v20 }
  0xec   : > { %1468 = vst.msk [vmem:[%s2330_s9 + $0x140] sm:$0xff] %vm1427_vm2, %v1403_v23  ;;  %1930 = vmatmul.msk.bf16.gmra.mxu1 %vm1033_vm0, %v1967_v18  ;;  %v1345_v23 = vld [vmem:[%s2320_s14 + $0x170] sm:$0xff] }
  0xed   : > { %1437 = vst.msk [vmem:[%s2330_s9 + $0x48] sm:$0xff] %vm1427_vm2, %v1372_v24  ;;  %1947 = vmatmul.msk.bf16.gmra.mxu3 %vm1033_vm0, %v1984_v22 }
  0xef   : > { %v803_v25 = vpop.f32.mrf.mxu2 }
  0xf0   : > { %v1242_v28 = vadd.f32 %v1241_v59, %v803_v25  ;;  %v726_v29 = vpop.f32.mrf.mxu0  ;;  %v1249_v32 = vpop.f32.mrf.mxu3 }
  0xf1   : > { %v1165_v33 = vadd.f32 %v1164_v21, %v726_v29  ;;  %v1166_v34 = vpop.f32.mrf.mxu1 }
  0xf2   : > { %v1404_v35 = vadd.f32 %v1340_v26, %v1242_v28  ;;  %v1314_v26 = vld [vmem:[%s2320_s14 + $0x78] sm:$0xff] }
  0xf3   : > { %v1373_v36 = vadd.f32 %v1309_v30, %v1165_v33  ;;  %1762 = vmatmul.msk.bf16.gmra.mxu0 %vm595_vm1, %v2001_v27  ;;  %v1970_v27 = vld [vmem:[%s2235_s17 + $0x80] sm:$0xff] }
  0xf4   : > { %1469 = vst.msk [vmem:[%s2330_s9 + $0x148] sm:$0xff] %vm1427_vm2, %v1404_v35  ;;  %1778 = vmatmul.msk.bf16.gmra.mxu2 %vm595_vm1, %v2017_v31 }
  0xf5   : > { %1438 = vst.msk [vmem:[%s2330_s9 + $0x50] sm:$0xff] %vm1427_vm2, %v1373_v36 }
  0xf7   : > { %v806_v37 = vpop.f32.mrf.mxu2 }
  0xf8   : > { %v1245_v39 = vadd.f32 %v1244_v8, %v806_v37  ;;  %v728_v40 = vpop.f32.mrf.mxu0  ;;  %v1251_v43 = vpop.f32.mrf.mxu3  ;;  %v1315_v37 = vld [vmem:[%s2320_s14 + $0x80] sm:$0xff] }
  0xf9   : > { %v1167_v44 = vadd.f32 %v1166_v34, %v728_v40  ;;  %v1169_v45 = vpop.f32.mrf.mxu1  ;;  %v1346_v34 = vld [vmem:[%s2320_s14 + $0x178] sm:$0xff] }
  0xfa   : > { %v1405_v47 = vadd.f32 %v1341_v38, %v1245_v39 }
  0xfb   : > { %v1374_v48 = vadd.f32 %v1310_v41, %v1167_v44  ;;  %v1347_v44 = vld [vmem:[%s2320_s14 + $0x180] sm:$0xff] }
  0xfc   : > { %1470 = vst.msk [vmem:[%s2330_s9 + $0x150] sm:$0xff] %vm1427_vm2, %v1405_v47  ;;  %1931 = vmatmul.msk.bf16.gmra.mxu1 %vm1033_vm0, %v1968_v42  ;;  %v1316_v47 = vld [vmem:[%s2320_s14 + $0x88] sm:$0xff] }
  0xfd   : > { %1439 = vst.msk [vmem:[%s2330_s9 + $0x58] sm:$0xff] %vm1427_vm2, %v1374_v48  ;;  %1948 = vmatmul.msk.bf16.gmra.mxu3 %vm1033_vm0, %v1985_v46 }
  0xff   : > { %v808_v50 = vpop.f32.mrf.mxu2 }
 0x100   : > { %v1247_v53 = vadd.f32 %v1246_v19, %v808_v50  ;;  %v731_v54 = vpop.f32.mrf.mxu0  ;;  %v1254_v57 = vpop.f32.mrf.mxu3 }
 0x101   : > { %v1170_v59 = vadd.f32 %v1169_v45, %v731_v54  ;;  %v1171_v60 = vpop.f32.mrf.mxu1 }
 0x102   : > { %v1406_v61 = vadd.f32 %v1342_v51, %v1247_v53 }
 0x103   : > { %v1375_v62 = vadd.f32 %v1311_v55, %v1170_v59  ;;  %1763 = vmatmul.msk.bf16.gmra.mxu0 %vm595_vm1, %v2002_v52  ;;  %v1348_v55 = vld [vmem:[%s2320_s14 + $0x188] sm:$0xff]  ;;  %v1317_v59 = vld [vmem:[%s2320_s14 + $0x90] sm:$0xff] }
 0x104   : > { %1471 = vst.msk [vmem:[%s2330_s9 + $0x158] sm:$0xff] %vm1427_vm2, %v1406_v61  ;;  %1779 = vmatmul.msk.bf16.gmra.mxu2 %vm595_vm1, %v2018_v56 }
 0x105   : > { %1440 = vst.msk [vmem:[%s2330_s9 + $0x60] sm:$0xff] %vm1427_vm2, %v1375_v62 }
 0x107   : > { %v811_v63 = vpop.f32.mrf.mxu2 }
 0x108   : > { %v1250_v1 = vadd.f32 %v1249_v32, %v811_v63  ;;  %v733_v2 = vpop.f32.mrf.mxu0  ;;  %v1256_v5 = vpop.f32.mrf.mxu3 }
 0x109   : > { %v1172_v6 = vadd.f32 %v1171_v60, %v733_v2  ;;  %v1174_v7 = vpop.f32.mrf.mxu1  ;;  %v1349_v2 = vld [vmem:[%s2320_s14 + $0x190] sm:$0xff] }
 0x10a   : > { %v1407_v8 = vadd.f32 %v1343_v0, %v1250_v1 }
 0x10b   : > { %v1376_v9 = vadd.f32 %v1312_v3, %v1172_v6 }
 0x10c   : > { %1472 = vst.msk [vmem:[%s2330_s9 + $0x160] sm:$0xff] %vm1427_vm2, %v1407_v8  ;;  %1932 = vmatmul.msk.bf16.gmra.mxu1 %vm1033_vm0, %v1969_v4 }
 0x10d   : > { %1441 = vst.msk [vmem:[%s2330_s9 + $0x68] sm:$0xff] %vm1427_vm2, %v1376_v9 }
 0x10f   : > { %v813_v10 = vpop.f32.mrf.mxu2 }
 0x110   : > { %v1252_v13 = vadd.f32 %v1251_v43, %v813_v10  ;;  %v736_v14 = vpop.f32.mrf.mxu0  ;;  %v1259_v17 = vpop.f32.mrf.mxu3 }
 0x111   : > { %v1175_v18 = vadd.f32 %v1174_v7, %v736_v14  ;;  %v1176_v19 = vpop.f32.mrf.mxu1 }
 0x112   : > { %v1408_v20 = vadd.f32 %v1344_v11, %v1252_v13 }
 0x113   : > { %v1377_v21 = vadd.f32 %v1313_v15, %v1175_v18  ;;  %1764 = vmatmul.msk.bf16.gmra.mxu0 %vm595_vm1, %v2003_v12  ;;  %v1350_v12 = vld [vmem:[%s2320_s14 + $0x198] sm:$0xff]  ;;  %v1319_v15 = vld [vmem:[%s2320_s14 + $0xa0] sm:$0xff] }
 0x114   : > { %1473 = vst.msk [vmem:[%s2330_s9 + $0x168] sm:$0xff] %vm1427_vm2, %v1408_v20  ;;  %1780 = vmatmul.msk.bf16.gmra.mxu2 %vm595_vm1, %v2019_v16 }
 0x115   : > { %1442 = vst.msk [vmem:[%s2330_s9 + $0x70] sm:$0xff] %vm1427_vm2, %v1377_v21 }
 0x117   : > { %v816_v22 = vpop.f32.mrf.mxu2 }
 0x118   : > { %v1255_v24 = vadd.f32 %v1254_v57, %v816_v22  ;;  %v738_v25 = vpop.f32.mrf.mxu0  ;;  %v1261_v28 = vpop.f32.mrf.mxu3  ;;  %v1351_v22 = vld [vmem:[%s2320_s14 + $0x1a0] sm:$0xff] }
 0x119   : > { %v1177_v29 = vadd.f32 %v1176_v19, %v738_v25  ;;  %v1179_v30 = vpop.f32.mrf.mxu1  ;;  %v1320_v25 = vld [vmem:[%s2320_s14 + $0xa8] sm:$0xff] }
 0x11a   : > { %v1409_v31 = vadd.f32 %v1345_v23, %v1255_v24 }
 0x11b   : > { %v1378_v32 = vadd.f32 %v1314_v26, %v1177_v29 }
 0x11c   : > { %1474 = vst.msk [vmem:[%s2330_s9 + $0x170] sm:$0xff] %vm1427_vm2, %v1409_v31  ;;  %1933 = vmatmul.msk.bf16.gmra.mxu1 %vm1033_vm0, %v1970_v27  ;;  %v1352_v31 = vld [vmem:[%s2320_s14 + $0x1a8] sm:$0xff] }
 0x11d   : > { %1443 = vst.msk [vmem:[%s2330_s9 + $0x78] sm:$0xff] %vm1427_vm2, %v1378_v32 }
 0x11f   : > { %v818_v33 = vpop.f32.mrf.mxu2 }
 0x120   : > { %v1257_v35 = vadd.f32 %v1256_v5, %v818_v33  ;;  %v741_v36 = vpop.f32.mrf.mxu0  ;;  %v1264_v38 = vpop.f32.mrf.mxu3  ;;  %v1318_v5 = vld [vmem:[%s2320_s14 + $0x98] sm:$0xff] }
 0x121   : > { %v1180_v39 = vadd.f32 %v1179_v30, %v741_v36  ;;  %v1181_v40 = vpop.f32.mrf.mxu1 }
 0x122   : > { %v1410_v41 = vadd.f32 %v1346_v34, %v1257_v35  ;;  %v1321_v35 = vld [vmem:[%s2320_s14 + $0xb0] sm:$0xff] }
 0x123   : > { %v1379_v42 = vadd.f32 %v1315_v37, %v1180_v39 }
 0x124   : > { %1475 = vst.msk [vmem:[%s2330_s9 + $0x178] sm:$0xff] %vm1427_vm2, %v1410_v41  ;;  %v1353_v41 = vld [vmem:[%s2320_s14 + $0x1b0] sm:$0xff] }
 0x125   : > { %1444 = vst.msk [vmem:[%s2330_s9 + $0x80] sm:$0xff] %vm1427_vm2, %v1379_v42 }
 0x127   : > { %v821_v43 = vpop.f32.mrf.mxu2 }
 0x128   : > { %v1260_v45 = vadd.f32 %v1259_v17, %v821_v43  ;;  %v743_v46 = vpop.f32.mrf.mxu0  ;;  %v1266_v48 = vpop.f32.mrf.mxu3 }
 0x129   : > { %v1182_v50 = vadd.f32 %v1181_v40, %v743_v46  ;;  %v1184_v51 = vpop.f32.mrf.mxu1 }
 0x12a   : > { %v1411_v52 = vadd.f32 %v1347_v44, %v1260_v45  ;;  %v1322_v44 = vld [vmem:[%s2320_s14 + $0xb8] sm:$0xff] }
 0x12b   : > { %v1380_v53 = vadd.f32 %v1316_v47, %v1182_v50 }
 0x12c   : > { %1476 = vst.msk [vmem:[%s2330_s9 + $0x180] sm:$0xff] %vm1427_vm2, %v1411_v52  ;;  %v1354_v52 = vld [vmem:[%s2320_s14 + $0x1b8] sm:$0xff] }
 0x12d   : > { %1445 = vst.msk [vmem:[%s2330_s9 + $0x88] sm:$0xff] %vm1427_vm2, %v1380_v53 }
 0x12f   : > { %v823_v54 = vpop.f32.mrf.mxu2 }
 0x130   : > { %v1262_v56 = vadd.f32 %v1261_v28, %v823_v54  ;;  %v746_v57 = vpop.f32.mrf.mxu0  ;;  %v1269_v62 = vpop.f32.mrf.mxu3 }
 0x131   : > { %v1185_v60 = vadd.f32 %v1184_v51, %v746_v57  ;;  %v1186_v61 = vpop.f32.mrf.mxu1 }
 0x132   : > { %v1412_v63 = vadd.f32 %v1348_v55, %v1262_v56  ;;  %v1323_v55 = vld [vmem:[%s2320_s14 + $0xc0] sm:$0xff] }
 0x133   : > { %v1381_v0 = vadd.f32 %v1317_v59, %v1185_v60 }
 0x134   : > { %1477 = vst.msk [vmem:[%s2330_s9 + $0x188] sm:$0xff] %vm1427_vm2, %v1412_v63  ;;  %v1355_v63 = vld [vmem:[%s2320_s14 + $0x1c0] sm:$0xff] }
 0x135   : > { %1446 = vst.msk [vmem:[%s2330_s9 + $0x90] sm:$0xff] %vm1427_vm2, %v1381_v0 }
 0x137   : > { %v826_v1 = vpop.f32.mrf.mxu2 }
 0x138   : > { %v1265_v3 = vadd.f32 %v1264_v38, %v826_v1  ;;  %v748_v4 = vpop.f32.mrf.mxu0  ;;  %v1271_v10 = vpop.f32.mrf.mxu3 }
 0x139   : > { %v1187_v6 = vadd.f32 %v1186_v61, %v748_v4  ;;  %v1189_v7 = vpop.f32.mrf.mxu1 }
 0x13a   : > { %v1413_v8 = vadd.f32 %v1349_v2, %v1265_v3  ;;  %v1324_v2 = vld [vmem:[%s2320_s14 + $0xc8] sm:$0xff] }
 0x13b   : > { %v1382_v9 = vadd.f32 %v1318_v5, %v1187_v6 }
 0x13c   : > { %1478 = vst.msk [vmem:[%s2330_s9 + $0x190] sm:$0xff] %vm1427_vm2, %v1413_v8 }
 0x13d   : > { %1447 = vst.msk [vmem:[%s2330_s9 + $0x98] sm:$0xff] %vm1427_vm2, %v1382_v9  ;;  %v1356_v9 = vld [vmem:[%s2320_s14 + $0x1c8] sm:$0xff] }
 0x13f   : > { %v828_v11 = vpop.f32.mrf.mxu2 }
 0x140   : > { %v1267_v13 = vadd.f32 %v1266_v48, %v828_v11  ;;  %v751_v14 = vpop.f32.mrf.mxu0  ;;  %v1274_v20 = vpop.f32.mrf.mxu3 }
 0x141   : > { %v1190_v16 = vadd.f32 %v1189_v7, %v751_v14  ;;  %v1191_v17 = vpop.f32.mrf.mxu1 }
 0x142   : > { %v1414_v18 = vadd.f32 %v1350_v12, %v1267_v13  ;;  %v1325_v12 = vld [vmem:[%s2320_s14 + $0xd0] sm:$0xff] }
 0x143   : > { %v1383_v19 = vadd.f32 %v1319_v15, %v1190_v16 }
 0x144   : > { %1479 = vst.msk [vmem:[%s2330_s9 + $0x198] sm:$0xff] %vm1427_vm2, %v1414_v18  ;;  %v1357_v18 = vld [vmem:[%s2320_s14 + $0x1d0] sm:$0xff] }
 0x145   : > { %1448 = vst.msk [vmem:[%s2330_s9 + $0xa0] sm:$0xff] %vm1427_vm2, %v1383_v19 }
 0x147   : > { %v831_v21 = vpop.f32.mrf.mxu2 }
 0x148   : > { %v1270_v23 = vadd.f32 %v1269_v62, %v831_v21  ;;  %v753_v24 = vpop.f32.mrf.mxu0  ;;  %v1276_v32 = vpop.f32.mrf.mxu3 }
 0x149   : > { %v1192_v26 = vadd.f32 %v1191_v17, %v753_v24  ;;  %v1194_v27 = vpop.f32.mrf.mxu1 }
 0x14a   : > { %v1415_v28 = vadd.f32 %v1351_v22, %v1270_v23  ;;  %v1326_v22 = vld [vmem:[%s2320_s14 + $0xd8] sm:$0xff] }
 0x14b   : > { %v1384_v29 = vadd.f32 %v1320_v25, %v1192_v26 }
 0x14c   : > { %1480 = vst.msk [vmem:[%s2330_s9 + $0x1a0] sm:$0xff] %vm1427_vm2, %v1415_v28  ;;  %v1358_v28 = vld [vmem:[%s2320_s14 + $0x1d8] sm:$0xff] }
 0x14d   : > { %1449 = vst.msk [vmem:[%s2330_s9 + $0xa8] sm:$0xff] %vm1427_vm2, %v1384_v29 }
 0x14f   : > { %v833_v30 = vpop.f32.mrf.mxu2 }
 0x150   : > { %v1272_v33 = vadd.f32 %v1271_v10, %v833_v30  ;;  %v756_v34 = vpop.f32.mrf.mxu0  ;;  %v1279_v47 = vpop.f32.mrf.mxu3 }
 0x151   : > { %v1195_v36 = vadd.f32 %v1194_v27, %v756_v34  ;;  %v1196_v37 = vpop.f32.mrf.mxu1 }
 0x152   : > { %v1416_v38 = vadd.f32 %v1352_v31, %v1272_v33  ;;  %v1327_v31 = vld [vmem:[%s2320_s14 + $0xe0] sm:$0xff] }
 0x153   : > { %v1385_v39 = vadd.f32 %v1321_v35, %v1195_v36 }
 0x154   : > { %1481 = vst.msk [vmem:[%s2330_s9 + $0x1a8] sm:$0xff] %vm1427_vm2, %v1416_v38  ;;  %v1359_v38 = vld [vmem:[%s2320_s14 + $0x1e0] sm:$0xff] }
 0x155   : > { %1450 = vst.msk [vmem:[%s2330_s9 + $0xb0] sm:$0xff] %vm1427_vm2, %v1385_v39 }
 0x157   : > { %v836_v40 = vpop.f32.mrf.mxu2 }
 0x158   : > { %v1275_v42 = vadd.f32 %v1274_v20, %v836_v40  ;;  %v758_v43 = vpop.f32.mrf.mxu0  ;;  %v1281_v61 = vpop.f32.mrf.mxu3 }
 0x159   : > { %v1197_v45 = vadd.f32 %v1196_v37, %v758_v43  ;;  %v1199_v46 = vpop.f32.mrf.mxu1 }
 0x15a   : > { %v1417_v48 = vadd.f32 %v1353_v41, %v1275_v42  ;;  %v1328_v41 = vld [vmem:[%s2320_s14 + $0xe8] sm:$0xff] }
 0x15b   : > { %v1386_v50 = vadd.f32 %v1322_v44, %v1197_v45 }
 0x15c   : > { %1482 = vst.msk [vmem:[%s2330_s9 + $0x1b0] sm:$0xff] %vm1427_vm2, %v1417_v48  ;;  %v1360_v48 = vld [vmem:[%s2320_s14 + $0x1e8] sm:$0xff] }
 0x15d   : > { %1451 = vst.msk [vmem:[%s2330_s9 + $0xb8] sm:$0xff] %vm1427_vm2, %v1386_v50 }
 0x15f   : > { %v838_v51 = vpop.f32.mrf.mxu2 }
 0x160   : > { %v1277_v53 = vadd.f32 %v1276_v32, %v838_v51  ;;  %v761_v54 = vpop.f32.mrf.mxu0  ;;  %v1284_v7 = vpop.f32.mrf.mxu3 }
 0x161   : > { %v1200_v56 = vadd.f32 %v1199_v46, %v761_v54  ;;  %v1201_v57 = vpop.f32.mrf.mxu1 }
 0x162   : > { %v1418_v59 = vadd.f32 %v1354_v52, %v1277_v53  ;;  %v1329_v52 = vld [vmem:[%s2320_s14 + $0xf0] sm:$0xff] }
 0x163   : > { %v1387_v60 = vadd.f32 %v1323_v55, %v1200_v56 }
 0x164   : > { %1483 = vst.msk [vmem:[%s2330_s9 + $0x1b8] sm:$0xff] %vm1427_vm2, %v1418_v59 }
 0x165   : > { %1452 = vst.msk [vmem:[%s2330_s9 + $0xc0] sm:$0xff] %vm1427_vm2, %v1387_v60  ;;  %v1361_v60 = vld [vmem:[%s2320_s14 + $0x1f0] sm:$0xff] }
 0x167   : > { %v841_v62 = vpop.f32.mrf.mxu2 }
 0x168   : > { %v1280_v0 = vadd.f32 %v1279_v47, %v841_v62  ;;  %v763_v1 = vpop.f32.mrf.mxu0  ;;  %v1286_v19 = vpop.f32.mrf.mxu3 }
 0x169   : > { %v1202_v3 = vadd.f32 %v1201_v57, %v763_v1  ;;  %v1204_v4 = vpop.f32.mrf.mxu1 }
 0x16a   : > { %v1419_v5 = vadd.f32 %v1355_v63, %v1280_v0  ;;  %v1330_v63 = vld [vmem:[%s2320_s14 + $0xf8] sm:$0xff] }
 0x16b   : > { %v1388_v6 = vadd.f32 %v1324_v2, %v1202_v3  ;;  %v1331_v2 = vld [vmem:[%s2320_s14 + $0x100] sm:$0xff] }
 0x16c   : > { %1484 = vst.msk [vmem:[%s2330_s9 + $0x1c0] sm:$0xff] %vm1427_vm2, %v1419_v5 }
 0x16d   : > { %1453 = vst.msk [vmem:[%s2330_s9 + $0xc8] sm:$0xff] %vm1427_vm2, %v1388_v6 }
 0x16f   : > { %v843_v8 = vpop.f32.mrf.mxu2 }
 0x170   : > { %v1282_v10 = vadd.f32 %v1281_v61, %v843_v8  ;;  %v766_v11 = vpop.f32.mrf.mxu0  ;;  %v1289_v34 = vpop.f32.mrf.mxu3 }
 0x171   : > { %v1205_v13 = vadd.f32 %v1204_v4, %v766_v11  ;;  %v1206_v14 = vpop.f32.mrf.mxu1  ;;  %v1332_v11 = vld [vmem:[%s2320_s14 + $0x108] sm:$0xff] }
 0x172   : > { %v1420_v15 = vadd.f32 %v1356_v9, %v1282_v10  ;;  %v1362_v9 = vld [vmem:[%s2320_s14 + $0x1f8] sm:$0xff] }
 0x173   : > { %v1389_v16 = vadd.f32 %v1325_v12, %v1205_v13 }
 0x174   : > { %1485 = vst.msk [vmem:[%s2330_s9 + $0x1c8] sm:$0xff] %vm1427_vm2, %v1420_v15 }
 0x175   : > { %1454 = vst.msk [vmem:[%s2330_s9 + $0xd0] sm:$0xff] %vm1427_vm2, %v1389_v16 }
 0x177   : > { %v846_v17 = vpop.f32.mrf.mxu2 }
 0x178   : > { %v1285_v20 = vadd.f32 %v1284_v7, %v846_v17  ;;  %v768_v21 = vpop.f32.mrf.mxu0  ;;  %v1291_v46 = vpop.f32.mrf.mxu3 }
 0x179   : > { %v1207_v23 = vadd.f32 %v1206_v14, %v768_v21  ;;  %v1209_v24 = vpop.f32.mrf.mxu1 }
 0x17a   : > { %v1421_v25 = vadd.f32 %v1357_v18, %v1285_v20 }
 0x17b   : > { %v1390_v26 = vadd.f32 %v1326_v22, %v1207_v23 }
 0x17c   : > { %1486 = vst.msk [vmem:[%s2330_s9 + $0x1d0] sm:$0xff] %vm1427_vm2, %v1421_v25 }
 0x17d   : > { %1455 = vst.msk [vmem:[%s2330_s9 + $0xd8] sm:$0xff] %vm1427_vm2, %v1390_v26 }
 0x17f   : > { %v848_v27 = vpop.f32.mrf.mxu2 }
 0x180   : > { %v1287_v29 = vadd.f32 %v1286_v19, %v848_v27  ;;  %v771_v30 = vpop.f32.mrf.mxu0  ;;  %v1294_v57 = vpop.f32.mrf.mxu3 }
 0x181   : > { %v1210_v32 = vadd.f32 %v1209_v24, %v771_v30  ;;  %v1211_v33 = vpop.f32.mrf.mxu1 }
 0x182   : > { %v1422_v35 = vadd.f32 %v1358_v28, %v1287_v29 }
 0x183   : > { %v1391_v36 = vadd.f32 %v1327_v31, %v1210_v32 }
 0x184   : > { %1487 = vst.msk [vmem:[%s2330_s9 + $0x1d8] sm:$0xff] %vm1427_vm2, %v1422_v35 }
 0x185   : > { %1456 = vst.msk [vmem:[%s2330_s9 + $0xe0] sm:$0xff] %vm1427_vm2, %v1391_v36 }
 0x187   : > { %v851_v37 = vpop.f32.mrf.mxu2 }
 0x188   : > { %v1290_v39 = vadd.f32 %v1289_v34, %v851_v37  ;;  %v773_v40 = vpop.f32.mrf.mxu0  ;;  %v1296_v7 = vpop.f32.mrf.mxu3 }
 0x189   : > { %v1212_v42 = vadd.f32 %v1211_v33, %v773_v40  ;;  %v1214_v43 = vpop.f32.mrf.mxu1 }
 0x18a   : > { %v1423_v44 = vadd.f32 %v1359_v38, %v1290_v39 }
 0x18b   : > { %v1392_v45 = vadd.f32 %v1328_v41, %v1212_v42 }
 0x18c   : > { %1488 = vst.msk [vmem:[%s2330_s9 + $0x1e0] sm:$0xff] %vm1427_vm2, %v1423_v44 }
 0x18d   : > { %1457 = vst.msk [vmem:[%s2330_s9 + $0xe8] sm:$0xff] %vm1427_vm2, %v1392_v45 }
 0x18f   : > { %v853_v47 = vpop.f32.mrf.mxu2 }
 0x190   : > { %v1292_v50 = vadd.f32 %v1291_v46, %v853_v47  ;;  %v776_v51 = vpop.f32.mrf.mxu0 }
 0x191   : > { %v1215_v53 = vadd.f32 %v1214_v43, %v776_v51  ;;  %v1216_v54 = vpop.f32.mrf.mxu1 }
 0x192   : > { %v1424_v55 = vadd.f32 %v1360_v48, %v1292_v50 }
 0x193   : > { %v1393_v56 = vadd.f32 %v1329_v52, %v1215_v53 }
 0x194   : > { %1489 = vst.msk [vmem:[%s2330_s9 + $0x1e8] sm:$0xff] %vm1427_vm2, %v1424_v55 }
 0x195   : > { %1458 = vst.msk [vmem:[%s2330_s9 + $0xf0] sm:$0xff] %vm1427_vm2, %v1393_v56 }
 0x197   : > { %v856_v59 = vpop.f32.mrf.mxu2 }
 0x198   : > { %v1295_v61 = vadd.f32 %v1294_v57, %v856_v59  ;;  %v778_v62 = vpop.f32.mrf.mxu0 }
 0x199   : > { %v1217_v0 = vadd.f32 %v1216_v54, %v778_v62  ;;  %v1219_v1 = vpop.f32.mrf.mxu1 }
 0x19a   : > { %v1425_v3 = vadd.f32 %v1361_v60, %v1295_v61  ;;  %v1220_v4 = vadd.f32 %v1219_v1, %v2334_v49 }
 0x19b   : > { %v1394_v5 = vadd.f32 %v1330_v63, %v1217_v0 }
 0x19c   : > { %1490 = vst.msk [vmem:[%s2330_s9 + $0x1f0] sm:$0xff] %vm1427_vm2, %v1425_v3  ;;  %v1395_v6 = vadd.f32 %v1331_v2, %v1220_v4 }
 0x19d   : > { %1459 = vst.msk [vmem:[%s2330_s9 + $0xf8] sm:$0xff] %vm1427_vm2, %v1394_v5 }
 0x19e   : > { %1460 = vst.msk [vmem:[%s2330_s9 + $0x100] sm:$0xff] %vm1427_vm2, %v1395_v6 }
 0x19f   : > { %v858_v8 = vpop.f32.mrf.mxu2 }
 0x1a0   : > { %v1297_v49 = vadd.f32 %v1296_v7, %v858_v8 }
 0x1a1   : > { %v1221_v10 = vpop.f32.mrf.mxu1 }
 0x1a2   : > { %v1426_v12 = vadd.f32 %v1362_v9, %v1297_v49  ;;  %v1222_v13 = vadd.f32 %v1221_v10, %v2343_v58 }
 0x1a4   : > { %1491 = vst.msk [vmem:[%s2330_s9 + $0x1f8] sm:$0xff] %vm1427_vm2, %v1426_v12  ;;  %v1396_v14 = vadd.f32 %v1332_v11, %v1222_v13 }
 0x1a6   : > { %1461 = vst.msk [vmem:[%s2330_s9 + $0x108] sm:$0xff] %vm1427_vm2, %v1396_v14 }
 0x1a7   : > { %2099 = shalt.err (!%p2096_p3)
}
 0x1a8   : > { %s2136_s11 = smov 128   ;;  %s2137_s15 = smov 8  }
 0x1a9   : > { %2031 = dma.vmem_to_hbm [thread:$0]  (%p2206_p5), %s1506_s22, 8192, %s1508_s26, %s1493_s30, %s2136_s11, %s2136_s11, %s2137_s15  }
 0x1aa PF: > { %p2037_p4 = scmp.ge.s32.totalorder %s2134_s21, 2  ;;  %s1522_s9 = sand.u32 1, %s2122_s18  }
 0x1ab   : > { %s1523_s16 = scalar_lea.sflag [#allocation3], %s1522_s9 }
 0x1ac   : > { %p2034_p7 = pnand %p2037_p4, %p2210_p6 }
 0x1ae   : > { %p2035_p8 = pneg %p2034_p7 }
 0x1b0   : > { %2117 = dma.done.wait (%p2035_p8), %s1523_s16, 8192  }
 0x1b1   : > { %2119 = vsyncadd (%p2035_p8), %s1523_s16, 4294959104  ;;  %p15_p9 = scmp.ge.s32.totalorder %s2193_s24, 4   ;;  %s2627_s18 = smov %s2126_s19 }
 0x1b2   : > { %s2628_s19 = smov %s2130_s20  ;;  %s2629_s20 = smov %s2204_s27 }
 0x1b3   : > { %s2630_s21 = smov %s2193_s24  ;;  %17 = sbr.rel (!%p15_p9) target bundleno = 3 (0x3), region = 81 }
 0x1b8   :  { %1529 = vsyncpa [#allocation3], 1 }
 0x1b9   :  { %1531 = vsyncpa [#allocation3 + $0x1], 1 }

// kernel: skip_connection_forward.23
= control target key start
LH: loop header
LB: loop body
LE: loop exit
PB: predicated region body
PF: predicated region fallthrough
CT: control target
= control target key end

     0   :  { %s500_s12 = smov 0   ;;  %s552_s0 = inlined_call_operand.vmem [shape: bf16[128,128], index: 0, kind: input, shape index: {}]   ;;  %s553_s1 = inlined_call_operand.vmem [shape: bf16[128,32], index: 1, kind: input, shape index: {}]   ;;  %s554_s2 = inlined_call_operand.vmem [shape: f32[1,32], index: 2, kind: input, shape index: {}]   ;;  %s555_s3 = inlined_call_operand.vmem [shape: f32[128,32], index: 3, kind: output, shape index: {}]  }
   0x1 LB: > { %s368_s13 = sadd.s32 4294967295, %s478_s12   ;;  %p372_p0 = scmp.ge.s32.totalorder %s478_s12, 1  ;;  %s478_s12 = sphi %s500_s12, %s13_s12  }
   0x2   : > { %p138_p1 = scmp.lt.s32.totalorder %s478_s12, 3 }
   0x4   : > { %p139_p2 = pnand %p372_p0, %p138_p1 }
   0x5   : > { %s373_s22 = sshll.u32 (!%p139_p2), %s368_s13, 3 }
   0x6   : > { %142 = sbr.rel (%p139_p2) target bundleno = 188 (0xbc), region = 32  ;;  %p163_p3 = scmp.lt.s32.totalorder (!%p139_p2), %s373_s22, 15 }
   0xb   : > { %v438_v0 = vld [vmem:[%s553_s1 + $0x38] sm:$0xff]  ;;  %v437_v1 = vld [vmem:[%s553_s1 + $0x30] sm:$0xff]  ;;  %v436_v2 = vld [vmem:[%s553_s1 + $0x28] sm:$0xff]  ;;  %s557_s22 = smov (!%p163_p3, %s373_s22), 15  ;;  %vm303_vm0 = vcmask 261120  }
   0xc   : > { %274 = vmatpush.bf16.msra.mxu0 %v438_v0  ;;  %439 = vmatpush.bf16.msra.mxu1 %v438_v0  ;;  %v435_v3 = vld [vmem:[%s553_s1 + $0x20] sm:$0xff]  ;;  %v434_v4 = vld [vmem:[%s553_s1 + $0x18] sm:$0xff]  ;;  %v433_v5 = vld [vmem:[%s553_s1 + $0x10] sm:$0xff]  ;;  %s374_s29 = sshll.u32 %s557_s22, 2  ;;  %s376_s8 = sshll.u32 %s557_s22, 3 }
   0xd   : > { %440 = vmatpush.bf16.msra.mxu2 %v438_v0  ;;  %441 = vmatpush.bf16.msra.mxu3 %v438_v0  ;;  %v432_v6 = vld [vmem:[%s553_s1 + $0x8] sm:$0xff]  ;;  %v431_v7 = vld [vmem:[%s553_s1] sm:$0xff]  ;;  %s166_s7 = scalar_lea.vmem %s552_s0, %s374_s29  ;;  %s172_s14 = scalar_lea.vmem %s555_s3, %s376_s8 }
   0xe   : > { %v427_v8 = vld [vmem:[%s166_s7] sm:$0xff]  ;;  %v428_v9 = vld [vmem:[%s166_s7 + $0x8] sm:$0xff]  ;;  %v429_v10 = vld [vmem:[%s166_s7 + $0x10] sm:$0xff] }
   0xf   : > { %v430_v11 = vld [vmem:[%s166_s7 + $0x18] sm:$0xff]  ;;  %v471_v12 = vld [vmem:[%s554_s2] ss:$0 sm:$0xff] }
  0x10   : > { %275 = vmatpush.bf16.msra.mxu0 %v437_v1  ;;  %442 = vmatpush.bf16.msra.mxu1 %v437_v1 }
  0x11   : > { %443 = vmatpush.bf16.msra.mxu2 %v437_v1  ;;  %444 = vmatpush.bf16.msra.mxu3 %v437_v1 }
  0x14   : > { %276 = vmatpush.bf16.msra.mxu0 %v436_v2  ;;  %445 = vmatpush.bf16.msra.mxu1 %v436_v2 }
  0x15   : > { %446 = vmatpush.bf16.msra.mxu2 %v436_v2  ;;  %447 = vmatpush.bf16.msra.mxu3 %v436_v2 }
  0x18   : > { %277 = vmatpush.bf16.msra.mxu0 %v435_v3  ;;  %448 = vmatpush.bf16.msra.mxu1 %v435_v3 }
  0x19   : > { %449 = vmatpush.bf16.msra.mxu2 %v435_v3  ;;  %450 = vmatpush.bf16.msra.mxu3 %v435_v3 }
  0x1c   : > { %278 = vmatpush.bf16.msra.mxu0 %v434_v4  ;;  %451 = vmatpush.bf16.msra.mxu1 %v434_v4 }
  0x1d   : > { %452 = vmatpush.bf16.msra.mxu2 %v434_v4  ;;  %453 = vmatpush.bf16.msra.mxu3 %v434_v4 }
  0x20   : > { %279 = vmatpush.bf16.msra.mxu0 %v433_v5  ;;  %454 = vmatpush.bf16.msra.mxu1 %v433_v5 }
  0x21   : > { %455 = vmatpush.bf16.msra.mxu2 %v433_v5  ;;  %456 = vmatpush.bf16.msra.mxu3 %v433_v5 }
  0x24   : > { %280 = vmatpush.bf16.msra.mxu0 %v432_v6  ;;  %457 = vmatpush.bf16.msra.mxu1 %v432_v6 }
  0x25   : > { %458 = vmatpush.bf16.msra.mxu2 %v432_v6  ;;  %459 = vmatpush.bf16.msra.mxu3 %v432_v6 }
  0x28   : > { %281 = vmatpush.bf16.msra.mxu0 %v431_v7  ;;  %460 = vmatpush.bf16.msra.mxu1 %v431_v7 }
  0x29   : > { %461 = vmatpush.bf16.msra.mxu2 %v431_v7  ;;  %462 = vmatpush.bf16.msra.mxu3 %v431_v7 }
  0x2b   : > { %282 = vmatmul.bf16.vlgmr.msra.gmra.mxu0 %v427_v8  ;;  %287 = vmatmul.bf16.vlgmr.msra.gmra.mxu1 %v428_v9 }
  0x2c   : > { %292 = vmatmul.bf16.vlgmr.msra.gmra.mxu2 %v429_v10  ;;  %297 = vmatmul.bf16.vlgmr.msra.gmra.mxu3 %v430_v11 }
  0xa8   : > { %v283_v13 = vpop.f32.mrf.mxu0  ;;  %v288_v14 = vpop.f32.mrf.mxu1 }
  0xa9   : > { %v284_v15 = vadd.f32 %v471_v12, %v283_v13  ;;  %v289_v16 = vadd.f32 %v471_v12, %v288_v14 }
  0xab   : > { %304 = vst.msk [vmem:[%s172_s14] sm:$0xff] %vm303_vm0, %v284_v15 }
  0xac   : > { %306 = vst.msk [vmem:[%s172_s14 + $0x10] sm:$0xff] %vm303_vm0, %v289_v16 }
  0xaf   : > { %v293_v17 = vpop.f32.mrf.mxu2  ;;  %v298_v18 = vpop.f32.mrf.mxu3 }
  0xb0   : > { %v294_v19 = vadd.f32 %v471_v12, %v293_v17  ;;  %v299_v20 = vadd.f32 %v471_v12, %v298_v18  ;;  %v285_v21 = vpop.f32.mrf.mxu0  ;;  %v290_v22 = vpop.f32.mrf.mxu1 }
  0xb1   : > { %v286_v23 = vadd.f32 %v471_v12, %v285_v21  ;;  %v291_v24 = vadd.f32 %v471_v12, %v290_v22 }
  0xb2   : > { %308 = vst.msk [vmem:[%s172_s14 + $0x20] sm:$0xff] %vm303_vm0, %v294_v19 }
  0xb3   : > { %310 = vst.msk [vmem:[%s172_s14 + $0x30] sm:$0xff] %vm303_vm0, %v299_v20 }
  0xb4   : > { %305 = vst.msk [vmem:[%s172_s14 + $0x8] sm:$0xff] %vm303_vm0, %v286_v23 }
  0xb5   : > { %307 = vst.msk [vmem:[%s172_s14 + $0x18] sm:$0xff] %vm303_vm0, %v291_v24 }
  0xb7   : > { %v295_v25 = vpop.f32.mrf.mxu2  ;;  %v300_v26 = vpop.f32.mrf.mxu3 }
  0xb8   : > { %v296_v27 = vadd.f32 %v471_v12, %v295_v25  ;;  %v301_v28 = vadd.f32 %v471_v12, %v300_v26 }
  0xba   : > { %309 = vst.msk [vmem:[%s172_s14 + $0x28] sm:$0xff] %vm303_vm0, %v296_v27 }
  0xbb   : > { %311 = vst.msk [vmem:[%s172_s14 + $0x38] sm:$0xff] %vm303_vm0, %v301_v28 }
  0xbc PF: > { %s13_s12 = sadd.s32 1, %s478_s12  }
  0xbd   : > { %p10_p4 = scmp.ge.s32.totalorder %s13_s12, 4  }
  0xbf   :  { %12 = sbr.rel (!%p10_p4) target bundleno = 1 (0x1), region = 62 }

// kernel: skip_connection_forward.19
= control target key start
LH: loop header
LB: loop body
LE: loop exit
PB: predicated region body
PF: predicated region fallthrough
CT: control target
= control target key end

     0   :  { %v105_v0 = vmov 0   ;;  %vm90_vm0 = vcmask 517120   ;;  %s209_s2 = inlined_call_operand.vmem [shape: f32[4,1], index: 2, kind: input, shape index: {}]   ;;  %s210_s0 = inlined_call_operand.vmem [shape: bf16[8,4,64], index: 0, kind: input, shape index: {}]   ;;  %s211_s1 = inlined_call_operand.vmem [shape: bf16[8,4,64], index: 1, kind: input, shape index: {}]   ;;  %s212_s3 = inlined_call_operand.vmem [shape: bf16[8,4,64], index: 3, kind: output, shape index: {}]  }
   0x1   :  { %104 = vset.pattern.permute.xlu0 %v105_v0  ;;  %v14_v1 = vld [vmem:[%s209_s2] sm:$0xf]  ;;  %v17_v5 = vld [vmem:[%s210_s0 + $0x4] sm:$0x3]  ;;  %v18_v7 = vld [vmem:[%s210_s0 + $0x6] sm:$0x3] }
   0x2   :  { %v47_v2 = vsub.f32 1.0, %v14_v1  ;;  %v15_v3 = vld [vmem:[%s210_s0] sm:$0x3]  ;;  %v16_v4 = vld [vmem:[%s210_s0 + $0x2] sm:$0x3]  ;;  %v25_v18 = vunpack.c.l.bf16 %v17_v5  ;;  %v26_v23 = vunpack.c.l.bf16 %v18_v7 }
   0x3   :  { %v19_v8 = vld [vmem:[%s210_s0 + $0x8] sm:$0x3]  ;;  %v20_v9 = vld [vmem:[%s210_s0 + $0xa] sm:$0x3]  ;;  %v21_v10 = vld [vmem:[%s210_s0 + $0xc] sm:$0x3]  ;;  %v23_v16 = vunpack.c.l.bf16 %v15_v3  ;;  %v24_v17 = vunpack.c.l.bf16 %v16_v4 }
   0x4   :  { %50 = vperm.xlu0 %104, %v47_v2   ;;  %v31_v11 = vld [vmem:[%s211_s1] sm:$0x3]  ;;  %v32_v12 = vld [vmem:[%s211_s1 + $0x2] sm:$0x3]  ;;  %v33_v13 = vld [vmem:[%s211_s1 + $0x4] sm:$0x3]  ;;  %v27_v24 = vunpack.c.l.bf16 %v19_v8  ;;  %v28_v25 = vunpack.c.l.bf16 %v20_v9  ;;  %v29_v26 = vunpack.c.l.bf16 %v21_v10 }
   0x5   :  { %v34_v14 = vld [vmem:[%s211_s1 + $0x6] sm:$0x3]  ;;  %v35_v15 = vld [vmem:[%s211_s1 + $0x8] sm:$0x3]  ;;  %v36_v19 = vld [vmem:[%s211_s1 + $0xa] sm:$0x3]  ;;  %v39_v27 = vunpack.c.l.bf16 %v31_v11  ;;  %v40_v28 = vunpack.c.l.bf16 %v32_v12  ;;  %v41_v29 = vunpack.c.l.bf16 %v33_v13 }
   0x6   :  { %v37_v20 = vld [vmem:[%s211_s1 + $0xc] sm:$0x3]  ;;  %v38_v21 = vld [vmem:[%s211_s1 + $0xe] sm:$0x3]  ;;  %v42_v30 = vunpack.c.l.bf16 %v34_v14  ;;  %v43_v31 = vunpack.c.l.bf16 %v35_v15  ;;  %v44_v32 = vunpack.c.l.bf16 %v36_v19 }
   0x7   :  { %v22_v22 = vld [vmem:[%s210_s0 + $0xe] sm:$0x3]  ;;  %v45_v33 = vunpack.c.l.bf16 %v37_v20  ;;  %v46_v34 = vunpack.c.l.bf16 %v38_v21 }
   0x8   :  { %v30_v35 = vunpack.c.l.bf16 %v22_v22 }
   0xc   :  { %63 = vperm.xlu0 %104, %v14_v1  }
  0x76   :  { %v51_v6 = vpop.permute.xlu0 %50 }
  0x77   :  { %v53_v36 = vmul.f32 %v51_v6, %v23_v16  ;;  %v54_v37 = vmul.f32 %v51_v6, %v24_v17  ;;  %v55_v38 = vmul.f32 %v51_v6, %v25_v18  ;;  %v56_v40 = vmul.f32 %v51_v6, %v26_v23 }
  0x78   :  { %v57_v41 = vmul.f32 %v51_v6, %v27_v24  ;;  %v58_v42 = vmul.f32 %v51_v6, %v28_v25  ;;  %v59_v43 = vmul.f32 %v51_v6, %v29_v26  ;;  %v60_v56 = vmul.f32 %v51_v6, %v30_v35 }
  0x7e   :  { %v64_v39 = vpop.permute.xlu0 %63 }
  0x7f   :  { %v66_v44 = vmul.f32 %v64_v39, %v39_v27  ;;  %v67_v45 = vmul.f32 %v64_v39, %v40_v28  ;;  %v68_v46 = vmul.f32 %v64_v39, %v41_v29  ;;  %v69_v47 = vmul.f32 %v64_v39, %v42_v30 }
  0x80   :  { %v70_v48 = vmul.f32 %v64_v39, %v43_v31  ;;  %v71_v49 = vmul.f32 %v64_v39, %v44_v32  ;;  %v72_v50 = vmul.f32 %v64_v39, %v45_v33  ;;  %v73_v51 = vmul.f32 %v64_v39, %v46_v34 }
  0x81   :  { %v74_v52 = vadd.f32 %v66_v44, %v53_v36  ;;  %v75_v53 = vadd.f32 %v67_v45, %v54_v37  ;;  %v76_v54 = vadd.f32 %v68_v46, %v55_v38  ;;  %v77_v55 = vadd.f32 %v69_v47, %v56_v40 }
  0x82   :  { %v78_v57 = vadd.f32 %v70_v48, %v57_v41  ;;  %v79_v58 = vadd.f32 %v71_v49, %v58_v42  ;;  %v80_v59 = vadd.f32 %v72_v50, %v59_v43  ;;  %v81_v63 = vadd.f32 %v73_v51, %v60_v56 }
  0x83   :  { %v82_v60 = vpack.c.bf16 %v74_v52, %v74_v52  ;;  %v83_v61 = vpack.c.bf16 %v75_v53, %v75_v53  ;;  %v84_v62 = vpack.c.bf16 %v76_v54, %v76_v54  ;;  %v85_v0 = vpack.c.bf16 %v77_v55, %v77_v55 }
  0x84   :  { %v86_v1 = vpack.c.bf16 %v78_v57, %v78_v57  ;;  %v87_v2 = vpack.c.bf16 %v79_v58, %v79_v58  ;;  %v88_v3 = vpack.c.bf16 %v80_v59, %v80_v59  ;;  %v89_v4 = vpack.c.bf16 %v81_v63, %v81_v63 }
  0x85   :  { %91 = vst.msk [vmem:[%s212_s3] sm:$0x3] %vm90_vm0, %v82_v60 }
  0x86   :  { %92 = vst.msk [vmem:[%s212_s3 + $0x2] sm:$0x3] %vm90_vm0, %v83_v61 }
  0x87   :  { %93 = vst.msk [vmem:[%s212_s3 + $0x4] sm:$0x3] %vm90_vm0, %v84_v62 }
  0x88   :  { %94 = vst.msk [vmem:[%s212_s3 + $0x6] sm:$0x3] %vm90_vm0, %v85_v0 }
  0x89   :  { %95 = vst.msk [vmem:[%s212_s3 + $0x8] sm:$0x3] %vm90_vm0, %v86_v1 }
  0x8a   :  { %96 = vst.msk [vmem:[%s212_s3 + $0xa] sm:$0x3] %vm90_vm0, %v87_v2 }
  0x8b   :  { %97 = vst.msk [vmem:[%s212_s3 + $0xc] sm:$0x3] %vm90_vm0, %v88_v3 }
  0x8c   :  { %98 = vst.msk [vmem:[%s212_s3 + $0xe] sm:$0x3] %vm90_vm0, %v89_v4 }

// kernel: skip_connection_forward.20
= control target key start
LH: loop header
LB: loop body
LE: loop exit
PB: predicated region body
PF: predicated region fallthrough
CT: control target
= control target key end

     0   :  { %v147_v0 = vmov 0   ;;  %v148_v3 = vmov 839922192   ;;  %vm101_vm0 = vcmask 1041408   ;;  %s200_s2 = inlined_call_operand.vmem [shape: f32[4,1], index: 2, kind: input, shape index: {}]   ;;  %s201_s0 = inlined_call_operand.vmem [shape: bf16[4,4,256], index: 0, kind: input, shape index: {}]   ;;  %s202_s1 = inlined_call_operand.vmem [shape: bf16[4,4,256], index: 1, kind: input, shape index: {}]   ;;  %s203_s3 = inlined_call_operand.vmem [shape: bf16[4,4,256], index: 3, kind: output, shape index: {}]  }
   0x1   :  { %146 = vset.pattern.permute.xlu0 %v147_v0  ;;  %v14_v1 = vld [vmem:[%s200_s2] sm:$0xf]  ;;  %v37_v4 = vunpack.c.l.s4 %v148_v3  ;;  %v142_v8 = vld [vmem:[%s201_s0 + $0x8] sm:$0xff]  }
   0x2   :  { %v31_v2 = vsub.f32 1.0, %v14_v1  ;;  %v127_v7 = vld [vmem:[%s201_s0] sm:$0xff]   ;;  %v143_v10 = vld [vmem:[%s202_s1 + $0x8] sm:$0xff]   ;;  %v132_v13 = vunpack.c.l.bf16 %v142_v8  ;;  %v133_v19 = vunpack.c.h.bf16 %v142_v8 }
   0x3   :  { %v38_v6 = vunpack.c.0.s8 %v37_v4  ;;  %v135_v9 = vld [vmem:[%s202_s1] sm:$0xff]   ;;  %v128_v11 = vunpack.c.l.bf16 %v127_v7  ;;  %v129_v12 = vunpack.c.h.bf16 %v127_v7  ;;  %v140_v17 = vunpack.c.l.bf16 %v143_v10 }
   0x4   :  { %34 = vperm.xlu0 %146, %v31_v2   ;;  %v136_v15 = vunpack.c.l.bf16 %v135_v9  ;;  %v137_v16 = vunpack.c.h.bf16 %v135_v9  ;;  %v141_v18 = vunpack.c.h.bf16 %v143_v10 }
   0xc   :  { %47 = vperm.xlu0 %146, %v14_v1  }
  0x76   :  { %v35_v5 = vpop.permute.xlu0 %34 }
  0x77   :  { %v39_v14 = vperm.slane %v35_v5, %v38_v6 }
  0x79   :  { %v41_v22 = vmul.f32 %v128_v11, %v39_v14  ;;  %v42_v23 = vmul.f32 %v129_v12, %v39_v14  ;;  %v43_v24 = vmul.f32 %v132_v13, %v39_v14  ;;  %v44_v29 = vmul.f32 %v133_v19, %v39_v14 }
  0x7e   :  { %v48_v20 = vpop.permute.xlu0 %47 }
  0x7f   :  { %v52_v21 = vperm.slane %v48_v20, %v38_v6 }
  0x81   :  { %v54_v25 = vmul.f32 %v136_v15, %v52_v21  ;;  %v55_v26 = vmul.f32 %v137_v16, %v52_v21  ;;  %v56_v27 = vmul.f32 %v140_v17, %v52_v21  ;;  %v57_v28 = vmul.f32 %v141_v18, %v52_v21 }
  0x83   :  { %v58_v30 = vadd.f32 %v54_v25, %v41_v22  ;;  %v59_v31 = vadd.f32 %v55_v26, %v42_v23  ;;  %v60_v32 = vadd.f32 %v56_v27, %v43_v24  ;;  %v61_v33 = vadd.f32 %v57_v28, %v44_v29 }
  0x85   :  { %66 = vst [vmem:[#allocation1] ss:$2 sm:$0xff] %v58_v30 }
  0x86   :  { %70 = vst [vmem:[#allocation1 + $0x10] ss:$2 sm:$0xff] %v59_v31 }
  0x87   :  { %74 = vst [vmem:[#allocation1 + $0x20] ss:$2 sm:$0xff] %v60_v32 }
  0x88   :  { %78 = vst [vmem:[#allocation1 + $0x30] ss:$2 sm:$0xff] %v61_v33 }
  0x8c   :  { %v67_v34 = vld.sshfl [vmem:[#allocation1] sm:$0xff pattern:$0x75316420]  ;;  %v68_v35 = vld.sshfl [vmem:[#allocation1 + $0x8] sm:$0xff pattern:$0x75316420] }
  0x8d   :  { %v71_v36 = vld.sshfl [vmem:[#allocation1 + $0x10] sm:$0xff pattern:$0x75316420]  ;;  %v72_v37 = vld.sshfl [vmem:[#allocation1 + $0x18] sm:$0xff pattern:$0x75316420]  ;;  %v89_v38 = vpack.c.bf16 %v68_v35, %v67_v34 }
  0x8e   :  { %v75_v39 = vld.sshfl [vmem:[#allocation1 + $0x20] sm:$0xff pattern:$0x75316420]  ;;  %v76_v40 = vld.sshfl [vmem:[#allocation1 + $0x28] sm:$0xff pattern:$0x75316420]  ;;  %v90_v41 = vpack.c.bf16 %v72_v37, %v71_v36 }
  0x8f   :  { %v79_v42 = vld.sshfl [vmem:[#allocation1 + $0x30] sm:$0xff pattern:$0x75316420]  ;;  %v80_v43 = vld.sshfl [vmem:[#allocation1 + $0x38] sm:$0xff pattern:$0x75316420]  ;;  %v91_v44 = vpack.c.bf16 %v76_v40, %v75_v39 }
  0x90   :  { %v92_v45 = vpack.c.bf16 %v80_v43, %v79_v42  ;;  %v97_v46 = vrot.slane %v89_v38, 2  ;;  %v98_v47 = vrot.slane %v90_v41, 2 }
  0x91   :  { %v99_v48 = vrot.slane %v91_v44, 2 }
  0x92   :  { %v100_v49 = vrot.slane %v92_v45, 2  ;;  %v104_v50 = vsel %vm101_vm0, %v89_v38, %v97_v46  ;;  %v107_v51 = vsel %vm101_vm0, %v90_v41, %v98_v47 }
  0x93   :  { %v110_v52 = vsel %vm101_vm0, %v91_v44, %v99_v48  ;;  %118 = vst [vmem:[%s203_s3] sm:$0xf] %v104_v50 }
  0x94   :  { %v113_v53 = vsel %vm101_vm0, %v92_v45, %v100_v49  ;;  %119 = vst [vmem:[%s203_s3 + $0x4] sm:$0xf] %v107_v51 }
  0x95   :  { %120 = vst [vmem:[%s203_s3 + $0x8] sm:$0xf] %v110_v52 }
  0x96   :  { %121 = vst [vmem:[%s203_s3 + $0xc] sm:$0xf] %v113_v53 }

// kernel: skip_connection_forward.21
= control target key start
LH: loop header
LB: loop body
LE: loop exit
PB: predicated region body
PF: predicated region fallthrough
CT: control target
= control target key end

     0   :  { %v207_v0 = vmov 0   ;;  %v208_v3 = vmov 839922192   ;;  %vm161_vm0 = vcmask 1041408   ;;  %vm165_vm1 = vcmask 1045508   ;;  %s280_s2 = inlined_call_operand.vmem [shape: f32[4,1], index: 2, kind: input, shape index: {}]   ;;  %s281_s0 = inlined_call_operand.vmem [shape: bf16[2,4,1024], index: 0, kind: input, shape index: {}]   ;;  %s282_s1 = inlined_call_operand.vmem [shape: bf16[2,4,1024], index: 1, kind: input, shape index: {}]   ;;  %s283_s3 = inlined_call_operand.vmem [shape: bf16[2,4,1024], index: 3, kind: output, shape index: {}]  }
   0x1   :  { %206 = vset.pattern.permute.xlu0 %v207_v0  ;;  %v14_v1 = vld [vmem:[%s280_s2] sm:$0xf]  ;;  %v45_v4 = vunpack.c.l.s4 %v208_v3  ;;  %v16_v8 = vld [vmem:[%s281_s0 + $0x8] sm:$0xff]  ;;  %v29_v30 = vld [vmem:[%s282_s1 + $0x10] sm:$0xff]  ;;  %vm169_vm2 = vcmask 1043456  }
   0x2   :  { %v39_v2 = vsub.f32 1.0, %v14_v1  ;;  %v15_v7 = vld [vmem:[%s281_s0] sm:$0xff]  ;;  %v28_v10 = vld [vmem:[%s282_s1 + $0x8] sm:$0xff]  ;;  %v21_v13 = vunpack.c.l.bf16 %v16_v8  ;;  %v22_v19 = vunpack.c.h.bf16 %v16_v8  ;;  %v30_v34 = vld [vmem:[%s282_s1 + $0x18] sm:$0xff]  ;;  %v35_v38 = vunpack.c.l.bf16 %v29_v30 }
   0x3   :  { %v46_v6 = vunpack.c.0.s8 %v45_v4  ;;  %v27_v9 = vld [vmem:[%s282_s1] sm:$0xff]  ;;  %v19_v11 = vunpack.c.l.bf16 %v15_v7  ;;  %v20_v12 = vunpack.c.h.bf16 %v15_v7  ;;  %v33_v17 = vunpack.c.l.bf16 %v28_v10  ;;  %v17_v36 = vld [vmem:[%s281_s0 + $0x10] sm:$0xff]  ;;  %v18_v37 = vld [vmem:[%s281_s0 + $0x18] sm:$0xff] }
   0x4   :  { %42 = vperm.xlu0 %206, %v39_v2   ;;  %v31_v15 = vunpack.c.l.bf16 %v27_v9  ;;  %v32_v16 = vunpack.c.h.bf16 %v27_v9  ;;  %v34_v18 = vunpack.c.h.bf16 %v28_v10  ;;  %v36_v39 = vunpack.c.h.bf16 %v29_v30 }
   0x5   :  { %v37_v40 = vunpack.c.l.bf16 %v30_v34  ;;  %v23_v41 = vunpack.c.l.bf16 %v17_v36  ;;  %v24_v42 = vunpack.c.h.bf16 %v17_v36  ;;  %v25_v43 = vunpack.c.l.bf16 %v18_v37 }
   0x6   :  { %v38_v44 = vunpack.c.h.bf16 %v30_v34  ;;  %v26_v45 = vunpack.c.h.bf16 %v18_v37 }
   0xc   :  { %59 = vperm.xlu0 %206, %v14_v1  }
  0x76   :  { %v43_v5 = vpop.permute.xlu0 %42 }
  0x77   :  { %v47_v14 = vperm.slane %v43_v5, %v46_v6 }
  0x79   :  { %v49_v22 = vmul.f32 %v47_v14, %v19_v11  ;;  %v50_v23 = vmul.f32 %v47_v14, %v20_v12  ;;  %v51_v24 = vmul.f32 %v47_v14, %v21_v13  ;;  %v52_v29 = vmul.f32 %v47_v14, %v22_v19 }
  0x7a   :  { %v53_v49 = vmul.f32 %v47_v14, %v23_v41  ;;  %v54_v52 = vmul.f32 %v47_v14, %v24_v42  ;;  %v55_v53 = vmul.f32 %v47_v14, %v25_v43  ;;  %v56_v62 = vmul.f32 %v47_v14, %v26_v45 }
  0x7e   :  { %v60_v20 = vpop.permute.xlu0 %59 }
  0x7f   :  { %v64_v21 = vperm.slane %v60_v20, %v46_v6 }
  0x81   :  { %v66_v25 = vmul.f32 %v64_v21, %v31_v15  ;;  %v67_v26 = vmul.f32 %v64_v21, %v32_v16  ;;  %v68_v27 = vmul.f32 %v64_v21, %v33_v17  ;;  %v69_v28 = vmul.f32 %v64_v21, %v34_v18 }
  0x82   :  { %v70_v46 = vmul.f32 %v64_v21, %v35_v38  ;;  %v71_v47 = vmul.f32 %v64_v21, %v36_v39  ;;  %v72_v48 = vmul.f32 %v64_v21, %v37_v40  ;;  %v73_v54 = vmul.f32 %v64_v21, %v38_v44 }
  0x83   :  { %v74_v31 = vadd.f32 %v66_v25, %v49_v22  ;;  %v75_v32 = vadd.f32 %v67_v26, %v50_v23  ;;  %v76_v33 = vadd.f32 %v68_v27, %v51_v24  ;;  %v77_v35 = vadd.f32 %v69_v28, %v52_v29 }
  0x84   :  { %v78_v58 = vadd.f32 %v70_v46, %v53_v49  ;;  %v79_v63 = vadd.f32 %v71_v47, %v54_v52  ;;  %v80_v0 = vadd.f32 %v72_v48, %v55_v53  ;;  %v81_v8 = vadd.f32 %v73_v54, %v56_v62 }
  0x85   :  { %90 = vst [vmem:[#allocation1] ss:$2 sm:$0xff] %v74_v31 }
  0x86   :  { %92 = vst [vmem:[#allocation1 + $0x10] ss:$2 sm:$0xff] %v75_v32 }
  0x87   :  { %94 = vst [vmem:[#allocation1 + $0x20] ss:$2 sm:$0xff] %v76_v33 }
  0x88   :  { %96 = vst [vmem:[#allocation1 + $0x30] ss:$2 sm:$0xff] %v77_v35 }
  0x8c   :  { %v97_v50 = vld.sshfl [vmem:[#allocation1] sm:$0xff pattern:$0x75316420]  ;;  %v98_v51 = vld.sshfl [vmem:[#allocation1 + $0x8] sm:$0xff pattern:$0x75316420] }
  0x8d   :  { %v99_v55 = vld.sshfl [vmem:[#allocation1 + $0x10] sm:$0xff pattern:$0x75316420]  ;;  %v100_v56 = vld.sshfl [vmem:[#allocation1 + $0x18] sm:$0xff pattern:$0x75316420]  ;;  %v133_v57 = vpack.c.bf16 %v98_v51, %v97_v50 }
  0x8e   :  { %v101_v59 = vld.sshfl [vmem:[#allocation1 + $0x20] sm:$0xff pattern:$0x75316420]  ;;  %v102_v60 = vld.sshfl [vmem:[#allocation1 + $0x28] sm:$0xff pattern:$0x75316420]  ;;  %v134_v61 = vpack.c.bf16 %v100_v56, %v99_v55 }
  0x8f   :  { %v103_v1 = vld.sshfl [vmem:[#allocation1 + $0x30] sm:$0xff pattern:$0x75316420]  ;;  %v104_v2 = vld.sshfl [vmem:[#allocation1 + $0x38] sm:$0xff pattern:$0x75316420]  ;;  %v135_v3 = vpack.c.bf16 %v102_v60, %v101_v59 }
  0x90   :  { %105 = vst [vmem:[#allocation1] ss:$2 sm:$0xff] %v78_v58  ;;  %v136_v4 = vpack.c.bf16 %v104_v2, %v103_v1  ;;  %v149_v5 = vrot.slane %v133_v57, 2  ;;  %v150_v6 = vrot.slane %v134_v61, 4  ;;  %v151_v7 = vrot.slane %v134_v61, 6 }
  0x91   :  { %106 = vst [vmem:[#allocation1 + $0x10] ss:$2 sm:$0xff] %v79_v63  ;;  %v152_v9 = vrot.slane %v135_v3, 2 }
  0x92   :  { %107 = vst [vmem:[#allocation1 + $0x20] ss:$2 sm:$0xff] %v80_v0  ;;  %v153_v10 = vrot.slane %v136_v4, 4  ;;  %v154_v11 = vrot.slane %v136_v4, 6  ;;  %v164_v12 = vsel %vm161_vm0, %v133_v57, %v149_v5  ;;  %v168_v13 = vsel %vm165_vm1, %v150_v6, %v151_v7 }
  0x93   :  { %108 = vst [vmem:[#allocation1 + $0x30] ss:$2 sm:$0xff] %v81_v8  ;;  %v170_v14 = vsel %vm169_vm2, %v164_v12, %v168_v13  ;;  %v173_v15 = vsel %vm161_vm0, %v135_v3, %v152_v9 }
  0x94   :  { %v176_v16 = vsel %vm165_vm1, %v153_v10, %v154_v11  ;;  %196 = vst [vmem:[%s283_s3] sm:$0xff] %v170_v14 }
  0x95   :  { %v177_v17 = vsel %vm169_vm2, %v173_v15, %v176_v16 }
  0x96   :  { %197 = vst [vmem:[%s283_s3 + $0x8] sm:$0xff] %v177_v17 }
  0x97   :  { %v109_v18 = vld.sshfl [vmem:[#allocation1] sm:$0xff pattern:$0x75316420]  ;;  %v110_v19 = vld.sshfl [vmem:[#allocation1 + $0x8] sm:$0xff pattern:$0x75316420] }
  0x98   :  { %v111_v20 = vld.sshfl [vmem:[#allocation1 + $0x10] sm:$0xff pattern:$0x75316420]  ;;  %v112_v21 = vld.sshfl [vmem:[#allocation1 + $0x18] sm:$0xff pattern:$0x75316420]  ;;  %v137_v22 = vpack.c.bf16 %v110_v19, %v109_v18 }
  0x99   :  { %v113_v23 = vld.sshfl [vmem:[#allocation1 + $0x20] sm:$0xff pattern:$0x75316420]  ;;  %v114_v24 = vld.sshfl [vmem:[#allocation1 + $0x28] sm:$0xff pattern:$0x75316420]  ;;  %v138_v25 = vpack.c.bf16 %v112_v21, %v111_v20 }
  0x9a   :  { %v115_v26 = vld.sshfl [vmem:[#allocation1 + $0x30] sm:$0xff pattern:$0x75316420]  ;;  %v116_v27 = vld.sshfl [vmem:[#allocation1 + $0x38] sm:$0xff pattern:$0x75316420]  ;;  %v139_v28 = vpack.c.bf16 %v114_v24, %v113_v23 }
  0x9b   :  { %v140_v29 = vpack.c.bf16 %v116_v27, %v115_v26  ;;  %v155_v30 = vrot.slane %v137_v22, 2  ;;  %v156_v31 = vrot.slane %v138_v25, 4  ;;  %v157_v32 = vrot.slane %v138_v25, 6 }
  0x9c   :  { %v158_v33 = vrot.slane %v139_v28, 2 }
  0x9d   :  { %v159_v34 = vrot.slane %v140_v29, 4  ;;  %v160_v35 = vrot.slane %v140_v29, 6  ;;  %v180_v36 = vsel %vm161_vm0, %v137_v22, %v155_v30  ;;  %v183_v37 = vsel %vm165_vm1, %v156_v31, %v157_v32 }
  0x9e   :  { %v184_v38 = vsel %vm169_vm2, %v180_v36, %v183_v37  ;;  %v187_v39 = vsel %vm161_vm0, %v139_v28, %v158_v33 }
  0x9f   :  { %v190_v40 = vsel %vm165_vm1, %v159_v34, %v160_v35  ;;  %198 = vst [vmem:[%s283_s3 + $0x10] sm:$0xff] %v184_v38 }
  0xa0   :  { %v191_v41 = vsel %vm169_vm2, %v187_v39, %v190_v40 }
  0xa1   :  { %199 = vst [vmem:[%s283_s3 + $0x18] sm:$0xff] %v191_v41 }

// kernel: skip_connection_forward.24
= control target key start
LH: loop header
LB: loop body
LE: loop exit
PB: predicated region body
PF: predicated region fallthrough
CT: control target
= control target key end

     0   :  { %9 = vsyncpa [#allocation3], 0  ;;  %s843_s0 = inlined_call_operand.vmem [shape: f32[128,32], index: 0, kind: input, shape index: {}]   ;;  %s844_s1 = inlined_call_operand.vmem [shape: f32[128,32], index: 1, kind: input, shape index: {}]   ;;  %s845_s2 = inlined_call_operand.vmem [shape: bf16[128,64], index: 2, kind: input, shape index: {}]   ;;  %s846_s3 = inlined_call_operand.vmem [shape: bf16[64,32], index: 3, kind: input, shape index: {}]   ;;  %s847_s4 = inlined_call_operand.hbm [shape: f32[128,32], index: 4, kind: output, shape index: {}]  }
   0x1   :  { %11 = vsyncpa [#allocation3 + $0x1], 0  ;;  %s694_s15 = smov 0   ;;  %s696_s16 = smov 0  }
   0x2   :  { %s698_s17 = smov 0   ;;  %s700_s18 = smov 0  }
   0x3 LB: > { %s715_s19 = sadd.s32 4294967295, %s665_s18   ;;  %s489_s20 = sadd.s32 4294967294, %s665_s18   ;;  %s665_s18 = sphi %s700_s18, %s853_s18   ;;  %s661_s17 = sphi %s698_s17, %s852_s17   ;;  %s657_s16 = sphi %s696_s16, %s851_s16   ;;  %s653_s15 = sphi %s694_s15, %s850_s15  }
   0x4   : > { %s719_s21 = sadd.s32 1, %s665_s18   ;;  %s123_s22 = sadd.s32 1, %s661_s17 }
   0x5   : > { %s120_s23 = ssub.s32 %s665_s18, %s719_s21  ;;  %p133_p0 = scmp.ne.s32.totalorder %s661_s17, %s657_s16 }
   0x6   : > { %p121_p1 = scmp.eq.s32.totalorder %s120_s23, 0  ;;  %p134_p2 = scmp.eq.s32.totalorder %s715_s19, 1 }
   0x7   : > { %p139_p3 = scmp.ne.s32.totalorder %s657_s16, %s653_s15  ;;  %p140_p4 = scmp.eq.s32.totalorder %s489_s20, 1 }
   0x8   : > { %s730_s24 = scalar_select %p121_p1, %s661_s17, %s123_s22  }
   0x9   : > { %p732_p5 = por %p134_p2, %p133_p0  ;;  %p736_p6 = por %p140_p4, %p139_p3 }
   0xa   : > { %p492_p7 = scmp.ge.s32.totalorder %s665_s18, 1  ;;  %p188_p8 = scmp.lt.s32.totalorder %s665_s18, 3 }
   0xc   : > { %p189_p9 = pnand %p492_p7, %p188_p8 }
   0xd   : > { %s494_s29 = sshll.u32 (!%p189_p9), %s715_s19, 3  ;;  %s549_s7 = sshll.u32 (!%p189_p9), %s715_s19, 6 }
   0xe   : > { %192 = sbr.rel (%p189_p9) target bundleno = 183 (0xb7), region = 36  ;;  %p225_p10 = scmp.lt.s32.totalorder (!%p189_p9), %s494_s29, 15 }
   0xf   : > { %s399_s19 = scalar_lea.hbm (!%p189_p9), %s847_s4, %s549_s7 }
  0x10   : > { %s402_s11 = sshll.u32 (!%p189_p9), %s399_s19, 4  ;;  %s403_s11 = int_to_ptr.hbm [resolvable:$true] %s402_s11 }
  0x13   : > { %v548_v0 = vld [vmem:[%s846_s3 + $0x18] sm:$0xff]  ;;  %v547_v1 = vld [vmem:[%s846_s3 + $0x10] sm:$0xff]  ;;  %s855_s29 = smov (!%p225_p10, %s494_s29), 15  ;;  %v546_v2 = vld [vmem:[%s846_s3 + $0x8] sm:$0xff]  ;;  %vm304_vm0 = vcmask 523264   ;;  %vm378_vm1 = vcmask 261120  }
  0x14   : > { %321 = vmatpush.bf16.msra.mxu0 %v548_v0  ;;  %550 = vmatpush.bf16.msra.mxu1 %v548_v0  ;;  %s499_s8 = sshll.u32 %s855_s29, 2  ;;  %v545_v3 = vld [vmem:[%s846_s3] sm:$0xff]  ;;  %s495_s14 = sshll.u32 %s855_s29, 3 }
  0x15   : > { %551 = vmatpush.bf16.msra.mxu2 %v548_v0  ;;  %552 = vmatpush.bf16.msra.mxu3 %v548_v0  ;;  %s240_s13 = scalar_lea.vmem %s845_s2, %s499_s8  ;;  %s765_s23 = scalar_lea.vmem %s843_s0, %s495_s14 }
  0x16   : > { %v541_v4 = vld [vmem:[%s240_s13] sm:$0xff]  ;;  %v542_v5 = vld [vmem:[%s240_s13 + $0x8] sm:$0xff]  ;;  %v543_v6 = vld [vmem:[%s240_s13 + $0x10] sm:$0xff]  ;;  %s770_s30 = scalar_lea.vmem %s844_s1, %s495_s14  ;;  %s221_s29 = sand.u32 1, %s657_s16  }
  0x17   : > { %v544_v7 = vld [vmem:[%s240_s13 + $0x18] sm:$0xff]  ;;  %v346_v8 = vld [vmem:[%s765_s23] sm:$0xff]  ;;  %v348_v10 = vld [vmem:[%s765_s23 + $0x10] sm:$0xff]  ;;  %s493_s5 = sshll.u32 %s221_s29, 6  ;;  %s388_s12 = scalar_lea.sflag [#allocation3], %s221_s29 }
  0x18   : > { %322 = vmatpush.bf16.msra.mxu0 %v547_v1  ;;  %553 = vmatpush.bf16.msra.mxu1 %v547_v1  ;;  %v354_v9 = vld [vmem:[%s770_s30] sm:$0xff]  ;;  %v356_v11 = vld [vmem:[%s770_s30 + $0x10] sm:$0xff]  ;;  %v347_v22 = vld [vmem:[%s765_s23 + $0x8] sm:$0xff]  ;;  %s787_s6 = scalar_lea.vmem [#allocation2], %s493_s5  ;;  %s617_s13 = sshra.s32 %s403_s11, 4  ;;  %s618_s13 = int_to_ptr.hbm [resolvable:$true] %s617_s13 }
  0x19   : > { %554 = vmatpush.bf16.msra.mxu2 %v547_v1  ;;  %555 = vmatpush.bf16.msra.mxu3 %v547_v1  ;;  %v362_v12 = vadd.f32 %v354_v9, %v346_v8  ;;  %v364_v13 = vadd.f32 %v356_v11, %v348_v10  ;;  %v350_v16 = vld [vmem:[%s765_s23 + $0x20] sm:$0xff]  ;;  %v352_v20 = vld [vmem:[%s765_s23 + $0x30] sm:$0xff]  ;;  %v355_v23 = vld [vmem:[%s770_s30 + $0x8] sm:$0xff]  ;;  %s400_s10 = sshll.u32 %s787_s6, 4  ;;  %s619_s14 = scalar_lea.hbm %s618_s13, 64  ;;  %s401_s10 = int_to_ptr.vmem [resolvable:$true] %s400_s10 }
  0x1a   : > { %v358_v17 = vld [vmem:[%s770_s30 + $0x20] sm:$0xff]  ;;  %v360_v21 = vld [vmem:[%s770_s30 + $0x30] sm:$0xff]  ;;  %v349_v24 = vld [vmem:[%s765_s23 + $0x18] sm:$0xff]  ;;  %v363_v28 = vadd.f32 %v355_v23, %v347_v22  ;;  %p620_p11 = scmp.ne.s32.totalorder %s618_s13, %s619_s14  ;;  %p624_p0 = scmp.lt.s32.totalorder %s618_s13, %s847_s4 }
  0x1b   : > { %v357_v25 = vld [vmem:[%s770_s30 + $0x18] sm:$0xff]  ;;  %v366_v26 = vadd.f32 %v358_v17, %v350_v16  ;;  %v368_v27 = vadd.f32 %v360_v21, %v352_v20  ;;  %v351_v36 = vld [vmem:[%s765_s23 + $0x28] sm:$0xff] }
  0x1c   : > { %323 = vmatpush.bf16.msra.mxu0 %v546_v2  ;;  %556 = vmatpush.bf16.msra.mxu1 %v546_v2  ;;  %v365_v29 = vadd.f32 %v357_v25, %v349_v24  ;;  %v359_v39 = vld [vmem:[%s770_s30 + $0x28] sm:$0xff]  ;;  %v353_v40 = vld [vmem:[%s765_s23 + $0x38] sm:$0xff]  ;;  %p621_p12 = pnand %p620_p11, %p732_p5  ;;  %s623_s23 = scalar_lea.hbm %s847_s4, 128 }
  0x1d   : > { %557 = vmatpush.bf16.msra.mxu2 %v546_v2  ;;  %558 = vmatpush.bf16.msra.mxu3 %v546_v2  ;;  %v361_v41 = vld [vmem:[%s770_s30 + $0x38] sm:$0xff]  ;;  %v367_v42 = vadd.f32 %v359_v39, %v351_v36  ;;  %p625_p1 = scmp.lt.s32.totalorder %s623_s23, %s619_s14 }
  0x1e   : > { %v369_v43 = vadd.f32 %v361_v41, %v353_v40  ;;  %p622_p13 = pneg %p621_p12 }
  0x1f   : > { %p626_p2 = por %p625_p1, %p624_p0 }
  0x20   : > { %324 = vmatpush.bf16.msra.mxu0 %v545_v3  ;;  %559 = vmatpush.bf16.msra.mxu1 %v545_v3 }
  0x21   : > { %560 = vmatpush.bf16.msra.mxu2 %v545_v3  ;;  %561 = vmatpush.bf16.msra.mxu3 %v545_v3  ;;  %p627_p3 = pnand %p626_p2, %p622_p13 }
  0x23   : > { %532 = vmatmul.msk.bf16.vlgmr.msra.gmra.mxu0 %vm304_vm0, %v541_v4  ;;  %533 = vmatmul.msk.bf16.vlgmr.msra.gmra.mxu1 %vm304_vm0, %v542_v5 }
  0x24   : > { %534 = vmatmul.msk.bf16.vlgmr.msra.gmra.mxu2 %vm304_vm0, %v543_v6  ;;  %535 = vmatmul.msk.bf16.vlgmr.msra.gmra.mxu3 %vm304_vm0, %v544_v7 }
  0xa0   : > { %v326_v14 = vpop.f32.mrf.mxu0  ;;  %v331_v15 = vpop.f32.mrf.mxu1 }
  0xa1   : > { %v370_v18 = vadd.f32 %v362_v12, %v326_v14  ;;  %v372_v19 = vadd.f32 %v364_v13, %v331_v15 }
  0xa3   : > { %379 = vst.msk [vmem:[%s787_s6] sm:$0xff] %vm378_vm1, %v370_v18 }
  0xa4   : > { %381 = vst.msk [vmem:[%s787_s6 + $0x10] sm:$0xff] %vm378_vm1, %v372_v19 }
  0xa7   : > { %v336_v30 = vpop.f32.mrf.mxu2  ;;  %v341_v31 = vpop.f32.mrf.mxu3 }
  0xa8   : > { %v374_v32 = vadd.f32 %v366_v26, %v336_v30  ;;  %v376_v33 = vadd.f32 %v368_v27, %v341_v31  ;;  %v328_v34 = vpop.f32.mrf.mxu0  ;;  %v333_v35 = vpop.f32.mrf.mxu1 }
  0xa9   : > { %v371_v37 = vadd.f32 %v363_v28, %v328_v34  ;;  %v373_v38 = vadd.f32 %v365_v29, %v333_v35 }
  0xaa   : > { %383 = vst.msk [vmem:[%s787_s6 + $0x20] sm:$0xff] %vm378_vm1, %v374_v32 }
  0xab   : > { %385 = vst.msk [vmem:[%s787_s6 + $0x30] sm:$0xff] %vm378_vm1, %v376_v33 }
  0xac   : > { %380 = vst.msk [vmem:[%s787_s6 + $0x8] sm:$0xff] %vm378_vm1, %v371_v37 }
  0xad   : > { %382 = vst.msk [vmem:[%s787_s6 + $0x18] sm:$0xff] %vm378_vm1, %v373_v38 }
  0xaf   : > { %v338_v44 = vpop.f32.mrf.mxu2  ;;  %v343_v45 = vpop.f32.mrf.mxu3 }
  0xb0   : > { %v375_v46 = vadd.f32 %v367_v42, %v338_v44  ;;  %v377_v47 = vadd.f32 %v369_v43, %v343_v45 }
  0xb2   : > { %384 = vst.msk [vmem:[%s787_s6 + $0x28] sm:$0xff] %vm378_vm1, %v375_v46 }
  0xb3   : > { %386 = vst.msk [vmem:[%s787_s6 + $0x38] sm:$0xff] %vm378_vm1, %v377_v47 }
  0xb4   : > { %630 = shalt.err (!%p627_p3)
}
  0xb5   : > { %s667_s30 = smov 128   ;;  %s668_s29 = smov 8  }
  0xb6   : > { %562 = dma.vmem_to_hbm [thread:$0]  (%p732_p5), %s401_s10, 1024, %s403_s11, %s388_s12, %s667_s30, %s667_s30, %s668_s29  }
  0xb7 PF: > { %p568_p4 = scmp.ge.s32.totalorder %s665_s18, 2  ;;  %s417_s5 = sand.u32 1, %s653_s15  }
  0xb8   : > { %s418_s6 = scalar_lea.sflag [#allocation3], %s417_s5 }
  0xb9   : > { %p565_p7 = pnand %p568_p4, %p736_p6 }
  0xbb   : > { %p566_p8 = pneg %p565_p7 }
  0xbd   : > { %648 = dma.done.wait (%p566_p8), %s418_s6, 1024  }
  0xbe   : > { %650 = vsyncadd (%p566_p8), %s418_s6, 4294966272  ;;  %p14_p9 = scmp.ge.s32.totalorder %s719_s21, 4   ;;  %s850_s15 = smov %s657_s16 }
  0xbf   : > { %s851_s16 = smov %s661_s17  ;;  %s852_s17 = smov %s730_s24 }
  0xc0   : > { %s853_s18 = smov %s719_s21  ;;  %16 = sbr.rel (!%p14_p9) target bundleno = 3 (0x3), region = 77 }
  0xc5   :  { %424 = vsyncpa [#allocation3], 1 }
  0xc6   :  { %426 = vsyncpa [#allocation3 + $0x1], 1 }

// kernel: skip_connection_forward.25
= control target key start
LH: loop header
LB: loop body
LE: loop exit
PB: predicated region body
PF: predicated region fallthrough
CT: control target
= control target key end

     0   :  { %11 = vsyncpa [#allocation3], 0  ;;  %s1229_s0 = inlined_call_operand.vmem [shape: f32[16,64], index: 0, kind: input, shape index: {}]   ;;  %s1230_s1 = inlined_call_operand.vmem [shape: bf16[16,256], index: 1, kind: input, shape index: {}]   ;;  %s1231_s2 = inlined_call_operand.vmem [shape: bf16[256,64], index: 2, kind: input, shape index: {}, may-alias: {2,4}]   ;;  %s1232_s3 = inlined_call_operand.vmem [shape: bf16[16,256], index: 3, kind: input, shape index: {}]   ;;  %s1233_s4 = inlined_call_operand.vmem [shape: bf16[256,64], index: 4, kind: input, shape index: {}, may-alias: {2,4}]   ;;  %s1234_s5 = inlined_call_operand.vmem [shape: f32[1,64], index: 5, kind: input, shape index: {}]   ;;  %s1235_s6 = inlined_call_operand.hbm [shape: f32[16,64], index: 6, kind: output, shape index: {}]  }
   0x1   :  { %13 = vsyncpa [#allocation3 + $0x1], 0  ;;  %s1034_s21 = smov 0   ;;  %s1036_s22 = smov 0  }
   0x2   :  { %s1038_s23 = smov 0   ;;  %s1040_s24 = smov 0  }
   0x3 LB: > { %s1055_s25 = sadd.s32 4294967295, %s997_s24   ;;  %s719_s26 = sadd.s32 4294967294, %s997_s24   ;;  %s997_s24 = sphi %s1040_s24, %s1241_s24   ;;  %s993_s23 = sphi %s1038_s23, %s1240_s23   ;;  %s989_s22 = sphi %s1036_s22, %s1239_s22   ;;  %s985_s21 = sphi %s1034_s21, %s1238_s21  }
   0x4   : > { %s1059_s27 = sadd.s32 1, %s997_s24   ;;  %s167_s28 = sadd.s32 1, %s993_s23 }
   0x5   : > { %s164_s29 = ssub.s32 %s997_s24, %s1059_s27  ;;  %p177_p0 = scmp.ne.s32.totalorder %s993_s23, %s989_s22 }
   0x6   : > { %p165_p1 = scmp.eq.s32.totalorder %s164_s29, 0  ;;  %p178_p2 = scmp.eq.s32.totalorder %s1055_s25, 1 }
   0x7   : > { %p183_p3 = scmp.ne.s32.totalorder %s989_s22, %s985_s21  ;;  %p184_p4 = scmp.eq.s32.totalorder %s719_s26, 1 }
   0x8   : > { %s1070_s30 = scalar_select %p165_p1, %s993_s23, %s167_s28  }
   0x9   : > { %p1072_p5 = por %p178_p2, %p177_p0  ;;  %p1076_p6 = por %p184_p4, %p183_p3 }
   0xa   : > { %p722_p7 = scmp.ge.s32.totalorder %s997_s24, 1  ;;  %p234_p8 = scmp.lt.s32.totalorder %s997_s24, 3 }
   0xc   : > { %p235_p9 = pnand %p722_p7, %p234_p8 }
   0xd   : > { %p273_p10 = scmp.lt.s32.totalorder (!%p235_p9), %s1055_s25, 1  ;;  %s270_s29 = sand.u32 (!%p235_p9), 1, %s989_s22  }
   0xe   : > { %238 = sbr.rel (%p235_p9) target bundleno = 196 (0xc4), region = 44  ;;  %s723_s9 = sshll.u32 (!%p235_p9), %s270_s29, 3 }
   0xf   : > { %s858_s10 = sshll.u32 (!%p235_p9), %s1055_s25, 3 }
  0x13   : > { %v886_v0 = vld [vmem:[%s1233_s4 + $0x38] sm:$0xff]  ;;  %v885_v4 = vld [vmem:[%s1233_s4 + $0x30] sm:$0xff]  ;;  %v884_v8 = vld [vmem:[%s1233_s4 + $0x28] sm:$0xff]  ;;  %s274_s11 = scalar_select %p273_p10, %s1055_s25, 1  ;;  %vm618_vm0 = vcmask 523264  }
  0x14   : > { %v894_v1 = vld [vmem:[%s1233_s4 + $0x78] sm:$0xff]  ;;  %456 = vmatpush.bf16.msra.mxu0 %v886_v0  ;;  %v893_v5 = vld [vmem:[%s1233_s4 + $0x70] sm:$0xff]  ;;  %v892_v9 = vld [vmem:[%s1233_s4 + $0x68] sm:$0xff]  ;;  %s272_s25 = scalar_lea.vmem [#allocation2], %s723_s9 }
  0x15   : > { %v870_v2 = vld [vmem:[%s1231_s2 + $0x38] sm:$0xff]  ;;  %469 = vmatpush.bf16.msra.mxu1 %v894_v1  ;;  %v869_v6 = vld [vmem:[%s1231_s2 + $0x30] sm:$0xff]  ;;  %v868_v10 = vld [vmem:[%s1231_s2 + $0x28] sm:$0xff]  ;;  %s1144_s20 = sshll.u32 %s274_s11, 3  ;;  %s633_s26 = sshll.u32 %s272_s25, 4  ;;  %s634_s26 = int_to_ptr.vmem [resolvable:$true] %s633_s26 }
  0x16   : > { %v878_v3 = vld [vmem:[%s1231_s2 + $0x78] sm:$0xff]  ;;  %585 = vmatpush.bf16.msra.mxu2 %v870_v2  ;;  %v877_v7 = vld [vmem:[%s1231_s2 + $0x70] sm:$0xff]  ;;  %v876_v11 = vld [vmem:[%s1231_s2 + $0x68] sm:$0xff]  ;;  %s286_s16 = scalar_lea.vmem %s1232_s3, %s1144_s20  ;;  %s281_s19 = scalar_lea.vmem %s1230_s1, %s1144_s20 }
  0x17   : > { %598 = vmatpush.bf16.msra.mxu3 %v878_v3  ;;  %v883_v12 = vld [vmem:[%s1233_s4 + $0x20] sm:$0xff]  ;;  %v882_v16 = vld [vmem:[%s1233_s4 + $0x18] sm:$0xff]  ;;  %v881_v20 = vld [vmem:[%s1233_s4 + $0x10] sm:$0xff]  ;;  %s276_s13 = scalar_lea.vmem %s1229_s0, %s1144_s20  ;;  %s621_s20 = scalar_lea.sflag [#allocation3], %s270_s29 }
  0x18   : > { %457 = vmatpush.bf16.msra.mxu0 %v885_v4  ;;  %v891_v13 = vld [vmem:[%s1233_s4 + $0x60] sm:$0xff]  ;;  %v890_v17 = vld [vmem:[%s1233_s4 + $0x58] sm:$0xff]  ;;  %v889_v21 = vld [vmem:[%s1233_s4 + $0x50] sm:$0xff]  ;;  %s955_s11 = scalar_lea.hbm %s1235_s6, 16 }
  0x19   : > { %470 = vmatpush.bf16.msra.mxu1 %v893_v5  ;;  %v867_v14 = vld [vmem:[%s1231_s2 + $0x20] sm:$0xff]  ;;  %v866_v18 = vld [vmem:[%s1231_s2 + $0x18] sm:$0xff]  ;;  %v865_v22 = vld [vmem:[%s1231_s2 + $0x10] sm:$0xff] }
  0x1a   : > { %586 = vmatpush.bf16.msra.mxu2 %v869_v6  ;;  %v875_v15 = vld [vmem:[%s1231_s2 + $0x60] sm:$0xff]  ;;  %v874_v19 = vld [vmem:[%s1231_s2 + $0x58] sm:$0xff]  ;;  %v873_v23 = vld [vmem:[%s1231_s2 + $0x50] sm:$0xff] }
  0x1b   : > { %599 = vmatpush.bf16.msra.mxu3 %v877_v7  ;;  %v880_v24 = vld [vmem:[%s1233_s4 + $0x8] sm:$0xff]  ;;  %v320_v26 = vld [vmem:[%s286_s16] sm:$0xff]  ;;  %s631_s16 = scalar_lea.hbm %s1235_s6, %s858_s10 }
  0x1c   : > { %458 = vmatpush.bf16.msra.mxu0 %v884_v8  ;;  %v888_v25 = vld [vmem:[%s1233_s4 + $0x48] sm:$0xff]  ;;  %v287_v29 = vld [vmem:[%s281_s19] sm:$0xff]  ;;  %v354_v30 = vunpack.c.l.b16 %v320_v26  ;;  %v355_v31 = vunpack.c.h.b16 %v320_v26  ;;  %s635_s19 = sshll.u32 %s631_s16, 4  ;;  %s636_s19 = int_to_ptr.hbm [resolvable:$true] %s635_s19 }
  0x1d   : > { %471 = vmatpush.bf16.msra.mxu1 %v892_v9  ;;  %v864_v27 = vld [vmem:[%s1231_s2 + $0x8] sm:$0xff]  ;;  %v879_v32 = vld [vmem:[%s1233_s4] sm:$0xff]  ;;  %v483_v34 = vunpack.c.l.b16 %v287_v29  ;;  %v484_v35 = vunpack.c.h.b16 %v287_v29  ;;  %s949_s28 = sshra.s32 %s636_s19, 4  ;;  %s950_s28 = int_to_ptr.hbm [resolvable:$true] %s949_s28 }
  0x1e   : > { %587 = vmatpush.bf16.msra.mxu2 %v868_v10  ;;  %v872_v28 = vld [vmem:[%s1231_s2 + $0x48] sm:$0xff]  ;;  %v887_v33 = vld [vmem:[%s1233_s4 + $0x40] sm:$0xff]  ;;  %v356_v38 = vpack.c.b16 %v354_v30, %v354_v30  ;;  %v357_v39 = vpack.c.b16 %v355_v31, %v355_v31  ;;  %s951_s10 = scalar_lea.hbm %s950_s28, 8  ;;  %p956_p0 = scmp.lt.s32.totalorder %s950_s28, %s1235_s6 }
  0x1f   : > { %600 = vmatpush.bf16.msra.mxu3 %v876_v11  ;;  %v863_v36 = vld [vmem:[%s1231_s2] sm:$0xff]  ;;  %v485_v40 = vpack.c.b16 %v483_v34, %v483_v34  ;;  %v486_v41 = vpack.c.b16 %v484_v35, %v484_v35  ;;  %p952_p11 = scmp.ne.s32.totalorder %s950_s28, %s951_s10  ;;  %p957_p1 = scmp.lt.s32.totalorder %s955_s11, %s951_s10 }
  0x20   : > { %459 = vmatpush.bf16.msra.mxu0 %v883_v12  ;;  %v871_v37 = vld [vmem:[%s1231_s2 + $0x40] sm:$0xff] }
  0x21   : > { %472 = vmatpush.bf16.msra.mxu1 %v891_v13  ;;  %v611_v50 = vld [vmem:[%s276_s13] sm:$0xff]  ;;  %p953_p12 = pnand %p952_p11, %p1072_p5  ;;  %p958_p2 = por %p957_p1, %p956_p0 }
  0x22   : > { %588 = vmatpush.bf16.msra.mxu2 %v867_v14  ;;  %v934_v52 = vld [vmem:[%s1234_s5] ss:$0 sm:$0xff] }
  0x23   : > { %601 = vmatpush.bf16.msra.mxu3 %v875_v15  ;;  %p954_p13 = pneg %p953_p12 }
  0x24   : > { %460 = vmatpush.bf16.msra.mxu0 %v882_v16 }
  0x25   : > { %473 = vmatpush.bf16.msra.mxu1 %v890_v17  ;;  %p959_p3 = pnand %p958_p2, %p954_p13 }
  0x26   : > { %589 = vmatpush.bf16.msra.mxu2 %v866_v18 }
  0x27   : > { %602 = vmatpush.bf16.msra.mxu3 %v874_v19 }
  0x28   : > { %461 = vmatpush.bf16.msra.mxu0 %v881_v20 }
  0x29   : > { %474 = vmatpush.bf16.msra.mxu1 %v889_v21 }
  0x2a   : > { %590 = vmatpush.bf16.msra.mxu2 %v865_v22 }
  0x2b   : > { %603 = vmatpush.bf16.msra.mxu3 %v873_v23 }
  0x2c   : > { %462 = vmatpush.bf16.msra.mxu0 %v880_v24 }
  0x2d   : > { %475 = vmatpush.bf16.msra.mxu1 %v888_v25 }
  0x2e   : > { %591 = vmatpush.bf16.msra.mxu2 %v864_v27 }
  0x2f   : > { %604 = vmatpush.bf16.msra.mxu3 %v872_v28 }
  0x30   : > { %463 = vmatpush.bf16.msra.mxu0 %v879_v32 }
  0x31   : > { %476 = vmatpush.bf16.msra.mxu1 %v887_v33 }
  0x32   : > { %592 = vmatpush.bf16.msra.mxu2 %v863_v36 }
  0x33   : > { %605 = vmatpush.bf16.msra.mxu3 %v871_v37  ;;  %464 = vmatmul.bf16.vlgmr.msra.gmra.mxu0 %v356_v38 }
  0x34   : > { %477 = vmatmul.bf16.vlgmr.msra.gmra.mxu1 %v357_v39 }
  0x35   : > { %593 = vmatmul.bf16.vlgmr.msra.gmra.mxu2 %v485_v40 }
  0x36   : > { %606 = vmatmul.bf16.vlgmr.msra.gmra.mxu3 %v486_v41 }
  0xb0   : > { %v465_v42 = vpop.f32.mrf.mxu0 }
  0xb1   : > { %v478_v43 = vpop.f32.mrf.mxu1 }
  0xb2   : > { %v479_v44 = vadd.f32 %v478_v43, %v465_v42 }
  0xb8   : > { %v594_v45 = vpop.f32.mrf.mxu2  ;;  %v467_v48 = vpop.f32.mrf.mxu0 }
  0xb9   : > { %v607_v46 = vpop.f32.mrf.mxu3  ;;  %v595_v47 = vadd.f32 %v594_v45, %v479_v44  ;;  %v480_v49 = vpop.f32.mrf.mxu1 }
  0xbb   : > { %v608_v51 = vadd.f32 %v607_v46, %v595_v47 }
  0xbd   : > { %v612_v53 = vadd.f32 %v611_v50, %v608_v51 }
  0xbf   : > { %v617_v54 = vadd.f32 %v934_v52, %v612_v53 }
  0xc0   : > { %v596_v55 = vpop.f32.mrf.mxu2 }
  0xc1   : > { %v609_v56 = vpop.f32.mrf.mxu3  ;;  %619 = vst.msk [vmem:[%s272_s25] sm:$0xff] %vm618_vm0, %v617_v54 }
  0xc2   : > { %962 = shalt.err (!%p959_p3)
}
  0xc3   : > { %895 = dma.vmem_to_hbm [thread:$0]  (%p1072_p5), %s634_s26, 128, %s636_s19, %s621_s20  }
  0xc4 PF: > { %p901_p4 = scmp.ge.s32.totalorder %s997_s24, 2  ;;  %s647_s29 = sand.u32 1, %s985_s21  }
  0xc5   : > { %s648_s15 = scalar_lea.sflag [#allocation3], %s647_s29 }
  0xc6   : > { %p898_p7 = pnand %p901_p4, %p1076_p6 }
  0xc8   : > { %p899_p8 = pneg %p898_p7 }
  0xca   : > { %980 = dma.done.wait (%p899_p8), %s648_s15, 128  }
  0xcb   : > { %982 = vsyncadd (%p899_p8), %s648_s15, 4294967168  ;;  %p16_p9 = scmp.ge.s32.totalorder %s1059_s27, 4   ;;  %s1238_s21 = smov %s989_s22 }
  0xcc   : > { %s1239_s22 = smov %s993_s23  ;;  %s1240_s23 = smov %s1070_s30 }
  0xcd   : > { %s1241_s24 = smov %s1059_s27  ;;  %18 = sbr.rel (!%p16_p9) target bundleno = 3 (0x3), region = 85 }
  0xd2   :  { %654 = vsyncpa [#allocation3], 1 }
  0xd3   :  { %656 = vsyncpa [#allocation3 + $0x1], 1 }

</bundles_post_ra>
